<compile_context>
chip_gen: v7x
topology: tpu7x:2x2x1
jax: 0.10.0
libtpu: 0.0.40
codegen_flags: <defaults>
</compile_context>

<pallas_src>
import functools

import jax
import jax.numpy as jnp
from jax.experimental import pallas as pl
from jax.experimental.pallas import tpu as pltpu

PARAM_ORDER = ("wqkv", "bqkv", "wo", "bo", "ln1w", "ln1b",
               "w1", "b1", "w2", "b2", "ln2w", "ln2b")


def _layer_norm(x, w, b, eps=1e-5):
    mu = jnp.mean(x, axis=-1, keepdims=True)
    var = jnp.mean((x - mu) ** 2, axis=-1, keepdims=True)
    return (x - mu) * jax.lax.rsqrt(var + eps) * w + b


def transformer_layer_kernel(x_ref,
                             wqkv_ref, bqkv_ref, wo_ref, bo_ref,
                             ln1w_ref, ln1b_ref, w1_ref, b1_ref,
                             w2_ref, b2_ref, ln2w_ref, ln2b_ref,
                             o_ref, x_sc, *, nhead, head_dim):
    l = pl.program_id(1)
    num_layers = pl.num_programs(1)
    seq = x_sc.shape[0]
    d_model = nhead * head_dim
    scale = 1.0 / (head_dim ** 0.5)
    bf16, f32 = jnp.bfloat16, jnp.float32

    # Load this batch element's activations into the persistent scratch once.
    @pl.when(l == 0)
    def _():
        x_sc[...] = x_ref[0].astype(f32)

    x = x_sc[...]                                                  # (S, D) f32

    # ---- multi-head self-attention: fused QKV projection (one MXU matmul) ----
    qkv = jnp.dot(x.astype(bf16), wqkv_ref[0],
                  preferred_element_type=f32) + bqkv_ref[0]        # (S, 3D)
    q = qkv[:, :d_model] * scale
    k = qkv[:, d_model:2 * d_model]
    v = qkv[:, 2 * d_model:]

    # Split heads (static slices / small relayout), head-major for batched dots.
    qh = jnp.transpose(q.reshape(seq, nhead, head_dim), (1, 0, 2))  # (H, S, hd)
    kh = jnp.transpose(k.reshape(seq, nhead, head_dim), (1, 0, 2))
    vh = jnp.transpose(v.reshape(seq, nhead, head_dim), (1, 0, 2))

    s = jnp.einsum('hqd,hkd->hqk', qh.astype(bf16), kh.astype(bf16),
                   preferred_element_type=f32)                     # (H, S, S)
    s = s - jnp.max(s, axis=-1, keepdims=True)
    p = jnp.exp(s)
    p = p / jnp.sum(p, axis=-1, keepdims=True)                     # exact softmax

    ctx = jnp.einsum('hqk,hkd->hqd', p.astype(bf16), vh.astype(bf16),
                     preferred_element_type=f32)                   # (H, S, hd)
    ctx2 = jnp.transpose(ctx, (1, 0, 2)).reshape(seq, d_model)     # (S, D)

    attn = jnp.dot(ctx2.astype(bf16), wo_ref[0],
                   preferred_element_type=f32) + bo_ref[0]         # (S, D)
    x = _layer_norm(x + attn, ln1w_ref[0], ln1b_ref[0])

    # ---- feed-forward ----
    h = jnp.dot(x.astype(bf16), w1_ref[0],
                preferred_element_type=f32) + b1_ref[0]            # (S, d_ff)
    h = jnp.maximum(h, 0.0)                                        # relu
    ff = jnp.dot(h.astype(bf16), w2_ref[0],
                 preferred_element_type=f32) + b2_ref[0]           # (S, D)
    x = _layer_norm(x + ff, ln2w_ref[0], ln2b_ref[0])

    x_sc[...] = x

    @pl.when(l == num_layers - 1)
    def _():
        o_ref[0] = x.astype(o_ref.dtype)


def encoder_only_transformer(x, params, *, nhead):
    B, S, D = x.shape
    head_dim = D // nhead
    num_layers = params["wqkv"].shape[0]
    d_ff = params["w1"].shape[-1]

    kernel = functools.partial(transformer_layer_kernel,
                               nhead=nhead, head_dim=head_dim)

    def w_spec(arr):
        trailing = arr.shape[1:]
        nt = len(trailing)
        return pl.BlockSpec((1,) + trailing,
                            lambda b, l, _nt=nt: (l,) + (0,) * _nt)

    in_specs = ([pl.BlockSpec((1, S, D), lambda b, l: (b, 0, 0))]
                + [w_spec(params[name]) for name in PARAM_ORDER])
    out_spec = pl.BlockSpec((1, S, D), lambda b, l: (b, 0, 0))

    flops_layer = (2 * S * D * 3 * D                      # fused qkv projection
                   + 2 * 2 * nhead * S * S * head_dim     # scores + context
                   + 2 * S * D * D                        # output projection
                   + 2 * 2 * S * D * d_ff)                # FFN
    param_bytes = sum(int(params[k].size) * params[k].dtype.itemsize
                      for k in PARAM_ORDER)
    cost = pl.CostEstimate(
        flops=int(B * num_layers * flops_layer),
        transcendentals=int(B * num_layers * (nhead * S * S + 4 * S)),
        bytes_accessed=int(B * param_bytes + 2 * B * S * D * 4))

    out = pl.pallas_call(
        kernel,
        out_shape=jax.ShapeDtypeStruct((B, S, D), x.dtype),
        grid=(B, num_layers),
        in_specs=in_specs,
        out_specs=out_spec,
        scratch_shapes=[pltpu.VMEM((S, D), jnp.float32)],
        compiler_params=pltpu.CompilerParams(
            dimension_semantics=("parallel", "arbitrary"),
            vmem_limit_bytes=32 * 1024 * 1024),
        cost_estimate=cost,
    )(x, *[params[name] for name in PARAM_ORDER])
    return out


# ----------------------------- parameter init --------------------------------
# NOTE: layout is x @ W (not nn.Linear's x @ W.T).  To load real PyTorch
# weights: wqkv = in_proj_weight.T, wo = out_proj.weight.T, w1 = linear1.weight.T,
# w2 = linear2.weight.T.

def init_layer_params(key, d_model, d_ff, nhead):
    ks = jax.random.split(key, 12)
    s = 0.02
    f32, bf16 = jnp.float32, jnp.bfloat16

    wq = jax.random.normal(ks[0], (d_model, d_model), f32) * s
    wk = jax.random.normal(ks[1], (d_model, d_model), f32) * s
    wv = jax.random.normal(ks[2], (d_model, d_model), f32) * s
    bq = jax.random.normal(ks[3], (d_model,), f32) * s
    bk = jax.random.normal(ks[4], (d_model,), f32) * s
    bv = jax.random.normal(ks[5], (d_model,), f32) * s
    wo = jax.random.normal(ks[6], (d_model, d_model), f32) * s

    return {
        "wqkv": jnp.concatenate([wq, wk, wv], axis=1).astype(bf16),   # (D, 3D)
        "bqkv": jnp.concatenate([bq, bk, bv]).reshape(1, 3 * d_model),
        "wo": wo.astype(bf16),                                        # (D, D)
        "bo": (jax.random.normal(ks[7], (d_model,), f32) * s).reshape(1, d_model),
        "ln1w": jnp.ones((1, d_model), f32),
        "ln1b": jnp.zeros((1, d_model), f32),
        "w1": (jax.random.normal(ks[8], (d_model, d_ff), f32) * s).astype(bf16),
        "b1": (jax.random.normal(ks[9], (d_ff,), f32) * s).reshape(1, d_ff),
        "w2": (jax.random.normal(ks[10], (d_ff, d_model), f32) * s).astype(bf16),
        "b2": (jax.random.normal(ks[11], (d_model,), f32) * s).reshape(1, d_model),
        "ln2w": jnp.ones((1, d_model), f32),
        "ln2b": jnp.zeros((1, d_model), f32),
    }


def stack_layers(layer_list):
    return {name: jnp.stack([p[name] for p in layer_list], axis=0)
            for name in PARAM_ORDER}


# ---------------------------------- main --------------------------------------

if __name__ == "__main__":
    # Small shapes consistent with the module: batch=2, seq=8, d_model=256,
    # nhead=8 (fixed), dim_feedforward=2048 (fixed), layers=2.
    B, S, D = 2, 8, 256
    NHEAD, DFF, LAYERS = 8, 2048, 2

    key = jax.random.PRNGKey(0)
    x_key, p_key = jax.random.split(key)
    x = jax.random.normal(x_key, (B, S, D), jnp.float32)

    layer_params = [init_layer_params(jax.random.fold_in(p_key, l), D, DFF, NHEAD)
                    for l in range(LAYERS)]
    params = stack_layers(layer_params)

    out = encoder_only_transformer(x, params, nhead=NHEAD)
    out = jax.block_until_ready(out)

    assert out.shape == (B, S, D)
    assert bool(jnp.all(jnp.isfinite(out)))
    # TODO(synk): dropout (p=0.1) is identity in eval mode and is omitted.
    print("KERNEL_OK")
</pallas_src>

<mosaic_0001>
module attributes {stable_mosaic.version = 11 : i64} {
  func.func @transformer_layer_kernel(%arg0: i32, %arg1: i32, %arg2: memref<1x8x256xf32, #tpu.memory_space<vmem>>, %arg3: memref<1x256x768xbf16, #tpu.memory_space<vmem>>, %arg4: memref<1x1x768xf32, #tpu.memory_space<vmem>>, %arg5: memref<1x256x256xbf16, #tpu.memory_space<vmem>>, %arg6: memref<1x1x256xf32, #tpu.memory_space<vmem>>, %arg7: memref<1x1x256xf32, #tpu.memory_space<vmem>>, %arg8: memref<1x1x256xf32, #tpu.memory_space<vmem>>, %arg9: memref<1x256x2048xbf16, #tpu.memory_space<vmem>>, %arg10: memref<1x1x2048xf32, #tpu.memory_space<vmem>>, %arg11: memref<1x2048x256xbf16, #tpu.memory_space<vmem>>, %arg12: memref<1x1x256xf32, #tpu.memory_space<vmem>>, %arg13: memref<1x1x256xf32, #tpu.memory_space<vmem>>, %arg14: memref<1x1x256xf32, #tpu.memory_space<vmem>>, %arg15: memref<1x8x256xf32, #tpu.memory_space<vmem>>, %arg16: memref<8x256xf32, #tpu.memory_space<vmem>>) attributes {dimension_semantics = [#tpu.dimension_semantics<parallel>, #tpu.dimension_semantics<arbitrary>], iteration_bounds = array<i64: 2, 2>, scalar_prefetch = 0 : i64, scratch_operands = 1 : i64, tpu.core_type = #tpu.core_type<tc>, window_params = [{transform_indices = @transform_0, window_bounds = array<i64: 1, 8, 256>}, {transform_indices = @transform_1, window_bounds = array<i64: 1, 256, 768>}, {transform_indices = @transform_2, window_bounds = array<i64: 1, 1, 768>}, {transform_indices = @transform_3, window_bounds = array<i64: 1, 256, 256>}, {transform_indices = @transform_4, window_bounds = array<i64: 1, 1, 256>}, {transform_indices = @transform_5, window_bounds = array<i64: 1, 1, 256>}, {transform_indices = @transform_6, window_bounds = array<i64: 1, 1, 256>}, {transform_indices = @transform_7, window_bounds = array<i64: 1, 256, 2048>}, {transform_indices = @transform_8, window_bounds = array<i64: 1, 1, 2048>}, {transform_indices = @transform_9, window_bounds = array<i64: 1, 2048, 256>}, {transform_indices = @transform_10, window_bounds = array<i64: 1, 1, 256>}, {transform_indices = @transform_11, window_bounds = array<i64: 1, 1, 256>}, {transform_indices = @transform_12, window_bounds = array<i64: 1, 1, 256>}, {transform_indices = @transform_13, window_bounds = array<i64: 1, 8, 256>}]} {
    %c0_i32 = arith.constant 0 : i32
    %0 = arith.cmpi eq, %arg1, %c0_i32 : i32
    %1 = arith.extui %0 : i1 to i32
    %c0_i32_0 = arith.constant 0 : i32
    %2 = arith.cmpi ne, %1, %c0_i32_0 : i32
    scf.if %2 {
      %c0_60 = arith.constant 0 : index
      %c0_61 = arith.constant 0 : index
      %c0_62 = arith.constant 0 : index
      %124 = vector.load %arg2[%c0_60, %c0_61, %c0_62] : memref<1x8x256xf32, #tpu.memory_space<vmem>>, vector<1x8x256xf32>
      %125 = vector.shape_cast %124 : vector<1x8x256xf32> to vector<8x256xf32>
      %c0_63 = arith.constant 0 : index
      %c0_64 = arith.constant 0 : index
      %126 = vector.load %arg16[%c0_63, %c0_64] : memref<8x256xf32, #tpu.memory_space<vmem>>, vector<8x256xf32>
      tpu.vector_store %arg16[%c0_63, %c0_64], %125 {strides = array<i32>} : memref<8x256xf32, #tpu.memory_space<vmem>>, vector<8x256xf32>,
    } else {
    }
    %c0 = arith.constant 0 : index
    %c0_1 = arith.constant 0 : index
    %3 = vector.load %arg16[%c0, %c0_1] : memref<8x256xf32, #tpu.memory_space<vmem>>, vector<8x256xf32>
    %4 = arith.truncf %3 : vector<8x256xf32> to vector<8x256xbf16>
    %c0_2 = arith.constant 0 : index
    %c0_3 = arith.constant 0 : index
    %c0_4 = arith.constant 0 : index
    %5 = vector.load %arg3[%c0_2, %c0_3, %c0_4] : memref<1x256x768xbf16, #tpu.memory_space<vmem>>, vector<1x256x768xbf16>
    %6 = vector.shape_cast %5 : vector<1x256x768xbf16> to vector<256x768xbf16>
    %cst = arith.constant dense<0.000000e+00> : vector<8x768xf32>
    %7 = tpu.matmul %4, %6, %cst {dimension_numbers = #tpu.dot_dimension_numbers<[1], [0], [0], [1], [0, 0, 1, 1], [], []>} : vector<8x256xbf16>, vector<256x768xbf16>, vector<8x768xf32> -> vector<8x768xf32>
    %c0_5 = arith.constant 0 : index
    %c0_6 = arith.constant 0 : index
    %c0_7 = arith.constant 0 : index
    %8 = vector.load %arg4[%c0_5, %c0_6, %c0_7] : memref<1x1x768xf32, #tpu.memory_space<vmem>>, vector<1x1x768xf32>
    %9 = vector.shape_cast %8 : vector<1x1x768xf32> to vector<1x768xf32>
    %10 = vector.broadcast %9 : vector<1x768xf32> to vector<8x768xf32>
    %11 = arith.addf %7, %10 : vector<8x768xf32>
    %12 = vector.extract_strided_slice %11 {offsets = [0, 0], sizes = [8, 256], strides = [1, 1]} : vector<8x768xf32> to vector<8x256xf32>
    %cst_8 = arith.constant 0.176776692 : f32
    %13 = vector.broadcast %cst_8 : f32 to vector<8x256xf32>
    %14 = arith.mulf %12, %13 : vector<8x256xf32>
    %15 = vector.extract_strided_slice %11 {offsets = [0, 256], sizes = [8, 256], strides = [1, 1]} : vector<8x768xf32> to vector<8x256xf32>
    %16 = vector.extract_strided_slice %11 {offsets = [0, 512], sizes = [8, 256], strides = [1, 1]} : vector<8x768xf32> to vector<8x256xf32>
    %17 = vector.shape_cast %14 : vector<8x256xf32> to vector<8x8x32xf32>
    %18 = tpu.transpose %17, [1, 0, 2] : vector<8x8x32xf32> -> vector<8x8x32xf32>
    %19 = vector.shape_cast %15 : vector<8x256xf32> to vector<8x8x32xf32>
    %20 = tpu.transpose %19, [1, 0, 2] : vector<8x8x32xf32> -> vector<8x8x32xf32>
    %21 = vector.shape_cast %16 : vector<8x256xf32> to vector<8x8x32xf32>
    %22 = tpu.transpose %21, [1, 0, 2] : vector<8x8x32xf32> -> vector<8x8x32xf32>
    %23 = arith.truncf %18 : vector<8x8x32xf32> to vector<8x8x32xbf16>
    %24 = arith.truncf %20 : vector<8x8x32xf32> to vector<8x8x32xbf16>
    "tpu.trace_start"() <{level = 10 : i32, message = "hqd,hkd->hqk"}> : () -> ()
    %cst_9 = arith.constant dense<0.000000e+00> : vector<8x8x8xf32>
    %25 = tpu.matmul %23, %24, %cst_9 {dimension_numbers = #tpu.dot_dimension_numbers<[2], [2], [1], [1], [0, 0, 0, 1, 1, 1], [0], [0]>} : vector<8x8x32xbf16>, vector<8x8x32xbf16>, vector<8x8x8xf32> -> vector<8x8x8xf32>
    "tpu.trace_stop"() : () -> ()
    %cst_10 = arith.constant dense<0xFF800000> : vector<8x8xf32>
    %26 = vector.multi_reduction <maximumf>, %25, %cst_10 [2] : vector<8x8x8xf32> to vector<8x8xf32>
    %27 = vector.shape_cast %26 : vector<8x8xf32> to vector<8x8x1xf32>
    %28 = vector.broadcast %27 : vector<8x8x1xf32> to vector<8x8x8xf32>
    %29 = arith.subf %25, %28 : vector<8x8x8xf32>
    %30 = math.exp %29 : vector<8x8x8xf32>
    %cst_11 = arith.constant dense<0.000000e+00> : vector<8x8xf32>
    %31 = vector.multi_reduction <add>, %30, %cst_11 [2] : vector<8x8x8xf32> to vector<8x8xf32>
    %32 = vector.shape_cast %31 : vector<8x8xf32> to vector<8x8x1xf32>
    %33 = vector.broadcast %32 : vector<8x8x1xf32> to vector<8x8x8xf32>
    %34 = arith.divf %30, %33 : vector<8x8x8xf32>
    %35 = arith.truncf %34 : vector<8x8x8xf32> to vector<8x8x8xbf16>
    %36 = arith.truncf %22 : vector<8x8x32xf32> to vector<8x8x32xbf16>
    "tpu.trace_start"() <{level = 10 : i32, message = "hqk,hkd->hqd"}> : () -> ()
    %cst_12 = arith.constant dense<0.000000e+00> : vector<8x8x32xf32>
    %37 = tpu.matmul %35, %36, %cst_12 {dimension_numbers = #tpu.dot_dimension_numbers<[2], [1], [1], [2], [0, 0, 0, 1, 1, 2], [0], [0]>} : vector<8x8x8xbf16>, vector<8x8x32xbf16>, vector<8x8x32xf32> -> vector<8x8x32xf32>
    "tpu.trace_stop"() : () -> ()
    %38 = tpu.transpose %37, [1, 0, 2] : vector<8x8x32xf32> -> vector<8x8x32xf32>
    %39 = vector.shape_cast %38 : vector<8x8x32xf32> to vector<8x256xf32>
    %40 = arith.truncf %39 : vector<8x256xf32> to vector<8x256xbf16>
    %c0_13 = arith.constant 0 : index
    %c0_14 = arith.constant 0 : index
    %c0_15 = arith.constant 0 : index
    %41 = vector.load %arg5[%c0_13, %c0_14, %c0_15] : memref<1x256x256xbf16, #tpu.memory_space<vmem>>, vector<1x256x256xbf16>
    %42 = vector.shape_cast %41 : vector<1x256x256xbf16> to vector<256x256xbf16>
    %cst_16 = arith.constant dense<0.000000e+00> : vector<8x256xf32>
    %43 = tpu.matmul %40, %42, %cst_16 {dimension_numbers = #tpu.dot_dimension_numbers<[1], [0], [0], [1], [0, 0, 1, 1], [], []>} : vector<8x256xbf16>, vector<256x256xbf16>, vector<8x256xf32> -> vector<8x256xf32>
    %c0_17 = arith.constant 0 : index
    %c0_18 = arith.constant 0 : index
    %c0_19 = arith.constant 0 : index
    %44 = vector.load %arg6[%c0_17, %c0_18, %c0_19] : memref<1x1x256xf32, #tpu.memory_space<vmem>>, vector<1x1x256xf32>
    %45 = vector.shape_cast %44 : vector<1x1x256xf32> to vector<1x256xf32>
    %46 = vector.broadcast %45 : vector<1x256xf32> to vector<8x256xf32>
    %47 = arith.addf %43, %46 : vector<8x256xf32>
    %48 = arith.addf %3, %47 : vector<8x256xf32>
    %c0_20 = arith.constant 0 : index
    %c0_21 = arith.constant 0 : index
    %c0_22 = arith.constant 0 : index
    %49 = vector.load %arg7[%c0_20, %c0_21, %c0_22] : memref<1x1x256xf32, #tpu.memory_space<vmem>>, vector<1x1x256xf32>
    %50 = vector.shape_cast %49 : vector<1x1x256xf32> to vector<1x256xf32>
    %c0_23 = arith.constant 0 : index
    %c0_24 = arith.constant 0 : index
    %c0_25 = arith.constant 0 : index
    %51 = vector.load %arg8[%c0_23, %c0_24, %c0_25] : memref<1x1x256xf32, #tpu.memory_space<vmem>>, vector<1x1x256xf32>
    %52 = vector.shape_cast %51 : vector<1x1x256xf32> to vector<1x256xf32>
    %cst_26 = arith.constant dense<0.000000e+00> : vector<8xf32>
    %53 = vector.multi_reduction <add>, %48, %cst_26 [1] : vector<8x256xf32> to vector<8xf32>
    %54 = vector.shape_cast %53 : vector<8xf32> to vector<8x1xf32>
    %cst_27 = arith.constant 2.560000e+02 : f32
    %55 = vector.broadcast %cst_27 : f32 to vector<8x1xf32>
    %56 = arith.divf %54, %55 : vector<8x1xf32>
    %57 = vector.broadcast %56 : vector<8x1xf32> to vector<8x256xf32>
    %58 = arith.subf %48, %57 : vector<8x256xf32>
    %59 = arith.mulf %58, %58 : vector<8x256xf32>
    %cst_28 = arith.constant dense<0.000000e+00> : vector<8xf32>
    %60 = vector.multi_reduction <add>, %59, %cst_28 [1] : vector<8x256xf32> to vector<8xf32>
    %61 = vector.shape_cast %60 : vector<8xf32> to vector<8x1xf32>
    %cst_29 = arith.constant 2.560000e+02 : f32
    %62 = vector.broadcast %cst_29 : f32 to vector<8x1xf32>
    %63 = arith.divf %61, %62 : vector<8x1xf32>
    %64 = vector.broadcast %56 : vector<8x1xf32> to vector<8x256xf32>
    %65 = arith.subf %48, %64 : vector<8x256xf32>
    %cst_30 = arith.constant 9.99999974E-6 : f32
    %66 = vector.broadcast %cst_30 : f32 to vector<8x1xf32>
    %67 = arith.addf %63, %66 : vector<8x1xf32>
    %68 = math.rsqrt %67 : vector<8x1xf32>
    %69 = vector.broadcast %68 : vector<8x1xf32> to vector<8x256xf32>
    %70 = arith.mulf %65, %69 : vector<8x256xf32>
    %71 = vector.broadcast %50 : vector<1x256xf32> to vector<8x256xf32>
    %72 = arith.mulf %70, %71 : vector<8x256xf32>
    %73 = vector.broadcast %52 : vector<1x256xf32> to vector<8x256xf32>
    %74 = arith.addf %72, %73 : vector<8x256xf32>
    %75 = arith.truncf %74 : vector<8x256xf32> to vector<8x256xbf16>
    %c0_31 = arith.constant 0 : index
    %c0_32 = arith.constant 0 : index
    %c0_33 = arith.constant 0 : index
    %76 = vector.load %arg9[%c0_31, %c0_32, %c0_33] : memref<1x256x2048xbf16, #tpu.memory_space<vmem>>, vector<1x256x2048xbf16>
    %77 = vector.shape_cast %76 : vector<1x256x2048xbf16> to vector<256x2048xbf16>
    %cst_34 = arith.constant dense<0.000000e+00> : vector<8x2048xf32>
    %78 = tpu.matmul %75, %77, %cst_34 {dimension_numbers = #tpu.dot_dimension_numbers<[1], [0], [0], [1], [0, 0, 1, 1], [], []>} : vector<8x256xbf16>, vector<256x2048xbf16>, vector<8x2048xf32> -> vector<8x2048xf32>
    %c0_35 = arith.constant 0 : index
    %c0_36 = arith.constant 0 : index
    %c0_37 = arith.constant 0 : index
    %79 = vector.load %arg10[%c0_35, %c0_36, %c0_37] : memref<1x1x2048xf32, #tpu.memory_space<vmem>>, vector<1x1x2048xf32>
    %80 = vector.shape_cast %79 : vector<1x1x2048xf32> to vector<1x2048xf32>
    %81 = vector.broadcast %80 : vector<1x2048xf32> to vector<8x2048xf32>
    %82 = arith.addf %78, %81 : vector<8x2048xf32>
    %cst_38 = arith.constant 0.000000e+00 : f32
    %83 = vector.broadcast %cst_38 : f32 to vector<8x2048xf32>
    %84 = arith.maximumf %82, %83 : vector<8x2048xf32>
    %85 = arith.truncf %84 : vector<8x2048xf32> to vector<8x2048xbf16>
    %c0_39 = arith.constant 0 : index
    %c0_40 = arith.constant 0 : index
    %c0_41 = arith.constant 0 : index
    %86 = vector.load %arg11[%c0_39, %c0_40, %c0_41] : memref<1x2048x256xbf16, #tpu.memory_space<vmem>>, vector<1x2048x256xbf16>
    %87 = vector.shape_cast %86 : vector<1x2048x256xbf16> to vector<2048x256xbf16>
    %cst_42 = arith.constant dense<0.000000e+00> : vector<8x256xf32>
    %88 = tpu.matmul %85, %87, %cst_42 {dimension_numbers = #tpu.dot_dimension_numbers<[1], [0], [0], [1], [0, 0, 1, 1], [], []>} : vector<8x2048xbf16>, vector<2048x256xbf16>, vector<8x256xf32> -> vector<8x256xf32>
    %c0_43 = arith.constant 0 : index
    %c0_44 = arith.constant 0 : index
    %c0_45 = arith.constant 0 : index
    %89 = vector.load %arg12[%c0_43, %c0_44, %c0_45] : memref<1x1x256xf32, #tpu.memory_space<vmem>>, vector<1x1x256xf32>
    %90 = vector.shape_cast %89 : vector<1x1x256xf32> to vector<1x256xf32>
    %91 = vector.broadcast %90 : vector<1x256xf32> to vector<8x256xf32>
    %92 = arith.addf %88, %91 : vector<8x256xf32>
    %93 = arith.addf %74, %92 : vector<8x256xf32>
    %c0_46 = arith.constant 0 : index
    %c0_47 = arith.constant 0 : index
    %c0_48 = arith.constant 0 : index
    %94 = vector.load %arg13[%c0_46, %c0_47, %c0_48] : memref<1x1x256xf32, #tpu.memory_space<vmem>>, vector<1x1x256xf32>
    %95 = vector.shape_cast %94 : vector<1x1x256xf32> to vector<1x256xf32>
    %c0_49 = arith.constant 0 : index
    %c0_50 = arith.constant 0 : index
    %c0_51 = arith.constant 0 : index
    %96 = vector.load %arg14[%c0_49, %c0_50, %c0_51] : memref<1x1x256xf32, #tpu.memory_space<vmem>>, vector<1x1x256xf32>
    %97 = vector.shape_cast %96 : vector<1x1x256xf32> to vector<1x256xf32>
    %cst_52 = arith.constant dense<0.000000e+00> : vector<8xf32>
    %98 = vector.multi_reduction <add>, %93, %cst_52 [1] : vector<8x256xf32> to vector<8xf32>
    %99 = vector.shape_cast %98 : vector<8xf32> to vector<8x1xf32>
    %cst_53 = arith.constant 2.560000e+02 : f32
    %100 = vector.broadcast %cst_53 : f32 to vector<8x1xf32>
    %101 = arith.divf %99, %100 : vector<8x1xf32>
    %102 = vector.broadcast %101 : vector<8x1xf32> to vector<8x256xf32>
    %103 = arith.subf %93, %102 : vector<8x256xf32>
    %104 = arith.mulf %103, %103 : vector<8x256xf32>
    %cst_54 = arith.constant dense<0.000000e+00> : vector<8xf32>
    %105 = vector.multi_reduction <add>, %104, %cst_54 [1] : vector<8x256xf32> to vector<8xf32>
    %106 = vector.shape_cast %105 : vector<8xf32> to vector<8x1xf32>
    %cst_55 = arith.constant 2.560000e+02 : f32
    %107 = vector.broadcast %cst_55 : f32 to vector<8x1xf32>
    %108 = arith.divf %106, %107 : vector<8x1xf32>
    %109 = vector.broadcast %101 : vector<8x1xf32> to vector<8x256xf32>
    %110 = arith.subf %93, %109 : vector<8x256xf32>
    %cst_56 = arith.constant 9.99999974E-6 : f32
    %111 = vector.broadcast %cst_56 : f32 to vector<8x1xf32>
    %112 = arith.addf %108, %111 : vector<8x1xf32>
    %113 = math.rsqrt %112 : vector<8x1xf32>
    %114 = vector.broadcast %113 : vector<8x1xf32> to vector<8x256xf32>
    %115 = arith.mulf %110, %114 : vector<8x256xf32>
    %116 = vector.broadcast %95 : vector<1x256xf32> to vector<8x256xf32>
    %117 = arith.mulf %115, %116 : vector<8x256xf32>
    %118 = vector.broadcast %97 : vector<1x256xf32> to vector<8x256xf32>
    %119 = arith.addf %117, %118 : vector<8x256xf32>
    %c0_57 = arith.constant 0 : index
    %c0_58 = arith.constant 0 : index
    %120 = vector.load %arg16[%c0_57, %c0_58] : memref<8x256xf32, #tpu.memory_space<vmem>>, vector<8x256xf32>
    tpu.vector_store %arg16[%c0_57, %c0_58], %119 {strides = array<i32>} : memref<8x256xf32, #tpu.memory_space<vmem>>, vector<8x256xf32>,
    %c1_i32 = arith.constant 1 : i32
    %121 = arith.cmpi eq, %arg1, %c1_i32 : i32
    %122 = arith.extui %121 : i1 to i32
    %c0_i32_59 = arith.constant 0 : i32
    %123 = arith.cmpi ne, %122, %c0_i32_59 : i32
    scf.if %123 {
      %c0_60 = arith.constant 0 : index
      %c0_61 = arith.constant 0 : index
      %c0_62 = arith.constant 0 : index
      %124 = vector.load %arg15[%c0_60, %c0_61, %c0_62] : memref<1x8x256xf32, #tpu.memory_space<vmem>>, vector<1x8x256xf32>
      %125 = vector.shape_cast %124 : vector<1x8x256xf32> to vector<8x256xf32>
      %126 = vector.shape_cast %119 : vector<8x256xf32> to vector<1x8x256xf32>
      tpu.vector_store %arg15[%c0_60, %c0_61, %c0_62], %126 {strides = array<i32>} : memref<1x8x256xf32, #tpu.memory_space<vmem>>, vector<1x8x256xf32>,
    } else {
    }
    return
  }
  func.func @transform_0(%arg0: i32, %arg1: i32) -> (i32, i32, i32) {
    %c0_i32 = arith.constant 0 : i32
    %c0_i32_0 = arith.constant 0 : i32
    %c0_i32_1 = arith.constant 0 : i32
    return %arg0, %c0_i32, %c0_i32_0 : i32, i32, i32
  }
  func.func @transform_1(%arg0: i32, %arg1: i32) -> (i32, i32, i32) {
    %c0_i32 = arith.constant 0 : i32
    %c0_i32_0 = arith.constant 0 : i32
    %c0_i32_1 = arith.constant 0 : i32
    return %arg1, %c0_i32, %c0_i32_0 : i32, i32, i32
  }
  func.func @transform_2(%arg0: i32, %arg1: i32) -> (i32, i32, i32) {
    %c0_i32 = arith.constant 0 : i32
    %c0_i32_0 = arith.constant 0 : i32
    %c0_i32_1 = arith.constant 0 : i32
    return %arg1, %c0_i32, %c0_i32_0 : i32, i32, i32
  }
  func.func @transform_3(%arg0: i32, %arg1: i32) -> (i32, i32, i32) {
    %c0_i32 = arith.constant 0 : i32
    %c0_i32_0 = arith.constant 0 : i32
    %c0_i32_1 = arith.constant 0 : i32
    return %arg1, %c0_i32, %c0_i32_0 : i32, i32, i32
  }
  func.func @transform_4(%arg0: i32, %arg1: i32) -> (i32, i32, i32) {
    %c0_i32 = arith.constant 0 : i32
    %c0_i32_0 = arith.constant 0 : i32
    %c0_i32_1 = arith.constant 0 : i32
    return %arg1, %c0_i32, %c0_i32_0 : i32, i32, i32
  }
  func.func @transform_5(%arg0: i32, %arg1: i32) -> (i32, i32, i32) {
    %c0_i32 = arith.constant 0 : i32
    %c0_i32_0 = arith.constant 0 : i32
    %c0_i32_1 = arith.constant 0 : i32
    return %arg1, %c0_i32, %c0_i32_0 : i32, i32, i32
  }
  func.func @transform_6(%arg0: i32, %arg1: i32) -> (i32, i32, i32) {
    %c0_i32 = arith.constant 0 : i32
    %c0_i32_0 = arith.constant 0 : i32
    %c0_i32_1 = arith.constant 0 : i32
    return %arg1, %c0_i32, %c0_i32_0 : i32, i32, i32
  }
  func.func @transform_7(%arg0: i32, %arg1: i32) -> (i32, i32, i32) {
    %c0_i32 = arith.constant 0 : i32
    %c0_i32_0 = arith.constant 0 : i32
    %c0_i32_1 = arith.constant 0 : i32
    return %arg1, %c0_i32, %c0_i32_0 : i32, i32, i32
  }
  func.func @transform_8(%arg0: i32, %arg1: i32) -> (i32, i32, i32) {
    %c0_i32 = arith.constant 0 : i32
    %c0_i32_0 = arith.constant 0 : i32
    %c0_i32_1 = arith.constant 0 : i32
    return %arg1, %c0_i32, %c0_i32_0 : i32, i32, i32
  }
  func.func @transform_9(%arg0: i32, %arg1: i32) -> (i32, i32, i32) {
    %c0_i32 = arith.constant 0 : i32
    %c0_i32_0 = arith.constant 0 : i32
    %c0_i32_1 = arith.constant 0 : i32
    return %arg1, %c0_i32, %c0_i32_0 : i32, i32, i32
  }
  func.func @transform_10(%arg0: i32, %arg1: i32) -> (i32, i32, i32) {
    %c0_i32 = arith.constant 0 : i32
    %c0_i32_0 = arith.constant 0 : i32
    %c0_i32_1 = arith.constant 0 : i32
    return %arg1, %c0_i32, %c0_i32_0 : i32, i32, i32
  }
  func.func @transform_11(%arg0: i32, %arg1: i32) -> (i32, i32, i32) {
    %c0_i32 = arith.constant 0 : i32
    %c0_i32_0 = arith.constant 0 : i32
    %c0_i32_1 = arith.constant 0 : i32
    return %arg1, %c0_i32, %c0_i32_0 : i32, i32, i32
  }
  func.func @transform_12(%arg0: i32, %arg1: i32) -> (i32, i32, i32) {
    %c0_i32 = arith.constant 0 : i32
    %c0_i32_0 = arith.constant 0 : i32
    %c0_i32_1 = arith.constant 0 : i32
    return %arg1, %c0_i32, %c0_i32_0 : i32, i32, i32
  }
  func.func @transform_13(%arg0: i32, %arg1: i32) -> (i32, i32, i32) {
    %c0_i32 = arith.constant 0 : i32
    %c0_i32_0 = arith.constant 0 : i32
    %c0_i32_1 = arith.constant 0 : i32
    return %arg0, %c0_i32, %c0_i32_0 : i32, i32, i32
  }
}

</mosaic_0001>

<bundles_post_ra>
// kernel: tpu_custom_call.1
= control target key start
LH: loop header
LB: loop body
LE: loop exit
PB: predicated region body
PF: predicated region fallthrough
CT: control target
= control target key end

     0   :  { %s12395_s0 = inlined_call_operand.hbm [shape: f32[2,8,256], index: 0, kind: input, shape index: {}]   ;;  %s12396_s1 = inlined_call_operand.hbm [shape: bf16[2,256,768], index: 1, kind: input, shape index: {}]   ;;  %s12397_s2 = inlined_call_operand.hbm [shape: f32[2,1,768], index: 2, kind: input, shape index: {}]   ;;  %s12398_s3 = inlined_call_operand.hbm [shape: bf16[2,256,256], index: 3, kind: input, shape index: {}]   ;;  %s12399_s4 = inlined_call_operand.hbm [shape: f32[2,1,256], index: 4, kind: input, shape index: {}]   ;;  %s12400_s5 = inlined_call_operand.hbm [shape: f32[2,1,256], index: 5, kind: input, shape index: {}]   ;;  %s12401_s6 = inlined_call_operand.hbm [shape: f32[2,1,256], index: 6, kind: input, shape index: {}]   ;;  %s12402_s7 = inlined_call_operand.hbm [shape: bf16[2,256,2048], index: 7, kind: input, shape index: {}]   ;;  %s12403_s8 = inlined_call_operand.hbm [shape: f32[2,1,2048], index: 8, kind: input, shape index: {}]   ;;  %s12404_s9 = inlined_call_operand.hbm [shape: bf16[2,2048,256], index: 9, kind: input, shape index: {}]   ;;  %s12405_s10 = inlined_call_operand.hbm [shape: f32[2,1,256], index: 10, kind: input, shape index: {}]   ;;  %s12406_s11 = inlined_call_operand.hbm [shape: f32[2,1,256], index: 11, kind: input, shape index: {}]   ;;  %s12407_s12 = inlined_call_operand.hbm [shape: f32[2,1,256], index: 12, kind: input, shape index: {}]   ;;  %s12408_s13 = inlined_call_operand.hbm [shape: f32[2,8,256], index: 13, kind: output, shape index: {}]  }
   0x1   :  { %12442 = sst [smem:[#allocation47_spill]] %s12395_s0 }
   0x2   :  { %12443 = sst [smem:[#allocation48_spill]] %s12396_s1 }
   0x3   :  { %12444 = sst [smem:[#allocation49_spill]] %s12397_s2 }
   0x4   :  { %12445 = sst [smem:[#allocation50_spill]] %s12398_s3 }
   0x5   :  { %12446 = sst [smem:[#allocation51_spill]] %s12400_s5 }
   0x6   :  { %12447 = sst [smem:[#allocation52_spill]] %s12401_s6 }
   0x7   :  { %12448 = sst [smem:[#allocation53_spill]] %s12403_s8 }
   0x8   :  { %12449 = sst [smem:[#allocation54_spill]] %s12405_s10 }
   0x9   :  { %12450 = sst [smem:[#allocation55_spill]] %s12407_s12 }
   0xa   :  { %12451 = sst [smem:[#allocation56_spill]] %s12408_s13 }
   0xb   :  { %18 = vsyncpa [#allocation4], 0 }
   0xc   :  { %20 = vsyncpa [#allocation4 + $0x1], 0 }
   0xd   :  { %21 = vsyncpa [#allocation7], 0 }
   0xe   :  { %23 = vsyncpa [#allocation7 + $0x1], 0 }
   0xf   :  { %24 = vsyncpa [#allocation10], 0 }
  0x10   :  { %26 = vsyncpa [#allocation10 + $0x1], 0 }
  0x11   :  { %27 = vsyncpa [#allocation13], 0 }
  0x12   :  { %29 = vsyncpa [#allocation13 + $0x1], 0 }
  0x13   :  { %30 = vsyncpa [#allocation16], 0 }
  0x14   :  { %32 = vsyncpa [#allocation16 + $0x1], 0 }
  0x15   :  { %33 = vsyncpa [#allocation19], 0 }
  0x16   :  { %35 = vsyncpa [#allocation19 + $0x1], 0 }
  0x17   :  { %36 = vsyncpa [#allocation22], 0 }
  0x18   :  { %38 = vsyncpa [#allocation22 + $0x1], 0 }
  0x19   :  { %39 = vsyncpa [#allocation5], 0 }
  0x1a   :  { %41 = vsyncpa [#allocation5 + $0x1], 0  ;;  %s10525_s25 = smov 0   ;;  %s10527_s26 = smov 0  }
  0x1b   :  { %s10529_s27 = smov 0   ;;  %s10531_s28 = smov 0  }
  0x1c   :  { %s10533_s29 = smov 0   ;;  %s10535_s30 = smov 0  }
  0x1d   :  { %s10537_s14 = smov 0   ;;  %s10539_s15 = smov 0  }
  0x1e   :  { %s10541_s16 = smov 0   ;;  %s10543_s17 = smov 0  }
  0x1f   :  { %s10545_s18 = smov 0  }
  0x20 LB: > { %12452 = sst [smem:[#allocation33_spill]] %s10390_s26  ;;  %s10581_s19 = sadd.s32 4294967295, %s10426_s18   ;;  %s10426_s18 = sphi %s10545_s18, %s47_s18   ;;  %s10422_s17 = sphi %s10543_s17, %s12522_s17   ;;  %s10418_s16 = sphi %s10541_s16, %s12521_s16   ;;  %s10414_s15 = sphi %s10539_s15, %s12520_s15   ;;  %s10410_s14 = sphi %s10537_s14, %s12519_s14   ;;  %s10406_s30 = sphi %s10535_s30, %s12518_s30   ;;  %s10402_s29 = sphi %s10533_s29, %s12517_s29   ;;  %s10398_s28 = sphi %s10531_s28, %s12516_s28   ;;  %s10394_s27 = sphi %s10529_s27, %s12512_s27   ;;  %s10390_s26 = sphi %s10527_s26, %s12511_s26   ;;  %s10386_s25 = sphi %s10525_s25, %s12510_s25  }
  0x21   : > { %12453 = sst [smem:[#allocation34_spill]] %s10394_s27  ;;  %s8261_s20 = sadd.s32 4294967294, %s10426_s18  }
  0x22   : > { %12454 = sst [smem:[#allocation35_spill]] %s10398_s28  ;;  %s56_s21 = sadd.s32 1, %s10418_s16 }
  0x23   : > { %12455 = sst [smem:[#allocation36_spill]] %s10410_s14  ;;  %s59_s22 = sadd.s32 1, %s10422_s17 }
  0x24   : > { %12456 = sst [smem:[#allocation37_spill]] %s10414_s15  ;;  %p57_p0 = scmp.ge.s32.totalorder %s56_s21, 2 }
  0x25   : > { %12457 = sst [smem:[#allocation38_spill]] %s10581_s19  ;;  %s66_s23 = sadd.s32 1, %s10406_s30 }
  0x26   : > { %p73_p1 = scmp.ne.s32.totalorder %s10406_s30, %s10402_s29  ;;  %p74_p2 = scmp.eq.s32.totalorder %s10426_s18, 0 }
  0x27   : > { %s12524_s21 = smov (%p57_p0, %s56_s21), 0  ;;  %s12526_s22 = smov (!%p57_p0, %s59_s22), %s10422_s17 }
  0x28   : > { %12458 = sst [smem:[#allocation39_spill]] %s12524_s21  ;;  %p10598_p3 = por %p74_p2, %p73_p1 }
  0x29   : > { %p12415_p4 = scmp.ne.s32.totalorder %s10402_s29, %s10398_s28  ;;  %p61_p5 = scmp.ge.s32.totalorder %s12526_s22, 2 }
  0x2a   : > { %s12459_s24 = scalar_select %p10598_p3, 1, 0 }
  0x2b   : > { %p80_p6 = scmp.eq.s32.totalorder %s10581_s19, 0  ;;  %s89_s13 = ssub.s32 %s10418_s16, %s12524_s21 }
  0x2c   : > { %s92_s15 = sadd.s32 1, %s10394_s27  ;;  %s12528_s22 = smov (%p61_p5, %s12526_s22), 0 }
  0x2d   : > { %12460 = sst [smem:[#allocation40_spill]] %s12528_s22  ;;  %p10615_p7 = por %p80_p6, %p12415_p4 }
  0x2e   : > { %p90_p8 = scmp.eq.s32.totalorder %s89_s13, 0  ;;  %s63_s12 = ssub.s32 %s10422_s17, %s12528_s22 }
  0x2f   : > { %s12461_s14 = scalar_select %p10615_p7, 1, 0 }
  0x30   : > { %p99_p9 = scmp.ne.s32.totalorder %s10394_s27, %s10390_s26  ;;  %p64_p10 = scmp.eq.s32.totalorder %s63_s12, 0 }
  0x31   : > { %12462 = sst [smem:[#allocation41_spill]] %s12461_s14  ;;  %p105_p11 = scmp.ne.s32.totalorder %s10390_s26, %s10386_s25 }
  0x32   : > { %s10626_s10 = scalar_select %p90_p8, %s10394_s27, %s92_s15  }
  0x33   : > { %s10629_s21 = scalar_select %p64_p10, %s10406_s30, %s66_s23  }
  0x34   : > { %12463 = sst [smem:[#allocation42_spill]] %s10626_s10  ;;  %p10633_p12 = por %p99_p9, %p74_p2 }
  0x35   : > { %12464 = sst [smem:[#allocation43_spill]] %s10629_s21  ;;  %p10639_p13 = por %p105_p11, %p80_p6 }
  0x36   : > { %p415_p0 = scmp.eq.s32.totalorder %s10581_s19, 3  ;;  %p421_p5 = scmp.eq.s32.totalorder %s8261_s20, 3 }
  0x37   : > { %s12466_s6 = scalar_select %p10639_p13, 1, 0 }
  0x38   : > { %p10647_p4 = por %p415_p0, %p73_p1  ;;  %p12470_p8 = scmp.ne.s32.totalorder %s10402_s29, %s10398_s28 }
  0x39   : > { %12467 = sst [smem:[#allocation44_spill]] %s12466_s6  ;;  %p8263_p2 = scmp.ge.s32.totalorder %s10426_s18, 4 }
  0x3a   : > { %s12468_s12 = scalar_select %p10647_p4, 1, 0 }
  0x3b   : > { %p10654_p10 = por %p421_p5, %p12470_p8  ;;  %437 = sbr.rel (%p8263_p2) target bundleno = 413 (0x19d), region = 16 }
  0x3c   : > { %12469 = sst [smem:[#allocation45_spill]] %s12468_s12  ;;  %s10660_s25 = sand.u32 (!%p8263_p2), 1, %s10426_s18  }
  0x3d   : > { %s12471_s13 = scalar_select %p10654_p10, 1, 0 }
  0x3e   : > { %s10663_s15 = sand.u32 (!%p8263_p2), 1, %s10394_s27   ;;  %s9148_s23 = smul.u32 (!%p8263_p2), 12288, %s10418_s16 }
  0x3f   : > { %12472 = sst [smem:[#allocation46_spill]] %s12471_s13  ;;  %s9147_s20 = smul.u32 (!%p8263_p2), 768, %s10663_s15 }
  0x40   : > { %s12473_s1 = sld [smem:[#allocation48_spill]] (!%p8263_p2)  ;;  %s12432_s12 = scalar_lea.sflag (!%p8263_p2), [#allocation7], %s10660_s25 }
  0x41   : > { %s464_s13 = scalar_lea.vmem (!%p8263_p2), [#allocation6], %s9147_s20 }
  0x42   : > { %s471_s28 = sshll.u32 %s464_s13, 4  ;;  %s10672_s28 = int_to_ptr.vmem [resolvable:$true] %s471_s28 }
  0x46   : > { %s10670_s10 = scalar_lea.hbm %s12473_s1, %s9148_s23  ;;  %s9920_s21 = scalar_lea.hbm %s12473_s1, 24576 }
  0x47   : > { %s9916_s6 = scalar_lea.hbm %s10670_s10, 12288  ;;  %p9921_p11 = scmp.lt.u32.totalorder %s10670_s10, %s12473_s1 }
  0x48   : > { %p9917_p1 = scmp.ne.s32.totalorder %s10670_s10, %s9916_s6  ;;  %p9922_p0 = scmp.lt.u32.totalorder %s9920_s21, %s9916_s6 }
  0x49   : > { %p9924_p8 = scmp.lt.u32.totalorder %s9916_s6, %s10670_s10 }
  0x4a   : > { %p9918_p6 = pnand %p9917_p1, %p10633_p12  ;;  %p9923_p5 = por %p9922_p0, %p9921_p11 }
  0x4c   : > { %p9919_p9 = pneg %p9918_p6  ;;  %p9925_p2 = por %p9924_p8, %p9923_p5 }
  0x4e   : > { %p9926_p10 = pnand %p9925_p2, %p9919_p9 }
  0x50   : > { %9929 = shalt.err (!%p9926_p10)
}
  0x51   : > { %s9930_s13 = scalar_lea.vmem %s10672_s28, 12288  ;;  %s10428_s26 = smov [#allocation6]  }
  0x52   : > { %p9931_p1 = scmp.ne.s32.totalorder %s10672_s28, %s9930_s13  ;;  %s9934_s27 = sshll.u32 %s10428_s26, 4  ;;  %s9935_s27 = int_to_ptr.vmem [resolvable:$false] %s9934_s27 }
  0x53   : > { %s9936_s20 = scalar_lea.vmem %s9935_s27, 24576  ;;  %p9937_p13 = scmp.lt.s32.totalorder %s10672_s28, %s9935_s27 }
  0x54   : > { %p9932_p6 = pnand %p9931_p1, %p10633_p12  ;;  %p9938_p7 = scmp.lt.s32.totalorder %s9936_s20, %s9930_s13 }
  0x56   : > { %p9933_p4 = pneg %p9932_p6  ;;  %p9939_p11 = por %p9938_p7, %p9937_p13 }
  0x58   : > { %p9940_p0 = pnand %p9939_p11, %p9933_p4 }
  0x5a   : > { %9943 = shalt.err (!%p9940_p0)
}
  0x5b   : > { %s10429_s6 = smov 384   ;;  %s10430_s21 = smov 24  }
  0x5c   : > { %9154 = dma.hbm_to_vmem [thread:$0]  (%p10633_p12), %s10670_s10, 12288, %s10672_s28, %s12432_s12, %s10429_s6, %s10429_s6, %s10430_s21  }
  0x5d   : > { %s8269_s22 = sshll.u32 %s10663_s15, 8  ;;  %s9008_s23 = sshll.u32 %s10418_s16, 12 }
  0x5e   : > { %s12474_s3 = sld [smem:[#allocation50_spill]]  ;;  %s504_s20 = scalar_lea.vmem [#allocation9], %s8269_s22 }
  0x5f   : > { %s511_s1 = sshll.u32 %s504_s20, 4  ;;  %s12431_s19 = scalar_lea.sflag [#allocation10], %s10660_s25  ;;  %s10705_s1 = int_to_ptr.vmem [resolvable:$true] %s511_s1 }
  0x64   : > { %s10703_s27 = scalar_lea.hbm %s12474_s3, %s9008_s23  ;;  %s9948_s6 = scalar_lea.hbm %s12474_s3, 8192 }
  0x65   : > { %s9944_s14 = scalar_lea.hbm %s10703_s27, 4096  ;;  %p9949_p10 = scmp.lt.u32.totalorder %s10703_s27, %s12474_s3 }
  0x66   : > { %p9945_p4 = scmp.ne.s32.totalorder %s10703_s27, %s9944_s14  ;;  %p9950_p9 = scmp.lt.u32.totalorder %s9948_s6, %s9944_s14 }
  0x67   : > { %p9952_p8 = scmp.lt.u32.totalorder %s9944_s14, %s10703_s27 }
  0x68   : > { %p9946_p7 = pnand %p9945_p4, %p10633_p12  ;;  %p9951_p5 = por %p9950_p9, %p9949_p10 }
  0x6a   : > { %p9947_p13 = pneg %p9946_p7  ;;  %p9953_p2 = por %p9952_p8, %p9951_p5 }
  0x6c   : > { %p9954_p1 = pnand %p9953_p2, %p9947_p13 }
  0x6e   : > { %9957 = shalt.err (!%p9954_p1)
}
  0x6f   : > { %s9958_s22 = scalar_lea.vmem %s10705_s1, 4096  ;;  %s10431_s26 = smov [#allocation9]  }
  0x70   : > { %p9959_p6 = scmp.ne.s32.totalorder %s10705_s1, %s9958_s22  ;;  %s9962_s13 = sshll.u32 %s10431_s26, 4  ;;  %s9963_s13 = int_to_ptr.vmem [resolvable:$false] %s9962_s13 }
  0x71   : > { %s9964_s20 = scalar_lea.vmem %s9963_s13, 8192  ;;  %p9965_p4 = scmp.lt.s32.totalorder %s10705_s1, %s9963_s13 }
  0x72   : > { %p9960_p11 = pnand %p9959_p6, %p10633_p12  ;;  %p9966_p7 = scmp.lt.s32.totalorder %s9964_s20, %s9958_s22 }
  0x74   : > { %p9961_p0 = pneg %p9960_p11  ;;  %p9967_p10 = por %p9966_p7, %p9965_p4 }
  0x76   : > { %p9968_p9 = pnand %p9967_p10, %p9961_p0 }
  0x78   : > { %9971 = shalt.err (!%p9968_p9)
}
  0x79   : > { %s12433_s14 = smov 128   ;;  %s12434_s10 = smov 8  }
  0x7a   : > { %9156 = dma.hbm_to_vmem [thread:$0]  (%p10633_p12), %s10703_s27, 4096, %s10705_s1, %s12431_s19, %s12433_s14, %s12433_s14, %s12434_s10  }
  0x7b   : > { %s10735_s28 = sshll.u32 %s10663_s15, 1  ;;  %s10738_s6 = sshll.u32 %s10418_s16, 5 }
  0x7c   : > { %s12475_s5 = sld [smem:[#allocation51_spill]]  ;;  %s544_s26 = scalar_lea.vmem [#allocation12], %s10735_s28 }
  0x7d   : > { %s552_s13 = sshll.u32 %s544_s26, 4  ;;  %s12436_s20 = scalar_lea.sflag [#allocation13], %s10660_s25  ;;  %s553_s13 = int_to_ptr.vmem [resolvable:$true] %s552_s13 }
  0x82   : > { %s10744_s22 = scalar_lea.hbm %s12475_s5, %s10738_s6  ;;  %s9976_s12 = scalar_lea.hbm %s12475_s5, 64 }
  0x83   : > { %s9972_s1 = scalar_lea.hbm %s10744_s22, 32  ;;  %p9977_p2 = scmp.lt.u32.totalorder %s10744_s22, %s12475_s5 }
  0x84   : > { %p9973_p13 = scmp.ne.s32.totalorder %s10744_s22, %s9972_s1  ;;  %p9978_p1 = scmp.lt.u32.totalorder %s9976_s12, %s9972_s1 }
  0x85   : > { %p9980_p11 = scmp.lt.u32.totalorder %s9972_s1, %s10744_s22 }
  0x86   : > { %p9974_p5 = pnand %p9973_p13, %p10633_p12  ;;  %p9979_p6 = por %p9978_p1, %p9977_p2 }
  0x88   : > { %p9975_p8 = pneg %p9974_p5  ;;  %p9981_p0 = por %p9980_p11, %p9979_p6 }
  0x8a   : > { %p9982_p4 = pnand %p9981_p0, %p9975_p8 }
  0x8c   : > { %9985 = shalt.err (!%p9982_p4)
}
  0x8d   : > { %s9986_s26 = scalar_lea.vmem %s553_s13, 32  ;;  %s10434_s14 = smov [#allocation12]  }
  0x8e   : > { %p9987_p7 = scmp.ne.s32.totalorder %s553_s13, %s9986_s26  ;;  %s9990_s10 = sshll.u32 %s10434_s14, 4  ;;  %s9991_s10 = int_to_ptr.vmem [resolvable:$false] %s9990_s10 }
  0x8f   : > { %s9992_s19 = scalar_lea.vmem %s9991_s10, 64  ;;  %p9993_p13 = scmp.lt.s32.totalorder %s553_s13, %s9991_s10 }
  0x90   : > { %p9988_p10 = pnand %p9987_p7, %p10633_p12  ;;  %p9994_p5 = scmp.lt.s32.totalorder %s9992_s19, %s9986_s26 }
  0x92   : > { %p9989_p9 = pneg %p9988_p10  ;;  %p9995_p3 = por %p9994_p5, %p9993_p13 }
  0x94   : > { %p9996_p1 = pnand %p9995_p3, %p9989_p9 }
  0x96   : > { %9999 = shalt.err (!%p9996_p1)
}
  0x97   : > { %9158 = dma.hbm_to_vmem [thread:$0]  (%p10633_p12), %s10744_s22, 32, %s553_s13, %s12436_s20  }
  0x98   : > { %s8281_s12 = sshll.u32 %s10663_s15, 11  ;;  %s9012_s14 = sshll.u32 %s10418_s16, 15 }
  0x99   : > { %s10774_s27 = scalar_lea.hbm %s12402_s7, %s9012_s14  ;;  %s582_s21 = scalar_lea.vmem [#allocation15], %s8281_s12 }
  0x9a   : > { %s589_s23 = sshll.u32 %s582_s21, 4  ;;  %s12439_s26 = scalar_lea.sflag [#allocation16], %s10660_s25  ;;  %s10778_s23 = int_to_ptr.vmem [resolvable:$true] %s589_s23 }
  0x9b   : > { %s10000_s19 = scalar_lea.hbm %s10774_s27, 32768  ;;  %s10004_s10 = scalar_lea.hbm %s12402_s7, 65536 }
  0x9c   : > { %p10001_p3 = scmp.ne.s32.totalorder %s10774_s27, %s10000_s19  ;;  %p10005_p6 = scmp.lt.u32.totalorder %s10774_s27, %s12402_s7 }
  0x9d   : > { %p10006_p11 = scmp.lt.u32.totalorder %s10004_s10, %s10000_s19  ;;  %p10008_p4 = scmp.lt.u32.totalorder %s10000_s19, %s10774_s27 }
  0x9e   : > { %p10002_p8 = pnand %p10001_p3, %p10633_p12 }
  0x9f   : > { %p10007_p0 = por %p10006_p11, %p10005_p6 }
  0xa0   : > { %p10003_p2 = pneg %p10002_p8 }
  0xa1   : > { %p10009_p7 = por %p10008_p4, %p10007_p0 }
  0xa3   : > { %p10010_p10 = pnand %p10009_p7, %p10003_p2 }
  0xa5   : > { %10013 = shalt.err (!%p10010_p10)
}
  0xa6   : > { %s10014_s21 = scalar_lea.vmem %s10778_s23, 32768  ;;  %s10435_s22 = smov [#allocation15]  }
  0xa7   : > { %p10015_p9 = scmp.ne.s32.totalorder %s10778_s23, %s10014_s21  ;;  %s10018_s13 = sshll.u32 %s10435_s22, 4  ;;  %s10019_s13 = int_to_ptr.vmem [resolvable:$false] %s10018_s13 }
  0xa8   : > { %s10020_s20 = scalar_lea.vmem %s10019_s13, 65536  ;;  %p10021_p1 = scmp.lt.s32.totalorder %s10778_s23, %s10019_s13 }
  0xa9   : > { %p10016_p13 = pnand %p10015_p9, %p10633_p12  ;;  %p10022_p3 = scmp.lt.s32.totalorder %s10020_s20, %s10014_s21 }
  0xab   : > { %p10017_p5 = pneg %p10016_p13  ;;  %p10023_p8 = por %p10022_p3, %p10021_p1 }
  0xad   : > { %p10024_p6 = pnand %p10023_p8, %p10017_p5 }
  0xaf   : > { %10027 = shalt.err (!%p10024_p6)
}
  0xb0   : > { %s10436_s19 = smov 1024   ;;  %s10437_s10 = smov 64  }
  0xb1   : > { %9160 = dma.hbm_to_vmem [thread:$0]  (%p10633_p12), %s10774_s27, 32768, %s10778_s23, %s12439_s26, %s10436_s19, %s10436_s19, %s10437_s10  }
  0xb2   : > { %s10809_s21 = scalar_lea.hbm %s12404_s9, %s9012_s14  ;;  %s622_s13 = scalar_lea.vmem [#allocation18], %s8281_s12 }
  0xb3   : > { %s629_s20 = sshll.u32 %s622_s13, 4  ;;  %s12437_s3 = scalar_lea.sflag [#allocation19], %s10660_s25  ;;  %s10813_s20 = int_to_ptr.vmem [resolvable:$true] %s629_s20 }
  0xb4   : > { %s10028_s5 = scalar_lea.hbm %s10809_s21, 32768  ;;  %s10032_s14 = scalar_lea.hbm %s12404_s9, 65536 }
  0xb5   : > { %p10029_p2 = scmp.ne.s32.totalorder %s10809_s21, %s10028_s5  ;;  %p10033_p4 = scmp.lt.u32.totalorder %s10809_s21, %s12404_s9 }
  0xb6   : > { %p10034_p7 = scmp.lt.u32.totalorder %s10032_s14, %s10028_s5  ;;  %p10036_p9 = scmp.lt.u32.totalorder %s10028_s5, %s10809_s21 }
  0xb7   : > { %p10030_p11 = pnand %p10029_p2, %p10633_p12 }
  0xb8   : > { %p10035_p10 = por %p10034_p7, %p10033_p4 }
  0xb9   : > { %p10031_p0 = pneg %p10030_p11 }
  0xba   : > { %p10037_p13 = por %p10036_p9, %p10035_p10 }
  0xbc   : > { %p10038_p5 = pnand %p10037_p13, %p10031_p0 }
  0xbe   : > { %10041 = shalt.err (!%p10038_p5)
}
  0xbf   : > { %s10042_s12 = scalar_lea.vmem %s10813_s20, 32768  ;;  %s10438_s1 = smov [#allocation18]  }
  0xc0   : > { %p10043_p1 = scmp.ne.s32.totalorder %s10813_s20, %s10042_s12  ;;  %s10046_s22 = sshll.u32 %s10438_s1, 4  ;;  %s10047_s22 = int_to_ptr.vmem [resolvable:$false] %s10046_s22 }
  0xc1   : > { %s10048_s13 = scalar_lea.vmem %s10047_s22, 65536  ;;  %p10049_p6 = scmp.lt.s32.totalorder %s10813_s20, %s10047_s22 }
  0xc2   : > { %p10044_p3 = pnand %p10043_p1, %p10633_p12  ;;  %p10050_p2 = scmp.lt.s32.totalorder %s10048_s13, %s10042_s12 }
  0xc4   : > { %p10045_p8 = pneg %p10044_p3  ;;  %p10051_p11 = por %p10050_p2, %p10049_p6 }
  0xc6   : > { %p10052_p4 = pnand %p10051_p11, %p10045_p8 }
  0xc8   : > { %10055 = shalt.err (!%p10052_p4)
}
  0xc9   : > { %s12476_s5 = smov 8   ;;  %s12477_s27 = smov 128  }
  0xca   : > { %9162 = dma.hbm_to_vmem [thread:$0]  (%p10633_p12), %s10809_s21, 32768, %s10813_s20, %s12437_s3, %s12477_s27, %s12477_s27, %s12476_s5  }
  0xcb   : > { %s10846_s19 = scalar_lea.hbm %s12406_s11, %s10738_s6  ;;  %s662_s10 = scalar_lea.vmem [#allocation21], %s10735_s28 }
  0xcc   : > { %s670_s12 = sshll.u32 %s662_s10, 4  ;;  %s441_s1 = sand.u32 1, %s10406_s30   ;;  %s671_s12 = int_to_ptr.vmem [resolvable:$true] %s670_s12 }
  0xcd   : > { %s12438_s22 = scalar_lea.sflag [#allocation22], %s10660_s25  ;;  %s10056_s13 = scalar_lea.hbm %s10846_s19, 32 }
  0xce   : > { %p10057_p0 = scmp.ne.s32.totalorder %s10846_s19, %s10056_s13  ;;  %s10060_s5 = scalar_lea.hbm %s12406_s11, 64 }
  0xcf   : > { %p10061_p9 = scmp.lt.u32.totalorder %s10846_s19, %s12406_s11  ;;  %p10062_p13 = scmp.lt.u32.totalorder %s10060_s5, %s10056_s13 }
  0xd0   : > { %p10058_p7 = pnand %p10057_p0, %p10633_p12  ;;  %p10064_p1 = scmp.lt.u32.totalorder %s10056_s13, %s10846_s19 }
  0xd1   : > { %p10063_p5 = por %p10062_p13, %p10061_p9 }
  0xd2   : > { %p10059_p10 = pneg %p10058_p7 }
  0xd3   : > { %p10065_p3 = por %p10064_p1, %p10063_p5 }
  0xd5   : > { %p10066_p8 = pnand %p10065_p3, %p10059_p10 }
  0xd7   : > { %10069 = shalt.err (!%p10066_p8)
}
  0xd8   : > { %s10070_s14 = scalar_lea.vmem %s671_s12, 32  ;;  %s10439_s10 = smov [#allocation21]  }
  0xd9   : > { %p10071_p6 = scmp.ne.s32.totalorder %s671_s12, %s10070_s14  ;;  %s10074_s3 = sshll.u32 %s10439_s10, 4  ;;  %s10075_s3 = int_to_ptr.vmem [resolvable:$false] %s10074_s3 }
  0xda   : > { %s10076_s21 = scalar_lea.vmem %s10075_s3, 64  ;;  %p10077_p4 = scmp.lt.s32.totalorder %s671_s12, %s10075_s3 }
  0xdb   : > { %p10072_p2 = pnand %p10071_p6, %p10633_p12  ;;  %p10078_p0 = scmp.lt.s32.totalorder %s10076_s21, %s10070_s14 }
  0xdd   : > { %p10073_p11 = pneg %p10072_p2  ;;  %p10079_p7 = por %p10078_p0, %p10077_p4 }
  0xdf   : > { %p10080_p9 = pnand %p10079_p7, %p10073_p11 }
  0xe1   : > { %10083 = shalt.err (!%p10080_p9)
}
  0xe2   : > { %9164 = dma.hbm_to_vmem [thread:$0]  (%p10633_p12), %s10846_s19, 32, %s671_s12, %s12438_s22  }
  0xe3   : > { %s8264_s13 = sshll.u32 %s441_s1, 4  ;;  %s9007_s20 = sshll.u32 %s10422_s17, 8 }
  0xe4   : > { %s12478_s0 = sld [smem:[#allocation47_spill]]  ;;  %s445_s23 = scalar_lea.vmem [#allocation3], %s8264_s13 }
  0xe5   : > { %s453_s14 = sshll.u32 %s445_s23, 4  ;;  %s9149_s10 = smul.u32 6, %s10663_s15  ;;  %s10879_s14 = int_to_ptr.vmem [resolvable:$true] %s453_s14 }
  0xe6   : > { %s9150_s21 = smul.u32 96, %s10418_s16  ;;  %s442_s19 = scalar_lea.sflag [#allocation4], %s441_s1 }
  0xe7   : > { %p12479_p13 = scmp.ne.s32.totalorder %s12459_s24, 0 }
  0xea   : > { %s10876_s27 = scalar_lea.hbm %s12478_s0, %s9007_s20  ;;  %s10088_s5 = scalar_lea.hbm %s12478_s0, 512 }
  0xeb   : > { %s10084_s12 = scalar_lea.hbm %s10876_s27, 256  ;;  %p10089_p3 = scmp.lt.u32.totalorder %s10876_s27, %s12478_s0 }
  0xec   : > { %p10085_p10 = scmp.ne.s32.totalorder %s10876_s27, %s10084_s12  ;;  %p10090_p8 = scmp.lt.u32.totalorder %s10088_s5, %s10084_s12 }
  0xed   : > { %p10092_p2 = scmp.lt.u32.totalorder %s10084_s12, %s10876_s27 }
  0xee   : > { %p10086_p5 = pnand %p10085_p10, %p12479_p13  ;;  %p10091_p6 = por %p10090_p8, %p10089_p3 }
  0xf0   : > { %p10087_p1 = pneg %p10086_p5  ;;  %p10093_p11 = por %p10092_p2, %p10091_p6 }
  0xf2   : > { %p10094_p4 = pnand %p10093_p11, %p10087_p1 }
  0xf4   : > { %10097 = shalt.err (!%p10094_p4)
}
  0xf5   : > { %s10098_s1 = scalar_lea.vmem %s10879_s14, 256  ;;  %s10440_s13 = smov [#allocation3]  }
  0xf6   : > { %p10099_p0 = scmp.ne.s32.totalorder %s10879_s14, %s10098_s1  ;;  %s10102_s23 = sshll.u32 %s10440_s13, 4  ;;  %s10103_s23 = int_to_ptr.vmem [resolvable:$false] %s10102_s23 }
  0xf7   : > { %s10104_s26 = scalar_lea.vmem %s10103_s23, 512  ;;  %p10105_p10 = scmp.lt.s32.totalorder %s10879_s14, %s10103_s23 }
  0xf8   : > { %p10100_p7 = pnand %p10099_p0, %p12479_p13  ;;  %p10106_p5 = scmp.lt.s32.totalorder %s10104_s26, %s10098_s1 }
  0xfa   : > { %p10101_p9 = pneg %p10100_p7  ;;  %p10107_p3 = por %p10106_p5, %p10105_p10 }
  0xfc   : > { %p10108_p8 = pnand %p10107_p3, %p10101_p9 }
  0xfe   : > { %10111 = shalt.err (!%p10108_p8)
}
  0xff   : > { %9153 = dma.hbm_to_vmem [thread:$0]  (%p12479_p13), %s10876_s27, 256, %s10879_s14, %s442_s19  }
 0x100   : > { %s12480_s2 = sld [smem:[#allocation49_spill]]  ;;  %s485_s20 = scalar_lea.vmem [#allocation8], %s9149_s10 }
 0x101   : > { %s493_s24 = sshll.u32 %s485_s20, 4  ;;  %s10918_s13 = scalar_lea.hbm %s12399_s4, %s10738_s6  ;;  %s494_s24 = int_to_ptr.vmem [resolvable:$true] %s493_s24 }
 0x106   : > { %s10910_s3 = scalar_lea.hbm %s12480_s2, %s9150_s21  ;;  %s10116_s19 = scalar_lea.hbm %s12480_s2, 192 }
 0x107   : > { %s10112_s27 = scalar_lea.hbm %s10910_s3, 96  ;;  %p10117_p2 = scmp.lt.u32.totalorder %s10910_s3, %s12480_s2 }
 0x108   : > { %p10113_p13 = scmp.ne.s32.totalorder %s10910_s3, %s10112_s27  ;;  %p10118_p11 = scmp.lt.u32.totalorder %s10116_s19, %s10112_s27 }
 0x109   : > { %p10120_p0 = scmp.lt.u32.totalorder %s10112_s27, %s10910_s3 }
 0x10a   : > { %p10114_p1 = pnand %p10113_p13, %p10633_p12  ;;  %p10119_p4 = por %p10118_p11, %p10117_p2 }
 0x10c   : > { %p10115_p6 = pneg %p10114_p1  ;;  %p10121_p7 = por %p10120_p0, %p10119_p4 }
 0x10e   : > { %p10122_p9 = pnand %p10121_p7, %p10115_p6 }
 0x110   : > { %10125 = shalt.err (!%p10122_p9)
}
 0x111   : > { %s10126_s10 = scalar_lea.vmem %s494_s24, 96  ;;  %s10441_s22 = smov [#allocation8]  }
 0x112   : > { %p10127_p10 = scmp.ne.s32.totalorder %s494_s24, %s10126_s10  ;;  %s10130_s12 = sshll.u32 %s10441_s22, 4  ;;  %s10131_s12 = int_to_ptr.vmem [resolvable:$false] %s10130_s12 }
 0x113   : > { %s10132_s20 = scalar_lea.vmem %s10131_s12, 192  ;;  %p10133_p8 = scmp.lt.s32.totalorder %s494_s24, %s10131_s12 }
 0x114   : > { %p10128_p5 = pnand %p10127_p10, %p10633_p12  ;;  %p10134_p13 = scmp.lt.s32.totalorder %s10132_s20, %s10126_s10 }
 0x116   : > { %p10129_p3 = pneg %p10128_p5  ;;  %p10135_p1 = por %p10134_p13, %p10133_p8 }
 0x118   : > { %p10136_p2 = pnand %p10135_p1, %p10129_p3 }
 0x11a   : > { %10139 = shalt.err (!%p10136_p2)
}
 0x11b   : > { %s12481_s5 = scalar_lea.sflag [#allocation7], %s10660_s25  ;;  %s525_s1 = scalar_lea.vmem [#allocation11], %s10735_s28 }
 0x11c   : > { %9155 = dma.hbm_to_vmem [thread:$0]  (%p10633_p12), %s10910_s3, 96, %s494_s24, %s12481_s5  }
 0x11d   : > { %s533_s27 = sshll.u32 %s525_s1, 4  ;;  %s12482_s19 = sld [smem:[#allocation52_spill]]  ;;  %s534_s27 = int_to_ptr.vmem [resolvable:$true] %s533_s27 }
 0x11e   : > { %s10140_s26 = scalar_lea.hbm %s10918_s13, 32  ;;  %s10144_s12 = scalar_lea.hbm %s12399_s4, 64 }
 0x11f   : > { %p10141_p6 = scmp.ne.s32.totalorder %s10918_s13, %s10140_s26  ;;  %p10145_p0 = scmp.lt.u32.totalorder %s10918_s13, %s12399_s4 }
 0x120   : > { %p10146_p7 = scmp.lt.u32.totalorder %s10144_s12, %s10140_s26  ;;  %p10148_p10 = scmp.lt.u32.totalorder %s10140_s26, %s10918_s13 }
 0x121   : > { %p10142_p11 = pnand %p10141_p6, %p10633_p12 }
 0x122   : > { %p10147_p9 = por %p10146_p7, %p10145_p0 }
 0x123   : > { %s10944_s23 = scalar_lea.hbm %s12482_s19, %s10738_s6  ;;  %p10143_p4 = pneg %p10142_p11 }
 0x124   : > { %p10149_p5 = por %p10148_p10, %p10147_p9 }
 0x126   : > { %p10150_p3 = pnand %p10149_p5, %p10143_p4 }
 0x128   : > { %10153 = shalt.err (!%p10150_p3)
}
 0x129   : > { %s10154_s3 = scalar_lea.vmem %s534_s27, 32  ;;  %s10442_s24 = smov [#allocation11]  }
 0x12a   : > { %p10155_p8 = scmp.ne.s32.totalorder %s534_s27, %s10154_s3  ;;  %s10158_s5 = sshll.u32 %s10442_s24, 4  ;;  %s10159_s5 = int_to_ptr.vmem [resolvable:$false] %s10158_s5 }
 0x12b   : > { %s10160_s1 = scalar_lea.vmem %s10159_s5, 64  ;;  %p10161_p2 = scmp.lt.s32.totalorder %s534_s27, %s10159_s5 }
 0x12c   : > { %p10156_p13 = pnand %p10155_p8, %p10633_p12  ;;  %p10162_p6 = scmp.lt.s32.totalorder %s10160_s1, %s10154_s3 }
 0x12e   : > { %p10157_p1 = pneg %p10156_p13  ;;  %p10163_p11 = por %p10162_p6, %p10161_p2 }
 0x130   : > { %p10164_p0 = pnand %p10163_p11, %p10157_p1 }
 0x132   : > { %10167 = shalt.err (!%p10164_p0)
}
 0x133   : > { %s12483_s0 = scalar_lea.sflag [#allocation10], %s10660_s25  ;;  %s563_s14 = scalar_lea.vmem [#allocation14], %s10735_s28 }
 0x134   : > { %9157 = dma.hbm_to_vmem [thread:$0]  (%p10633_p12), %s10918_s13, 32, %s534_s27, %s12483_s0  }
 0x135   : > { %s571_s21 = sshll.u32 %s563_s14, 4  ;;  %s8284_s26 = sshll.u32 %s10663_s15, 4  ;;  %s572_s21 = int_to_ptr.vmem [resolvable:$true] %s571_s21 }
 0x136   : > { %s10168_s10 = scalar_lea.hbm %s10944_s23, 32  ;;  %s10172_s20 = scalar_lea.hbm %s12482_s19, 64 }
 0x137   : > { %p10169_p4 = scmp.ne.s32.totalorder %s10944_s23, %s10168_s10  ;;  %p10173_p10 = scmp.lt.u32.totalorder %s10944_s23, %s12482_s19 }
 0x138   : > { %p10174_p5 = scmp.lt.u32.totalorder %s10172_s20, %s10168_s10  ;;  %p10176_p8 = scmp.lt.u32.totalorder %s10168_s10, %s10944_s23 }
 0x139   : > { %p10170_p7 = pnand %p10169_p4, %p10633_p12 }
 0x13a   : > { %p10175_p3 = por %p10174_p5, %p10173_p10 }
 0x13b   : > { %p10171_p9 = pneg %p10170_p7 }
 0x13c   : > { %p10177_p13 = por %p10176_p8, %p10175_p3 }
 0x13e   : > { %p10178_p1 = pnand %p10177_p13, %p10171_p9 }
 0x140   : > { %10181 = shalt.err (!%p10178_p1)
}
 0x141   : > { %s10182_s13 = scalar_lea.vmem %s572_s21, 32  ;;  %s10443_s27 = smov [#allocation14]  }
 0x142   : > { %p10183_p2 = scmp.ne.s32.totalorder %s572_s21, %s10182_s13  ;;  %s10186_s5 = sshll.u32 %s10443_s27, 4  ;;  %s10187_s5 = int_to_ptr.vmem [resolvable:$false] %s10186_s5 }
 0x143   : > { %s10188_s1 = scalar_lea.vmem %s10187_s5, 64  ;;  %p10189_p0 = scmp.lt.s32.totalorder %s572_s21, %s10187_s5 }
 0x144   : > { %p10184_p6 = pnand %p10183_p2, %p10633_p12  ;;  %p10190_p4 = scmp.lt.s32.totalorder %s10188_s1, %s10182_s13 }
 0x146   : > { %p10185_p11 = pneg %p10184_p6  ;;  %p10191_p7 = por %p10190_p4, %p10189_p0 }
 0x148   : > { %p10192_p5 = pnand %p10191_p7, %p10185_p11 }
 0x14a   : > { %10195 = shalt.err (!%p10192_p5)
}
 0x14b   : > { %s12484_s0 = scalar_lea.sflag [#allocation13], %s10660_s25  ;;  %s9013_s14 = sshll.u32 %s10418_s16, 8 }
 0x14c   : > { %9159 = dma.hbm_to_vmem [thread:$0]  (%p10633_p12), %s10944_s23, 32, %s572_s21, %s12484_s0  }
 0x14d   : > { %s603_s10 = scalar_lea.vmem [#allocation17], %s8284_s26  ;;  %s12485_s3 = sld [smem:[#allocation53_spill]] }
 0x14e   : > { %s611_s22 = sshll.u32 %s603_s10, 4  ;;  %s612_s22 = int_to_ptr.vmem [resolvable:$true] %s611_s22 }
 0x153   : > { %s609_s24 = scalar_lea.hbm %s12485_s3, %s9013_s14  ;;  %s10200_s1 = scalar_lea.hbm %s12485_s3, 512 }
 0x154   : > { %s10196_s13 = scalar_lea.hbm %s609_s24, 256  ;;  %p10201_p8 = scmp.lt.u32.totalorder %s609_s24, %s12485_s3 }
 0x155   : > { %p10197_p9 = scmp.ne.s32.totalorder %s609_s24, %s10196_s13  ;;  %p10202_p13 = scmp.lt.u32.totalorder %s10200_s1, %s10196_s13 }
 0x156   : > { %p10204_p2 = scmp.lt.u32.totalorder %s10196_s13, %s609_s24 }
 0x157   : > { %p10198_p10 = pnand %p10197_p9, %p10633_p12  ;;  %p10203_p1 = por %p10202_p13, %p10201_p8 }
 0x159   : > { %p10199_p3 = pneg %p10198_p10  ;;  %p10205_p6 = por %p10204_p2, %p10203_p1 }
 0x15b   : > { %p10206_p11 = pnand %p10205_p6, %p10199_p3 }
 0x15d   : > { %10209 = shalt.err (!%p10206_p11)
}
 0x15e   : > { %s10210_s15 = scalar_lea.vmem %s612_s22, 256  ;;  %s10444_s21 = smov [#allocation17]  }
 0x15f   : > { %p10211_p0 = scmp.ne.s32.totalorder %s612_s22, %s10210_s15  ;;  %s10214_s26 = sshll.u32 %s10444_s21, 4  ;;  %s10215_s26 = int_to_ptr.vmem [resolvable:$false] %s10214_s26 }
 0x160   : > { %s10216_s0 = scalar_lea.vmem %s10215_s26, 512  ;;  %p10217_p5 = scmp.lt.s32.totalorder %s612_s22, %s10215_s26 }
 0x161   : > { %p10212_p4 = pnand %p10211_p0, %p10633_p12  ;;  %p10218_p9 = scmp.lt.s32.totalorder %s10216_s0, %s10210_s15 }
 0x163   : > { %p10213_p7 = pneg %p10212_p4  ;;  %p10219_p10 = por %p10218_p9, %p10217_p5 }
 0x165   : > { %p10220_p8 = pnand %p10219_p10, %p10213_p7 }
 0x167   : > { %10223 = shalt.err (!%p10220_p8)
}
 0x168   : > { %s12486_s2 = scalar_lea.sflag [#allocation16], %s10660_s25  ;;  %s12487_s12 = sld [smem:[#allocation54_spill]] }
 0x169   : > { %9161 = dma.hbm_to_vmem [thread:$0]  (%p10633_p12), %s609_s24, 256, %s612_s22, %s12486_s2  }
 0x16a   : > { %s643_s13 = scalar_lea.vmem [#allocation20], %s10735_s28  ;;  %s12488_s23 = sld [smem:[#allocation55_spill]] }
 0x16b   : > { %s651_s27 = sshll.u32 %s643_s13, 4  ;;  %s652_s27 = int_to_ptr.vmem [resolvable:$true] %s651_s27 }
 0x16e   : > { %s11010_s20 = scalar_lea.hbm %s12487_s12, %s10738_s6  ;;  %s10228_s26 = scalar_lea.hbm %s12487_s12, 64 }
 0x16f   : > { %s10224_s21 = scalar_lea.hbm %s11010_s20, 32  ;;  %p10229_p2 = scmp.lt.u32.totalorder %s11010_s20, %s12487_s12 }
 0x170   : > { %s11017_s15 = scalar_lea.hbm %s12488_s23, %s10738_s6  ;;  %p10225_p3 = scmp.ne.s32.totalorder %s11010_s20, %s10224_s21 }
 0x171   : > { %p10230_p6 = scmp.lt.u32.totalorder %s10228_s26, %s10224_s21  ;;  %p10232_p0 = scmp.lt.u32.totalorder %s10224_s21, %s11010_s20 }
 0x172   : > { %p10226_p13 = pnand %p10225_p3, %p10633_p12 }
 0x173   : > { %p10231_p11 = por %p10230_p6, %p10229_p2 }
 0x174   : > { %p10227_p1 = pneg %p10226_p13 }
 0x175   : > { %p10233_p4 = por %p10232_p0, %p10231_p11 }
 0x177   : > { %p10234_p7 = pnand %p10233_p4, %p10227_p1 }
 0x179   : > { %10237 = shalt.err (!%p10234_p7)
}
 0x17a   : > { %s10238_s6 = scalar_lea.vmem %s652_s27, 32  ;;  %s10445_s14 = smov [#allocation20]  }
 0x17b   : > { %p10239_p5 = scmp.ne.s32.totalorder %s652_s27, %s10238_s6  ;;  %s10242_s10 = sshll.u32 %s10445_s14, 4  ;;  %s10243_s10 = int_to_ptr.vmem [resolvable:$false] %s10242_s10 }
 0x17c   : > { %s10244_s13 = scalar_lea.vmem %s10243_s10, 64  ;;  %p10245_p8 = scmp.lt.s32.totalorder %s652_s27, %s10243_s10 }
 0x17d   : > { %p10240_p9 = pnand %p10239_p5, %p10633_p12  ;;  %p10246_p3 = scmp.lt.s32.totalorder %s10244_s13, %s10238_s6 }
 0x17f   : > { %p10241_p10 = pneg %p10240_p9  ;;  %p10247_p13 = por %p10246_p3, %p10245_p8 }
 0x181   : > { %p10248_p2 = pnand %p10247_p13, %p10241_p10 }
 0x183   : > { %10251 = shalt.err (!%p10248_p2)
}
 0x184   : > { %s12489_s5 = scalar_lea.sflag [#allocation19], %s10660_s25  ;;  %s681_s1 = scalar_lea.vmem [#allocation23], %s10735_s28 }
 0x185   : > { %9163 = dma.hbm_to_vmem [thread:$0]  (%p10633_p12), %s11010_s20, 32, %s652_s27, %s12489_s5  }
 0x186   : > { %s689_s21 = sshll.u32 %s681_s1, 4  ;;  %s10252_s22 = scalar_lea.hbm %s11017_s15, 32  ;;  %s690_s21 = int_to_ptr.vmem [resolvable:$true] %s689_s21 }
 0x187   : > { %p10253_p1 = scmp.ne.s32.totalorder %s11017_s15, %s10252_s22  ;;  %s10256_s0 = scalar_lea.hbm %s12488_s23, 64 }
 0x188   : > { %p10257_p0 = scmp.lt.u32.totalorder %s11017_s15, %s12488_s23  ;;  %p10258_p4 = scmp.lt.u32.totalorder %s10256_s0, %s10252_s22 }
 0x189   : > { %p10254_p6 = pnand %p10253_p1, %p10633_p12  ;;  %p10260_p5 = scmp.lt.u32.totalorder %s10252_s22, %s11017_s15 }
 0x18a   : > { %p10259_p7 = por %p10258_p4, %p10257_p0 }
 0x18b   : > { %p10255_p11 = pneg %p10254_p6 }
 0x18c   : > { %p10261_p9 = por %p10260_p5, %p10259_p7 }
 0x18e   : > { %p10262_p10 = pnand %p10261_p9, %p10255_p11 }
 0x190   : > { %10265 = shalt.err (!%p10262_p10)
}
 0x191   : > { %s10266_s28 = scalar_lea.vmem %s690_s21, 32  ;;  %s10446_s20 = smov [#allocation23]  }
 0x192   : > { %p10267_p8 = scmp.ne.s32.totalorder %s690_s21, %s10266_s28  ;;  %s10270_s27 = sshll.u32 %s10446_s20, 4  ;;  %s10271_s27 = int_to_ptr.vmem [resolvable:$false] %s10270_s27 }
 0x193   : > { %s10272_s14 = scalar_lea.vmem %s10271_s27, 64  ;;  %p10273_p2 = scmp.lt.s32.totalorder %s690_s21, %s10271_s27 }
 0x194   : > { %p10268_p3 = pnand %p10267_p8, %p10633_p12  ;;  %p10274_p1 = scmp.lt.s32.totalorder %s10272_s14, %s10266_s28 }
 0x196   : > { %p10269_p13 = pneg %p10268_p3  ;;  %p10275_p6 = por %p10274_p1, %p10273_p2 }
 0x198   : > { %p10276_p0 = pnand %p10275_p6, %p10269_p13 }
 0x19a   : > { %10279 = shalt.err (!%p10276_p0)
}
 0x19b   : > { %s12490_s10 = scalar_lea.sflag [#allocation22], %s10660_s25 }
 0x19c   : > { %9165 = dma.hbm_to_vmem [thread:$0]  (%p10633_p12), %s11017_s15, 32, %s690_s21, %s12490_s10  }
 0x19d PF: > { %p8299_p11 = scmp.ge.s32.totalorder %s10426_s18, 1  ;;  %p694_p4 = scmp.lt.s32.totalorder %s10426_s18, 5 }
 0x19f   : > { %p695_p7 = pnand %p8299_p11, %p694_p4 }
 0x1a0   : > { %s12491_s13 = sld [smem:[#allocation41_spill]] (!%p695_p7)  ;;  %s11061_s5 = sand.u32 (!%p695_p7), 1, %s10402_s29  }
 0x1a1   : > { %698 = sbr.rel (%p695_p7) target bundleno = 3418 (0xd5a), region = 72  ;;  %s12440_s1 = sshll.u32 (!%p695_p7), %s11061_s5, 4 }
 0x1a2   : > { %s701_s8 = scalar_lea.sflag (!%p695_p7), [#allocation4], %s11061_s5  ;;  %s11067_s25 = scalar_lea.vmem (!%p695_p7), [#allocation3], %s12440_s1 }
 0x1a6   : > { %p12492_p12 = scmp.ne.s32.totalorder (!%p695_p7), %s12491_s13, 0 }
 0x1a8   : > { %10353 = dma.done.wait (%p12492_p12), %s701_s8, 256  }
 0x1a9   : > { %10355 = vsyncadd (%p12492_p12), %s701_s8, 4294967040  ;;  %s12493_s15 = sld [smem:[#allocation38_spill]]  ;;  %s12494_s21 = sld [smem:[#allocation33_spill]] }
 0x1aa   : > { %s12495_s22 = sld [smem:[#allocation44_spill]] }
 0x1af   : > { %s11074_s24 = sand.u32 1, %s12493_s15   ;;  %s711_s26 = sand.u32 1, %s12494_s21  }
 0x1b0   : > { %s9151_s0 = smul.u32 768, %s711_s26  ;;  %s710_s2 = scalar_lea.sflag [#allocation7], %s11074_s24 }
 0x1b1   : > { %p12496_p5 = scmp.ne.s32.totalorder %s12495_s22, 0 }
 0x1b2   : > { %s11078_s6 = scalar_lea.vmem [#allocation6], %s9151_s0 }
 0x1b3   : > { %10357 = dma.done.wait (%p12496_p5), %s710_s2, 12384  }
 0x1b4   : > { %10359 = vsyncadd (%p12496_p5), %s710_s2, 4294954912  ;;  %s9152_s28 = smul.u32 6, %s711_s26  ;;  %s8301_s20 = sshll.u32 %s711_s26, 8 }
 0x1b5   : > { %s728_s14 = scalar_lea.sflag [#allocation10], %s11074_s24  ;;  %s11087_s10 = scalar_lea.vmem [#allocation9], %s8301_s20 }
 0x1b6   : > { %s11084_s27 = scalar_lea.vmem [#allocation8], %s9152_s28 }
 0x1b7   : > { %10361 = dma.done.wait (%p12496_p5), %s728_s14, 4128  }
 0x1b8   : > { %10363 = vsyncadd (%p12496_p5), %s728_s14, 4294963168  ;;  %s11093_s13 = sshll.u32 %s711_s26, 1  ;;  %s746_s15 = scalar_lea.sflag [#allocation13], %s11074_s24 }
 0x1b9   : > { %10365 = dma.done.wait (%p12496_p5), %s746_s15, 64  }
 0x1ba   : > { %10367 = vsyncadd (%p12496_p5), %s746_s15, 4294967232  ;;  %s8305_s0 = sshll.u32 %s711_s26, 11  ;;  %s764_s28 = scalar_lea.sflag [#allocation16], %s11074_s24 }
 0x1bb   : > { %s11104_s20 = scalar_lea.vmem [#allocation15], %s8305_s0 }
 0x1bc   : > { %10369 = dma.done.wait (%p12496_p5), %s764_s28, 33024  }
 0x1bd   : > { %10371 = vsyncadd (%p12496_p5), %s764_s28, 4294934272  ;;  %s8306_s14 = sshll.u32 %s711_s26, 4  ;;  %s782_s8 = scalar_lea.sflag [#allocation19], %s11074_s24 }
 0x1be   : > { %s11110_s21 = scalar_lea.vmem [#allocation17], %s8306_s14  ;;  %s11113_s15 = scalar_lea.vmem [#allocation18], %s8305_s0 }
 0x1bf   : > { %10373 = dma.done.wait (%p12496_p5), %s782_s8, 32800  }
 0x1c0   : > { %10375 = vsyncadd (%p12496_p5), %s782_s8, 4294934496  ;;  %s794_s2 = scalar_lea.vmem [#allocation20], %s11093_s13  ;;  %s800_s1 = scalar_lea.sflag [#allocation22], %s11074_s24 }
 0x1c1   : > { %s803_s28 = scalar_lea.vmem [#allocation21], %s11093_s13 }
 0x1c2   : > { %10377 = dma.done.wait (%p12496_p5), %s800_s1, 64  }
 0x1c3   : > { %10379 = vsyncadd (%p12496_p5), %s800_s1, 4294967232  ;;  %s812_s26 = scalar_lea.vmem [#allocation23], %s11093_s13  ;;  %s12497_s0 = sshll.u32 %s11061_s5, 4 }
 0x1c4   : > { %s11129_s14 = scalar_lea.vmem [#allocation24], %s12497_s0  ;;  %s12498_s3 = sld [smem:[#allocation36_spill]] }
 0x1ca   : > { %p8312_p9 = scmp.ne.s32.totalorder %s12498_s3, 0 }
 0x1cb   : > { %v920_v0 = vld [vmem:[%s11067_s25] sm:$0xff] (!%p8312_p9)  ;;  %v921_v1 = vld [vmem:[%s11067_s25 + $0x8] sm:$0xff] (!%p8312_p9) }
 0x1cc   : > { %919 = sbr.rel (%p8312_p9) target bundleno = 467 (0x1d3), region = 128  ;;  %922 = vst [vmem:[#allocation2] sm:$0xff] (!%p8312_p9), %v920_v0  ;;  %923 = vst [vmem:[#allocation2 + $0x8] sm:$0xff] (!%p8312_p9), %v921_v1 }
 0x1d3 PF: > { %v9302_v2 = vld [vmem:[%s11078_s6 + $0xc] ss:$24 sps:$4 sm:$0xff]   ;;  %v9304_v3 = vld [vmem:[%s11078_s6 + $0x8] ss:$24 sps:$4 sm:$0xff]   ;;  %v9308_v6 = vld [vmem:[%s11078_s6 + $0x3c] ss:$24 sps:$4 sm:$0xff]  }
 0x1d4   : > { %1577 = vmatprep.subr.bf16.mxu1 %v9302_v2  ;;  %v9305_v4 = vld [vmem:[%s11078_s6 + $0x4] ss:$24 sps:$4 sm:$0xff]   ;;  %v9307_v5 = vld [vmem:[%s11078_s6] ss:$24 sps:$4 sm:$0xff]   ;;  %v9311_v8 = vld [vmem:[%s11078_s6 + $0x34] ss:$24 sps:$4 sm:$0xff]  }
 0x1d5   : > { %1578 = vmatpush1.bf16.msra.mxu1 %v9304_v3  ;;  %v9310_v7 = vld [vmem:[%s11078_s6 + $0x38] ss:$24 sps:$4 sm:$0xff]   ;;  %1536 = vmatprep.subr.bf16.mxu0 %v9305_v4  ;;  %v9314_v10 = vld [vmem:[%s11078_s6 + $0x6c] ss:$24 sps:$4 sm:$0xff]   ;;  %v9316_v11 = vld [vmem:[%s11078_s6 + $0x68] ss:$24 sps:$4 sm:$0xff]  }
 0x1d6   : > { %1537 = vmatpush1.bf16.msra.mxu0 %v9307_v5  ;;  %1579 = vmatprep.subr.bf16.mxu1 %v9308_v6  ;;  %v9313_v9 = vld [vmem:[%s11078_s6 + $0x30] ss:$24 sps:$4 sm:$0xff]   ;;  %v9317_v12 = vld [vmem:[%s11078_s6 + $0x64] ss:$24 sps:$4 sm:$0xff]   ;;  %v9319_v14 = vld [vmem:[%s11078_s6 + $0x60] ss:$24 sps:$4 sm:$0xff]   ;;  %v1026_v6 = vlaneseq }
 0x1d7   : > { %1538 = vmatprep.subr.bf16.mxu0 %v9311_v8  ;;  %v9320_v13 = vld [vmem:[%s11078_s6 + $0x9c] ss:$24 sps:$4 sm:$0xff]   ;;  %v9322_v16 = vld [vmem:[%s11078_s6 + $0x98] ss:$24 sps:$4 sm:$0xff]   ;;  %v9326_v17 = vld [vmem:[%s11078_s6 + $0xcc] ss:$24 sps:$4 sm:$0xff]  }
 0x1d8   : > { %v9323_v15 = vld [vmem:[%s11078_s6 + $0x94] ss:$24 sps:$4 sm:$0xff]   ;;  %v9325_v18 = vld [vmem:[%s11078_s6 + $0x90] ss:$24 sps:$4 sm:$0xff]   ;;  %v9329_v19 = vld [vmem:[%s11078_s6 + $0xc4] ss:$24 sps:$4 sm:$0xff]  }
 0x1d9   : > { %1580 = vmatpush1.bf16.msra.mxu1 %v9310_v7  ;;  %v9328_v20 = vld [vmem:[%s11078_s6 + $0xc8] ss:$24 sps:$4 sm:$0xff]   ;;  %v9332_v21 = vld [vmem:[%s11078_s6 + $0xfc] ss:$24 sps:$4 sm:$0xff]   ;;  %v9334_v24 = vld [vmem:[%s11078_s6 + $0xf8] ss:$24 sps:$4 sm:$0xff]  }
 0x1da   : > { %1581 = vmatprep.subr.bf16.mxu1 %v9314_v10  ;;  %1539 = vmatpush1.bf16.msra.mxu0 %v9313_v9  ;;  %v9331_v22 = vld [vmem:[%s11078_s6 + $0xc0] ss:$24 sps:$4 sm:$0xff]   ;;  %v9335_v23 = vld [vmem:[%s11078_s6 + $0xf4] ss:$24 sps:$4 sm:$0xff]   ;;  %v9337_v26 = vld [vmem:[%s11078_s6 + $0xf0] ss:$24 sps:$4 sm:$0xff]  }
 0x1db   : > { %1540 = vmatprep.subr.bf16.mxu0 %v9317_v12  ;;  %v9338_v25 = vld [vmem:[%s11078_s6 + $0x12c] ss:$24 sps:$4 sm:$0xff]   ;;  %v9340_v28 = vld [vmem:[%s11078_s6 + $0x128] ss:$24 sps:$4 sm:$0xff]   ;;  %v9344_v29 = vld [vmem:[%s11078_s6 + $0x15c] ss:$24 sps:$4 sm:$0xff]  }
 0x1dc   : > { %v9341_v27 = vld [vmem:[%s11078_s6 + $0x124] ss:$24 sps:$4 sm:$0xff]   ;;  %v9343_v30 = vld [vmem:[%s11078_s6 + $0x120] ss:$24 sps:$4 sm:$0xff]   ;;  %v9347_v31 = vld [vmem:[%s11078_s6 + $0x154] ss:$24 sps:$4 sm:$0xff]  }
 0x1dd   : > { %1582 = vmatpush1.bf16.msra.mxu1 %v9316_v11  ;;  %v9346_v32 = vld [vmem:[%s11078_s6 + $0x158] ss:$24 sps:$4 sm:$0xff]   ;;  %v9350_v33 = vld [vmem:[%s11078_s6 + $0x18c] ss:$24 sps:$4 sm:$0xff]   ;;  %v9352_v36 = vld [vmem:[%s11078_s6 + $0x188] ss:$24 sps:$4 sm:$0xff]  }
 0x1de   : > { %1583 = vmatprep.subr.bf16.mxu1 %v9320_v13  ;;  %1541 = vmatpush1.bf16.msra.mxu0 %v9319_v14  ;;  %v9349_v34 = vld [vmem:[%s11078_s6 + $0x150] ss:$24 sps:$4 sm:$0xff]   ;;  %v9353_v35 = vld [vmem:[%s11078_s6 + $0x184] ss:$24 sps:$4 sm:$0xff]   ;;  %v9355_v38 = vld [vmem:[%s11078_s6 + $0x180] ss:$24 sps:$4 sm:$0xff]  }
 0x1df   : > { %1542 = vmatprep.subr.bf16.mxu0 %v9323_v15  ;;  %v9356_v37 = vld [vmem:[%s11078_s6 + $0x1bc] ss:$24 sps:$4 sm:$0xff]   ;;  %v9358_v40 = vld [vmem:[%s11078_s6 + $0x1b8] ss:$24 sps:$4 sm:$0xff]   ;;  %v9362_v41 = vld [vmem:[%s11078_s6 + $0x1ec] ss:$24 sps:$4 sm:$0xff]  }
 0x1e0   : > { %v9359_v39 = vld [vmem:[%s11078_s6 + $0x1b4] ss:$24 sps:$4 sm:$0xff]   ;;  %v9361_v42 = vld [vmem:[%s11078_s6 + $0x1b0] ss:$24 sps:$4 sm:$0xff]   ;;  %v9365_v43 = vld [vmem:[%s11078_s6 + $0x1e4] ss:$24 sps:$4 sm:$0xff]  }
 0x1e1   : > { %1584 = vmatpush1.bf16.msra.mxu1 %v9322_v16  ;;  %v9364_v44 = vld [vmem:[%s11078_s6 + $0x1e8] ss:$24 sps:$4 sm:$0xff]   ;;  %v9368_v45 = vld [vmem:[%s11078_s6 + $0x21c] ss:$24 sps:$4 sm:$0xff]   ;;  %v9370_v47 = vld [vmem:[%s11078_s6 + $0x218] ss:$24 sps:$4 sm:$0xff]  }
 0x1e2   : > { %1585 = vmatprep.subr.bf16.mxu1 %v9326_v17  ;;  %1543 = vmatpush1.bf16.msra.mxu0 %v9325_v18  ;;  %v9367_v46 = vld [vmem:[%s11078_s6 + $0x1e0] ss:$24 sps:$4 sm:$0xff]   ;;  %v9371_v48 = vld [vmem:[%s11078_s6 + $0x214] ss:$24 sps:$4 sm:$0xff]   ;;  %v9373_v50 = vld [vmem:[%s11078_s6 + $0x210] ss:$24 sps:$4 sm:$0xff]  }
 0x1e3   : > { %1544 = vmatprep.subr.bf16.mxu0 %v9329_v19  ;;  %v925_v49 = vld [vmem:[#allocation2 + $0x8] sm:$0xff]  ;;  %v9374_v51 = vld [vmem:[%s11078_s6 + $0x24c] ss:$24 sps:$4 sm:$0xff]   ;;  %v9376_v54 = vld [vmem:[%s11078_s6 + $0x248] ss:$24 sps:$4 sm:$0xff]   ;;  %v11202_v7 = vshrl.u32 %v1026_v6, 7 }
 0x1e4   : > { %v927_v52 = vpack.c.bf16 %v925_v49, %v925_v49  ;;  %v9377_v53 = vld [vmem:[%s11078_s6 + $0x244] ss:$24 sps:$4 sm:$0xff]   ;;  %v9379_v56 = vld [vmem:[%s11078_s6 + $0x240] ss:$24 sps:$4 sm:$0xff]   ;;  %v9383_v57 = vld [vmem:[%s11078_s6 + $0x274] ss:$24 sps:$4 sm:$0xff]  }
 0x1e5   : > { %1586 = vmatpush1.bf16.msra.mxu1 %v9328_v20  ;;  %v9380_v55 = vld [vmem:[%s11078_s6 + $0x27c] ss:$24 sps:$4 sm:$0xff]   ;;  %v9382_v58 = vld [vmem:[%s11078_s6 + $0x278] ss:$24 sps:$4 sm:$0xff]   ;;  %v9386_v59 = vld [vmem:[%s11078_s6 + $0x2ac] ss:$24 sps:$4 sm:$0xff]  }
 0x1e6   : > { %1587 = vmatprep.subr.bf16.mxu1 %v9332_v21  ;;  %1545 = vmatpush1.bf16.msra.mxu0 %v9331_v22  ;;  %v9385_v60 = vld [vmem:[%s11078_s6 + $0x270] ss:$24 sps:$4 sm:$0xff]   ;;  %v9389_v61 = vld [vmem:[%s11078_s6 + $0x2a4] ss:$24 sps:$4 sm:$0xff]   ;;  %v9391_v0 = vld [vmem:[%s11078_s6 + $0x2a0] ss:$24 sps:$4 sm:$0xff]  }
 0x1e7   : > { %1546 = vmatprep.subr.bf16.mxu0 %v9335_v23  ;;  %1609 = vmatprep.mubr.bf16.mxu1 %v927_v52  ;;  %v9388_v62 = vld [vmem:[%s11078_s6 + $0x2a8] ss:$24 sps:$4 sm:$0xff]   ;;  %v9392_v63 = vld [vmem:[%s11078_s6 + $0x2dc] ss:$24 sps:$4 sm:$0xff]   ;;  %v9394_v2 = vld [vmem:[%s11078_s6 + $0x2d8] ss:$24 sps:$4 sm:$0xff]  }
 0x1e8   : > { %1568 = vmatprep.mubr.bf16.mxu0 %v927_v52  ;;  %v9395_v1 = vld [vmem:[%s11078_s6 + $0x2d4] ss:$24 sps:$4 sm:$0xff]   ;;  %v9397_v4 = vld [vmem:[%s11078_s6 + $0x2d0] ss:$24 sps:$4 sm:$0xff]   ;;  %v11205_v8 = vsub.s32 2, %v11202_v7  ;;  %v11211_v10 = vsub.s32 0, %v11202_v7 }
 0x1e9   : > { %1588 = vmatpush1.bf16.msra.mxu1 %v9334_v24  ;;  %v924_v3 = vld [vmem:[#allocation2] sm:$0xff]  ;;  %v11208_v9 = vld [vmem:[%s11084_s27] sm:$0x3f]  ;;  %s10447_s3 = smov 32   ;;  %s10448_s1 = smov 96   ;;  %v11224_v22 = vsub.s32 3, %v11202_v7 }
 0x1ea   : > { %1589 = vmatprep.subr.bf16.mxu1 %v9338_v25  ;;  %1547 = vmatpush1.bf16.msra.mxu0 %v9337_v26  ;;  %v11198_v5 = vpack.c.bf16 %v924_v3, %v924_v3  ;;  %v1037_v11 = vrot.slane %v11208_v9, %v11205_v8  ;;  %v1029_v12 = vrot.slane %v11208_v9, %v11211_v10  ;;  %v11229_v24 = vsub.s32 1, %v11202_v7  ;;  %s10449_s25 = smov 64   ;;  %v9422_v49 = vld [vmem:[%s11078_s6 + $0x190] ss:$24 sps:$4 sm:$0xff]   ;;  %s12499_s22 = scalar_lea.vmem [#allocation11], %s11093_s13 }
 0x1eb   : > { %1548 = vmatprep.subr.bf16.mxu0 %v9341_v27  ;;  %v1041_v26 = vrot.slane %v11208_v9, %v11224_v22  ;;  %vm10451_vm0 = vmmov 0   ;;  %v10453_v6 = vmov 1934713408   ;;  %vm2553_vm1 = vcmask 261120   ;;  %s12500_s24 = scalar_lea.vmem [#allocation12], %s11093_s13  ;;  %s12502_s27 = sld [smem:[#allocation36_spill]] }
 0x1ec   : > { %v1033_v27 = vrot.slane %v11208_v9, %v11229_v24  ;;  %vm2922_vm2 = vcmask 64512   ;;  %vm3030_vm3 = vcmask 1043456   ;;  %vm3693_vm4 = vcmask 523264  }
 0x1ed   : > { %1590 = vmatpush1.bf16.msra.mxu1 %v9340_v28  ;;  %vm3695_vm5 = vcmask 785408  }
 0x1ee   : > { %1591 = vmatprep.subr.bf16.mxu1 %v9344_v29  ;;  %1549 = vmatpush1.bf16.msra.mxu0 %v9343_v30 }
 0x1ef   : > { %1550 = vmatprep.subr.bf16.mxu0 %v9347_v31  ;;  %v10450_v31 = vmov 0.0  }
 0x1f1   : > { %1592 = vmatpush1.bf16.msra.mxu1 %v9346_v32  ;;  %v9398_v32 = vld [vmem:[%s11078_s6 + $0x10] ss:$24 sps:$4 sm:$0xff]   ;;  %p9001_p10 = scmp.ne.s32.totalorder %s12502_s27, 1 }
 0x1f2   : > { %1593 = vmatprep.subr.bf16.mxu1 %v9350_v33  ;;  %1551 = vmatpush1.bf16.msra.mxu0 %v9349_v34  ;;  %v9400_v33 = vld [vmem:[%s11078_s6 + $0x14] ss:$24 sps:$4 sm:$0xff]   ;;  %v9401_v34 = vld [vmem:[%s11078_s6 + $0x40] ss:$24 sps:$4 sm:$0xff]  }
 0x1f3   : > { %1552 = vmatprep.subr.bf16.mxu0 %v9353_v35  ;;  %v9403_v35 = vld [vmem:[%s11078_s6 + $0x44] ss:$24 sps:$4 sm:$0xff]  }
 0x1f5   : > { %1594 = vmatpush1.bf16.msra.mxu1 %v9352_v36  ;;  %v9406_v36 = vld [vmem:[%s11078_s6 + $0x74] ss:$24 sps:$4 sm:$0xff]  }
 0x1f6   : > { %1595 = vmatprep.subr.bf16.mxu1 %v9356_v37  ;;  %1553 = vmatpush1.bf16.msra.mxu0 %v9355_v38  ;;  %v9404_v37 = vld [vmem:[%s11078_s6 + $0x70] ss:$24 sps:$4 sm:$0xff]   ;;  %v9407_v38 = vld [vmem:[%s11078_s6 + $0xa0] ss:$24 sps:$4 sm:$0xff]  }
 0x1f7   : > { %1554 = vmatprep.subr.bf16.mxu0 %v9359_v39  ;;  %v9409_v39 = vld [vmem:[%s11078_s6 + $0xa4] ss:$24 sps:$4 sm:$0xff]  }
 0x1f9   : > { %1596 = vmatpush1.bf16.msra.mxu1 %v9358_v40  ;;  %v9412_v40 = vld [vmem:[%s11078_s6 + $0xd4] ss:$24 sps:$4 sm:$0xff]  }
 0x1fa   : > { %1597 = vmatprep.subr.bf16.mxu1 %v9362_v41  ;;  %1555 = vmatpush1.bf16.msra.mxu0 %v9361_v42  ;;  %v9410_v41 = vld [vmem:[%s11078_s6 + $0xd0] ss:$24 sps:$4 sm:$0xff]   ;;  %v9413_v42 = vld [vmem:[%s11078_s6 + $0x100] ss:$24 sps:$4 sm:$0xff]  }
 0x1fb   : > { %1556 = vmatprep.subr.bf16.mxu0 %v9365_v43  ;;  %v9415_v43 = vld [vmem:[%s11078_s6 + $0x104] ss:$24 sps:$4 sm:$0xff]  }
 0x1fd   : > { %1598 = vmatpush1.bf16.msra.mxu1 %v9364_v44  ;;  %v9418_v44 = vld [vmem:[%s11078_s6 + $0x134] ss:$24 sps:$4 sm:$0xff]  }
 0x1fe   : > { %1599 = vmatprep.subr.bf16.mxu1 %v9368_v45  ;;  %1557 = vmatpush1.bf16.msra.mxu0 %v9367_v46  ;;  %v9416_v45 = vld [vmem:[%s11078_s6 + $0x130] ss:$24 sps:$4 sm:$0xff]   ;;  %v9419_v46 = vld [vmem:[%s11078_s6 + $0x160] ss:$24 sps:$4 sm:$0xff]  }
 0x1ff   : > { %1558 = vmatprep.subr.bf16.mxu0 %v9371_v48  ;;  %v9424_v48 = vld [vmem:[%s11078_s6 + $0x194] ss:$24 sps:$4 sm:$0xff]  }
 0x201   : > { %1600 = vmatpush1.bf16.msra.mxu1 %v9370_v47  ;;  %v9421_v47 = vld [vmem:[%s11078_s6 + $0x164] ss:$24 sps:$4 sm:$0xff]  }
 0x202   : > { %1601 = vmatprep.subr.bf16.mxu1 %v9374_v51  ;;  %1559 = vmatpush1.bf16.msra.mxu0 %v9373_v50  ;;  %v9425_v50 = vld [vmem:[%s11078_s6 + $0x1c0] ss:$24 sps:$4 sm:$0xff]   ;;  %v9427_v51 = vld [vmem:[%s11078_s6 + $0x1c4] ss:$24 sps:$4 sm:$0xff]  }
 0x203   : > { %1560 = vmatprep.subr.bf16.mxu0 %v9377_v53  ;;  %v9428_v53 = vld [vmem:[%s11078_s6 + $0x1f0] ss:$24 sps:$4 sm:$0xff]  }
 0x205   : > { %1602 = vmatpush1.bf16.msra.mxu1 %v9376_v54  ;;  %v9431_v54 = vld [vmem:[%s11078_s6 + $0x220] ss:$24 sps:$4 sm:$0xff]  }
 0x206   : > { %1603 = vmatprep.subr.bf16.mxu1 %v9380_v55  ;;  %1561 = vmatpush1.bf16.msra.mxu0 %v9379_v56  ;;  %v9433_v55 = vld [vmem:[%s11078_s6 + $0x224] ss:$24 sps:$4 sm:$0xff]   ;;  %v9436_v56 = vld [vmem:[%s11078_s6 + $0x254] ss:$24 sps:$4 sm:$0xff]  }
 0x207   : > { %1562 = vmatprep.subr.bf16.mxu0 %v9383_v57  ;;  %v9434_v57 = vld [vmem:[%s11078_s6 + $0x250] ss:$24 sps:$4 sm:$0xff]  }
 0x209   : > { %1604 = vmatpush1.bf16.msra.mxu1 %v9382_v58  ;;  %v9439_v58 = vld [vmem:[%s11078_s6 + $0x284] ss:$24 sps:$4 sm:$0xff]  }
 0x20a   : > { %1605 = vmatprep.subr.bf16.mxu1 %v9386_v59  ;;  %1563 = vmatpush1.bf16.msra.mxu0 %v9385_v60  ;;  %v9437_v59 = vld [vmem:[%s11078_s6 + $0x280] ss:$24 sps:$4 sm:$0xff]   ;;  %v9442_v60 = vld [vmem:[%s11078_s6 + $0x2b4] ss:$24 sps:$4 sm:$0xff]  }
 0x20b   : > { %1564 = vmatprep.subr.bf16.mxu0 %v9389_v61  ;;  %v9440_v61 = vld [vmem:[%s11078_s6 + $0x2b0] ss:$24 sps:$4 sm:$0xff]  }
 0x20d   : > { %1606 = vmatpush1.bf16.msra.mxu1 %v9388_v62  ;;  %v9445_v62 = vld [vmem:[%s11078_s6 + $0x2e4] ss:$24 sps:$4 sm:$0xff]  }
 0x20e   : > { %1607 = vmatprep.subr.bf16.mxu1 %v9392_v63  ;;  %1565 = vmatpush1.bf16.msra.mxu0 %v9391_v0  ;;  %v9443_v63 = vld [vmem:[%s11078_s6 + $0x2e0] ss:$24 sps:$4 sm:$0xff]   ;;  %v10452_v0 = vmov 1983009808  }
 0x20f   : > { %1566 = vmatprep.subr.bf16.mxu0 %v9395_v1  ;;  %v1684_v1 = vunpack.c.l.s4 %v10452_v0 }
 0x211   : > { %1608 = vmatpush1.bf16.msra.mxu1 %v9394_v2 }
 0x212   : > { %1567 = vmatpush1.bf16.msra.mxu0 %v9397_v4  ;;  %9051 = vmatprep.subr.bf16.mxu1 %v10450_v31  ;;  %v1685_v4 = vunpack.c.0.s8 %v1684_v1 }
 0x213   : > { %1618 = vmatprep.subr.bf16.mxu0 %v9400_v33 }
 0x214   : > { %1610 = vmatmul.mubr.bf16.vlgmr.msra.gmra.mrb[0].mxu1 %v11198_v5 }
 0x215   : > { %1569 = vmatmul.mubr.bf16.vlgmr.msra.gmra.mrb[0].mxu0 %v11198_v5  ;;  %9053 = vmatprep.mubr.msk.bf16.mxu1 %vm10451_vm0, %v10450_v31 }
 0x216   : > { %1650 = vmatprep.mubr.bf16.mxu0 %v927_v52  ;;  %1619 = vmatpush1.bf16.msra.mxu0 %v9398_v32  ;;  %v9430_v52 = vld [vmem:[%s11078_s6 + $0x1f4] ss:$24 sps:$4 sm:$0xff]   ;;  %s12501_s6 = scalar_lea.vmem [#allocation14], %s11093_s13 }
 0x217   : > { %1620 = vmatprep.subr.bf16.mxu0 %v9403_v35 }
 0x21a   : > { %1621 = vmatpush1.bf16.msra.mxu0 %v9401_v34 }
 0x21b   : > { %1622 = vmatprep.subr.bf16.mxu0 %v9406_v36 }
 0x21e   : > { %1623 = vmatpush1.bf16.msra.mxu0 %v9404_v37 }
 0x21f   : > { %1624 = vmatprep.subr.bf16.mxu0 %v9409_v39 }
 0x222   : > { %1625 = vmatpush1.bf16.msra.mxu0 %v9407_v38 }
 0x223   : > { %1626 = vmatprep.subr.bf16.mxu0 %v9412_v40 }
 0x226   : > { %1627 = vmatpush1.bf16.msra.mxu0 %v9410_v41 }
 0x227   : > { %1628 = vmatprep.subr.bf16.mxu0 %v9415_v43 }
 0x22a   : > { %1629 = vmatpush1.bf16.msra.mxu0 %v9413_v42 }
 0x22b   : > { %1630 = vmatprep.subr.bf16.mxu0 %v9418_v44 }
 0x22e   : > { %1631 = vmatpush1.bf16.msra.mxu0 %v9416_v45 }
 0x22f   : > { %1632 = vmatprep.subr.bf16.mxu0 %v9421_v47 }
 0x232   : > { %1633 = vmatpush1.bf16.msra.mxu0 %v9419_v46 }
 0x233   : > { %1634 = vmatprep.subr.bf16.mxu0 %v9424_v48 }
 0x236   : > { %1635 = vmatpush1.bf16.msra.mxu0 %v9422_v49 }
 0x237   : > { %1636 = vmatprep.subr.bf16.mxu0 %v9427_v51 }
 0x23a   : > { %1637 = vmatpush1.bf16.msra.mxu0 %v9425_v50 }
 0x23b   : > { %1638 = vmatprep.subr.bf16.mxu0 %v9430_v52 }
 0x23e   : > { %1639 = vmatpush1.bf16.msra.mxu0 %v9428_v53 }
 0x23f   : > { %1640 = vmatprep.subr.bf16.mxu0 %v9433_v55 }
 0x242   : > { %1641 = vmatpush1.bf16.msra.mxu0 %v9431_v54 }
 0x243   : > { %1642 = vmatprep.subr.bf16.mxu0 %v9436_v56 }
 0x246   : > { %1643 = vmatpush1.bf16.msra.mxu0 %v9434_v57 }
 0x247   : > { %1644 = vmatprep.subr.bf16.mxu0 %v9439_v58 }
 0x24a   : > { %1645 = vmatpush1.bf16.msra.mxu0 %v9437_v59 }
 0x24b   : > { %1646 = vmatprep.subr.bf16.mxu0 %v9442_v60 }
 0x24e   : > { %1647 = vmatpush1.bf16.msra.mxu0 %v9440_v61 }
 0x24f   : > { %1648 = vmatprep.subr.bf16.mxu0 %v9445_v62 }
 0x252   : > { %1649 = vmatpush1.bf16.msra.mxu0 %v9443_v63 }
 0x255   : > { %1651 = vmatmul.mubr.bf16.vlgmr.msra.gmra.mrb[4].mxu0 %v11198_v5 }
 0x2e7   : > { %v1611_v13 = vpop.f32.mrb[0].mxu1 }
 0x2e8   : > { %v11217_v14 = vadd.f32 %v1611_v13, %v1037_v11  ;;  %v1613_v15 = vpop.f32.mrb[1].mxu1  ;;  %v1570_v16 = vpop.f32.mrb[0].mxu0  ;;  %v1748_v11 = vunpack.c.l.s4 %v10453_v6 }
 0x2e9   : > { %v1615_v17 = vpop.f32.mrb[2].mxu1  ;;  %v1571_v18 = vadd.f32 %v1570_v16, %v1029_v12  ;;  %v1572_v20 = vpop.f32.mrb[1].mxu0  ;;  %v11243_v28 = vadd.f32 %v1613_v15, %v1041_v26 }
 0x2ea   : > { %v1616_v19 = vpop.f32.mrb[3].mxu1  ;;  %1960 = vrot.lane.b32.xlu1 %v11217_v14, %s10447_s3  ;;  %1954 = vrot.lane.b32.xlu0 %v11217_v14, %s10448_s1  ;;  %v1574_v21 = vpop.f32.mrb[2].mxu0  ;;  %v1573_v29 = vadd.f32 %v1572_v20, %v1033_v27  ;;  %v11298_v17 = vsub.s32 %v1685_v4, %v11202_v7 }
 0x2eb   : > { %v11226_v23 = vmul.f32 0.17677669, %v1571_v18  ;;  %v1575_v25 = vpop.f32.mrb[3].mxu0  ;;  %v1749_v18 = vunpack.c.0.s8 %v1748_v11 }
 0x2ec   : > { %v11249_v30 = vmul.f32 0.17677669, %v1573_v29 }
 0x2ee   : > { %1957 = vrot.lane.b32.xlu0 %v11217_v14, %s10449_s25  ;;  %1662 = vrot.lane.b32.xlu1 %v11226_v23, %s10448_s1 }
 0x2f2   : > { %1665 = vrot.lane.b32.xlu0 %v11226_v23, %s10449_s25  ;;  %1668 = vrot.lane.b32.xlu1 %v11226_v23, %s10447_s3 }
 0x2f6   : > { %1964 = vrot.lane.b32.xlu0 %v11243_v28, %s10448_s1  ;;  %1967 = vrot.lane.b32.xlu1 %v11243_v28, %s10449_s25 }
 0x2fa   : > { %1970 = vrot.lane.b32.xlu0 %v11243_v28, %s10447_s3  ;;  %1672 = vrot.lane.b32.xlu1 %v11249_v30, %s10448_s1 }
 0x2fe   : > { %1675 = vrot.lane.b32.xlu0 %v11249_v30, %s10449_s25  ;;  %1678 = vrot.lane.b32.xlu1 %v11249_v30, %s10447_s3 }
 0x35c   : > { %v1961_v2 = vpop.permute.xlu1 %1960  ;;  %v1955_v3 = vpop.permute.xlu0 %1954 }
 0x35d   : > { %v1989_v19 = vcombine.low %v1955_v3, %v1961_v2  ;;  %v1990_v20 = vcombine.high %v1955_v3, %v1961_v2 }
 0x35f   : > { %v1997_v34 = vrot.slane %v1989_v19, %v11298_v17  ;;  %v2004_v35 = vrot.slane %v1990_v20, %v11298_v17 }
 0x360   : > { %v1958_v12 = vpop.permute.xlu0 %1957  ;;  %v1663_v13 = vpop.permute.xlu1 %1662 }
 0x361   : > { %v1973_v15 = vcombine.low %v11217_v14, %v1958_v12  ;;  %v1974_v16 = vcombine.high %v11217_v14, %v1958_v12  ;;  %v11305_v14 = vsub.s32 %v1749_v18, %v11202_v7 }
 0x363   : > { %v1981_v25 = vrot.slane %v1973_v15, %v11298_v17  ;;  %v1988_v26 = vrot.slane %v1974_v16, %v11298_v17 }
 0x364   : > { %v1666_v5 = vpop.permute.xlu0 %1665  ;;  %v1669_v21 = vpop.permute.xlu1 %1668 }
 0x365   : > { %v1681_v27 = vcombine.low %v11226_v23, %v1666_v5  ;;  %v1682_v29 = vcombine.high %v11226_v23, %v1666_v5  ;;  %v1697_v32 = vcombine.low %v1663_v13, %v1669_v21  ;;  %v1698_v33 = vcombine.high %v1663_v13, %v1669_v21 }
 0x366   : > { %v2037_v40 = vcombine.low %v1981_v25, %v1997_v34  ;;  %v2038_v41 = vcombine.high %v1981_v25, %v1997_v34  ;;  %v2053_v23 = vcombine.low %v1988_v26, %v2004_v35  ;;  %v2054_v42 = vcombine.high %v1988_v26, %v2004_v35 }
 0x367   : > { %v1689_v36 = vrot.slane %v1681_v27, %v11298_v17  ;;  %v1696_v37 = vrot.slane %v1682_v29, %v11298_v17  ;;  %v1705_v38 = vrot.slane %v1697_v32, %v11298_v17  ;;  %v1712_v39 = vrot.slane %v1698_v33, %v11298_v17 }
 0x368   : > { %v2045_v47 = vrot.slane %v2037_v40, %v11305_v14  ;;  %v2052_v48 = vrot.slane %v2038_v41, %v11305_v14  ;;  %v2061_v49 = vrot.slane %v2053_v23, %v11305_v14  ;;  %v2068_v50 = vrot.slane %v2054_v42, %v11305_v14  ;;  %v1965_v55 = vpop.permute.xlu0 %1964  ;;  %v1968_v0 = vpop.permute.xlu1 %1967 }
 0x369   : > { %v1745_v43 = vcombine.low %v1689_v36, %v1705_v38  ;;  %v1746_v44 = vcombine.high %v1689_v36, %v1705_v38  ;;  %v1761_v45 = vcombine.low %v1696_v37, %v1712_v39  ;;  %v1762_v46 = vcombine.high %v1696_v37, %v1712_v39 }
 0x36a   : > { %v8417_v56 = vcombine.low %v2045_v47, %v2052_v48  ;;  %v8419_v57 = vcombine.high %v2045_v47, %v2052_v48  ;;  %v8421_v58 = vcombine.low %v2061_v49, %v2068_v50  ;;  %v8423_v59 = vcombine.high %v2061_v49, %v2068_v50 }
 0x36b   : > { %v1753_v51 = vrot.slane %v1745_v43, %v11305_v14  ;;  %v1760_v52 = vrot.slane %v1746_v44, %v11305_v14  ;;  %v1769_v53 = vrot.slane %v1761_v45, %v11305_v14  ;;  %v1776_v54 = vrot.slane %v1762_v46, %v11305_v14 }
 0x36c   : > { %v2117_v1 = vrot.slane %v8417_v56, %v11298_v17  ;;  %v2133_v2 = vrot.slane %v8419_v57, %v11298_v17  ;;  %v2149_v3 = vrot.slane %v8421_v58, %v11298_v17  ;;  %v2165_v4 = vrot.slane %v8423_v59, %v11298_v17  ;;  %v1971_v6 = vpop.permute.xlu0 %1970  ;;  %v1673_v19 = vpop.permute.xlu1 %1672 }
 0x36d   : > { %v8409_v60 = vcombine.low %v1753_v51, %v1760_v52  ;;  %v8411_v61 = vcombine.high %v1753_v51, %v1760_v52  ;;  %v8413_v62 = vcombine.low %v1769_v53, %v1776_v54  ;;  %v8415_v63 = vcombine.high %v1769_v53, %v1776_v54 }
 0x36e   : > { %v2021_v16 = vcombine.low %v1965_v55, %v1971_v6  ;;  %v2022_v18 = vcombine.high %v1965_v55, %v1971_v6  ;;  %v2173_v20 = vcombine.low %v2117_v1, %v2133_v2  ;;  %v2205_v5 = vcombine.low %v2149_v3, %v2165_v4 }
 0x36f   : > { %v11326_v11 = vrot.slane %v8409_v60, %v11298_v17  ;;  %v11329_v12 = vrot.slane %v8411_v61, %v11298_v17  ;;  %v11332_v13 = vrot.slane %v8413_v62, %v11298_v17  ;;  %v11335_v15 = vrot.slane %v8415_v63, %v11298_v17 }
 0x370   : > { %v2005_v21 = vcombine.low %v11243_v28, %v1968_v0  ;;  %v2006_v25 = vcombine.high %v11243_v28, %v1968_v0  ;;  %v2181_v29 = vrot.slane %v2173_v20, %v11305_v14  ;;  %v2213_v32 = vrot.slane %v2205_v5, %v11305_v14  ;;  %v1676_v28 = vpop.permute.xlu0 %1675  ;;  %v1679_v38 = vpop.permute.xlu1 %1678 }
 0x371   : > { %v1881_v26 = vcombine.low %v11326_v11, %v11329_v12  ;;  %v1913_v27 = vcombine.low %v11332_v13, %v11335_v15  ;;  %v2029_v33 = vrot.slane %v2021_v16, %v11298_v17  ;;  %v2036_v34 = vrot.slane %v2022_v18, %v11298_v17 }
 0x372   : > { %v2237_v35 = vcombine.low %v2181_v29, %v2213_v32  ;;  %v2013_v36 = vrot.slane %v2005_v21, %v11298_v17  ;;  %v2020_v37 = vrot.slane %v2006_v25, %v11298_v17  ;;  %v2238_v46 = vcombine.high %v2181_v29, %v2213_v32 }
 0x373   : > { %v1889_v40 = vrot.slane %v1881_v26, %v11305_v14  ;;  %v1921_v41 = vrot.slane %v1913_v27, %v11305_v14  ;;  %v2174_v47 = vcombine.high %v2117_v1, %v2133_v2  ;;  %v2206_v48 = vcombine.high %v2149_v3, %v2165_v4 }
 0x374   : > { %v2545_v39 = vpack.c.bf16 %v2237_v35, %v2237_v35  ;;  %v2069_v23 = vcombine.low %v2013_v36, %v2029_v33  ;;  %v2070_v42 = vcombine.high %v2013_v36, %v2029_v33  ;;  %v2085_v43 = vcombine.low %v2020_v37, %v2036_v34 }
 0x375   : > { %v2086_v44 = vcombine.high %v2020_v37, %v2036_v34  ;;  %v1713_v49 = vcombine.low %v11249_v30, %v1676_v28  ;;  %v1714_v50 = vcombine.high %v11249_v30, %v1676_v28  ;;  %v1729_v51 = vcombine.low %v1673_v19, %v1679_v38 }
 0x376   : > { %v2558_v45 = vsel %vm2553_vm1, %v2545_v39, 0  ;;  %v1730_v52 = vcombine.high %v1673_v19, %v1679_v38  ;;  %v1945_v53 = vcombine.low %v1889_v40, %v1921_v41  ;;  %v2077_v54 = vrot.slane %v2069_v23, %v11305_v14 }
 0x377   : > { %9052 = vmatpush3.bf16.xpose.msra.mxu1 %v2558_v45  ;;  %v2084_v55 = vrot.slane %v2070_v42, %v11305_v14  ;;  %v2093_v56 = vrot.slane %v2085_v43, %v11305_v14  ;;  %v2100_v57 = vrot.slane %v2086_v44, %v11305_v14  ;;  %v2546_v58 = vpack.c.bf16 %v2238_v46, %v2238_v46 }
 0x378   : > { %9057 = vmatprep.subr.bf16.mxu1 %v10450_v31  ;;  %v2188_v59 = vrot.slane %v2174_v47, %v11305_v14  ;;  %v2220_v60 = vrot.slane %v2206_v48, %v11305_v14  ;;  %v1721_v30 = vrot.slane %v1713_v49, %v11298_v17  ;;  %v1728_v61 = vrot.slane %v1714_v50, %v11298_v17 }
 0x379   : > { %v1737_v62 = vrot.slane %v1729_v51, %v11298_v17  ;;  %v1744_v63 = vrot.slane %v1730_v52, %v11298_v17  ;;  %v2537_v0 = vpack.c.bf16 %v1945_v53, %v1945_v53  ;;  %v8418_v1 = vcombine.low %v2077_v54, %v2084_v55 }
 0x37a   : > { %v8420_v2 = vcombine.high %v2077_v54, %v2084_v55  ;;  %v8422_v3 = vcombine.low %v2093_v56, %v2100_v57  ;;  %v8424_v4 = vcombine.high %v2093_v56, %v2100_v57  ;;  %v2604_v6 = vsel %vm2553_vm1, %v2546_v58, 0 }
 0x37b   : > { %v2239_v16 = vcombine.low %v2188_v59, %v2220_v60  ;;  %v1777_v18 = vcombine.low %v1721_v30, %v1737_v62  ;;  %v1778_v19 = vcombine.high %v1721_v30, %v1737_v62  ;;  %v1793_v20 = vcombine.low %v1728_v61, %v1744_v63 }
 0x37c   : > { %v1882_v5 = vcombine.high %v11326_v11, %v11329_v12  ;;  %v1914_v21 = vcombine.high %v11332_v13, %v11335_v15  ;;  %v1794_v25 = vcombine.high %v1728_v61, %v1744_v63  ;;  %v1946_v26 = vcombine.high %v1889_v40, %v1921_v41 }
 0x37d   : > { %v2124_v27 = vrot.slane %v8418_v1, %v11298_v17  ;;  %v2140_v29 = vrot.slane %v8420_v2, %v11298_v17  ;;  %v2156_v32 = vrot.slane %v8422_v3, %v11298_v17  ;;  %v2172_v33 = vrot.slane %v8424_v4, %v11298_v17 }
 0x37e   : > { %9054 = vmatmul.mubr.msk.bf16.vlgmr.msra.gmra.mrb[4].mxu1 %vm2553_vm1, %v2537_v0  ;;  %v2547_v34 = vpack.c.bf16 %v2239_v16, %v2239_v16  ;;  %v1785_v35 = vrot.slane %v1777_v18, %v11305_v14  ;;  %v1792_v11 = vrot.slane %v1778_v19, %v11305_v14  ;;  %v1801_v12 = vrot.slane %v1793_v20, %v11305_v14 }
 0x37f   : > { %9058 = vmatpush3.bf16.xpose.msra.mxu1 %v2604_v6  ;;  %9059 = vmatprep.mubr.msk.bf16.mxu1 %vm10451_vm0, %v10450_v31  ;;  %v1808_v13 = vrot.slane %v1794_v25, %v11305_v14  ;;  %v2538_v15 = vpack.c.bf16 %v1946_v26, %v1946_v26  ;;  %v1896_v36 = vrot.slane %v1882_v5, %v11305_v14 }
 0x380   : > { %9063 = vmatprep.subr.bf16.mxu1 %v10450_v31  ;;  %v1928_v37 = vrot.slane %v1914_v21, %v11305_v14  ;;  %v2650_v28 = vsel %vm2553_vm1, %v2547_v34, 0  ;;  %v2240_v38 = vcombine.high %v2188_v59, %v2220_v60  ;;  %v2189_v39 = vcombine.low %v2124_v27, %v2140_v29 }
 0x381   : > { %v2221_v40 = vcombine.low %v2156_v32, %v2172_v33  ;;  %v8410_v41 = vcombine.low %v1785_v35, %v1792_v11  ;;  %v8412_v23 = vcombine.high %v1785_v35, %v1792_v11  ;;  %v8414_v42 = vcombine.low %v1801_v12, %v1808_v13 }
 0x382   : > { %v8416_v43 = vcombine.high %v1801_v12, %v1808_v13  ;;  %v1947_v44 = vcombine.low %v1896_v36, %v1928_v37  ;;  %v2548_v45 = vpack.c.bf16 %v2240_v38, %v2240_v38  ;;  %v2197_v46 = vrot.slane %v2189_v39, %v11305_v14 }
 0x383   : > { %v2229_v47 = vrot.slane %v2221_v40, %v11305_v14  ;;  %v1832_v48 = vrot.slane %v8410_v41, %v11298_v17  ;;  %v1848_v49 = vrot.slane %v8412_v23, %v11298_v17  ;;  %v1864_v50 = vrot.slane %v8414_v42, %v11298_v17 }
 0x384   : > { %v1880_v51 = vrot.slane %v8416_v43, %v11298_v17  ;;  %v2539_v52 = vpack.c.bf16 %v1947_v44, %v1947_v44  ;;  %v2696_v53 = vsel %vm2553_vm1, %v2548_v45, 0  ;;  %v1948_v57 = vcombine.high %v1896_v36, %v1928_v37 }
 0x385   : > { %v2241_v54 = vcombine.low %v2197_v46, %v2229_v47  ;;  %v1897_v55 = vcombine.low %v1832_v48, %v1848_v49  ;;  %v2242_v62 = vcombine.high %v2197_v46, %v2229_v47  ;;  %v2190_v63 = vcombine.high %v2124_v27, %v2140_v29 }
 0x386   : > { %9060 = vmatmul.mubr.msk.bf16.vlgmr.msra.gmra.mrb[8].mxu1 %vm2553_vm1, %v2538_v15  ;;  %v1929_v56 = vcombine.low %v1864_v50, %v1880_v51  ;;  %v2540_v59 = vpack.c.bf16 %v1948_v57, %v1948_v57  ;;  %v2222_v0 = vcombine.high %v2156_v32, %v2172_v33  ;;  %v1898_v19 = vcombine.high %v1832_v48, %v1848_v49  ;;  %v1652_v15 = vpop.f32.mrb[4].mxu0 }
 0x387   : > { %9064 = vmatpush3.bf16.xpose.msra.mxu1 %v2650_v28  ;;  %9065 = vmatprep.mubr.msk.bf16.mxu1 %vm10451_vm0, %v10450_v31  ;;  %v2549_v58 = vpack.c.bf16 %v2241_v54, %v2241_v54  ;;  %v1905_v60 = vrot.slane %v1897_v55, %v11305_v14  ;;  %v2550_v2 = vpack.c.bf16 %v2242_v62, %v2242_v62  ;;  %v1654_v36 = vpop.f32.mrb[5].mxu0 }
 0x388   : > { %9069 = vmatprep.subr.bf16.mxu1 %v10450_v31  ;;  %v1937_v30 = vrot.slane %v1929_v56, %v11305_v14  ;;  %v2204_v3 = vrot.slane %v2190_v63, %v11305_v14  ;;  %v2236_v4 = vrot.slane %v2222_v0, %v11305_v14  ;;  %v1930_v20 = vcombine.high %v1864_v50, %v1880_v51  ;;  %v1656_v37 = vpop.f32.mrb[6].mxu0 }
 0x389   : > { %v2742_v61 = vsel %vm2553_vm1, %v2549_v58, 0  ;;  %v2788_v16 = vsel %vm2553_vm1, %v2550_v2, 0  ;;  %v1912_v26 = vrot.slane %v1898_v19, %v11305_v14  ;;  %v1657_v28 = vpop.f32.mrb[7].mxu0 }
 0x38a   : > { %v1949_v1 = vcombine.low %v1905_v60, %v1937_v30  ;;  %v2243_v18 = vcombine.low %v2204_v3, %v2236_v4  ;;  %v1950_v5 = vcombine.high %v1905_v60, %v1937_v30  ;;  %v1944_v27 = vrot.slane %v1930_v20, %v11305_v14 }
 0x38b   : > { %v2244_v32 = vcombine.high %v2204_v3, %v2236_v4 }
 0x38c   : > { %v2541_v6 = vpack.c.bf16 %v1949_v1, %v1949_v1  ;;  %v2551_v21 = vpack.c.bf16 %v2243_v18, %v2243_v18  ;;  %v2542_v25 = vpack.c.bf16 %v1950_v5, %v1950_v5  ;;  %v1951_v33 = vcombine.low %v1912_v26, %v1944_v27 }
 0x38d   : > { %v2552_v34 = vpack.c.bf16 %v2244_v32, %v2244_v32  ;;  %v1952_v12 = vcombine.high %v1912_v26, %v1944_v27  ;;  %v11443_v18 = vsub.s32 4, %v11202_v7 }
 0x38e   : > { %9066 = vmatmul.mubr.msk.bf16.vlgmr.msra.gmra.mrb[12].mxu1 %vm2553_vm1, %v2539_v52  ;;  %v2834_v29 = vsel %vm2553_vm1, %v2551_v21, 0  ;;  %v2543_v35 = vpack.c.bf16 %v1951_v33, %v1951_v33 }
 0x38f   : > { %9070 = vmatpush3.bf16.xpose.msra.mxu1 %v2696_v53  ;;  %9071 = vmatprep.mubr.msk.bf16.mxu1 %vm10451_vm0, %v10450_v31  ;;  %v2880_v11 = vsel %vm2553_vm1, %v2552_v34, 0  ;;  %v2544_v13 = vpack.c.bf16 %v1952_v12, %v1952_v12  ;;  %v1045_v26 = vrot.slane %v11208_v9, %v11443_v18 }
 0x390   : > { %9075 = vmatprep.subr.bf16.mxu1 %v10450_v31 }
 0x391   : > { %v1653_v27 = vadd.f32 %v1652_v15, %v1045_v26 }
 0x396   : > { %9072 = vmatmul.mubr.msk.bf16.vlgmr.msra.gmra.mrb[16].mxu1 %vm2553_vm1, %v2540_v59 }
 0x397   : > { %9076 = vmatpush3.bf16.xpose.msra.mxu1 %v2742_v61  ;;  %9077 = vmatprep.mubr.msk.bf16.mxu1 %vm10451_vm0, %v10450_v31 }
 0x398   : > { %9081 = vmatprep.subr.bf16.mxu1 %v10450_v31 }
 0x39e   : > { %9078 = vmatmul.mubr.msk.bf16.vlgmr.msra.gmra.mrb[20].mxu1 %vm2553_vm1, %v2541_v6 }
 0x39f   : > { %9082 = vmatpush3.bf16.xpose.msra.mxu1 %v2788_v16  ;;  %9083 = vmatprep.mubr.msk.bf16.mxu1 %vm10451_vm0, %v10450_v31 }
 0x3a0   : > { %9087 = vmatprep.subr.bf16.mxu1 %v10450_v31 }
 0x3a6   : > { %9084 = vmatmul.mubr.msk.bf16.vlgmr.msra.gmra.mrb[24].mxu1 %vm2553_vm1, %v2542_v25 }
 0x3a7   : > { %9088 = vmatpush3.bf16.xpose.msra.mxu1 %v2834_v29  ;;  %9089 = vmatprep.mubr.msk.bf16.mxu1 %vm10451_vm0, %v10450_v31  ;;  %v11452_v29 = vsub.s32 5, %v11202_v7 }
 0x3a8   : > { %9093 = vmatprep.subr.bf16.mxu1 %v10450_v31 }
 0x3a9   : > { %v1049_v32 = vrot.slane %v11208_v9, %v11452_v29 }
 0x3ab   : > { %v11458_v33 = vadd.f32 %v1654_v36, %v1049_v32 }
 0x3ae   : > { %9090 = vmatmul.mubr.msk.bf16.vlgmr.msra.gmra.mrb[28].mxu1 %vm2553_vm1, %v2543_v35 }
 0x3af   : > { %9094 = vmatpush3.bf16.xpose.msra.mxu1 %v2880_v11  ;;  %9095 = vmatprep.mubr.msk.bf16.mxu1 %vm10451_vm0, %v10450_v31 }
 0x3b0   : > { %9099 = vmatprep.subr.bf16.mxu1 %v10450_v31 }
 0x3b6   : > { %9096 = vmatmul.mubr.msk.bf16.vlgmr.msra.gmra.mrb[32].mxu1 %vm2553_vm1, %v2544_v13 }
 0x3b7   : > { %9101 = vmatprep.mubr.msk.bf16.mxu1 %vm10451_vm0, %v10450_v31 }
 0x451   : > { %v2594_v38 = vpop.f32.mrb[4].mxu1 }
 0x452   : > { %v9055_v39 = vpop.f32.mrb[5].mxu1  ;;  %v2923_v40 = vsel %vm2922_vm2, %v2594_v38, -inf }
 0x453   : > { %2924 = vmax.xlane.f32.xlu0 %v2923_v40  ;;  %v2597_v41 = vpop.f32.mrb[6].mxu1 }
 0x454   : > { %v9056_v23 = vpop.f32.mrb[7].mxu1 }
 0x459   : > { %v2640_v42 = vpop.f32.mrb[8].mxu1 }
 0x45a   : > { %v9061_v43 = vpop.f32.mrb[9].mxu1  ;;  %v2926_v44 = vsel %vm2922_vm2, %v2640_v42, -inf }
 0x45b   : > { %2927 = vmax.xlane.f32.xlu1 %v2926_v44  ;;  %v2643_v45 = vpop.f32.mrb[10].mxu1 }
 0x45c   : > { %v9062_v46 = vpop.f32.mrb[11].mxu1 }
 0x461   : > { %v2686_v47 = vpop.f32.mrb[12].mxu1 }
 0x462   : > { %v9067_v48 = vpop.f32.mrb[13].mxu1  ;;  %v2929_v49 = vsel %vm2922_vm2, %v2686_v47, -inf }
 0x463   : > { %2930 = vmax.xlane.f32.xlu0 %v2929_v49  ;;  %v2689_v50 = vpop.f32.mrb[14].mxu1 }
 0x464   : > { %v9068_v51 = vpop.f32.mrb[15].mxu1 }
 0x469   : > { %v2732_v52 = vpop.f32.mrb[16].mxu1 }
 0x46a   : > { %v9073_v53 = vpop.f32.mrb[17].mxu1  ;;  %v2932_v54 = vsel %vm2922_vm2, %v2732_v52, -inf }
 0x46b   : > { %2933 = vmax.xlane.f32.xlu0 %v2932_v54  ;;  %v2735_v55 = vpop.f32.mrb[18].mxu1 }
 0x46c   : > { %v9074_v56 = vpop.f32.mrb[19].mxu1 }
 0x471   : > { %v2778_v57 = vpop.f32.mrb[20].mxu1 }
 0x472   : > { %v9079_v58 = vpop.f32.mrb[21].mxu1  ;;  %v2935_v59 = vsel %vm2922_vm2, %v2778_v57, -inf }
 0x473   : > { %2936 = vmax.xlane.f32.xlu1 %v2935_v59  ;;  %v2781_v60 = vpop.f32.mrb[22].mxu1 }
 0x474   : > { %v9080_v30 = vpop.f32.mrb[23].mxu1 }
 0x479   : > { %v11434_v61 = vpop.f32.mrb[24].mxu1 }
 0x47a   : > { %v9085_v62 = vpop.f32.mrb[25].mxu1  ;;  %v2938_v63 = vsel %vm2922_vm2, %v11434_v61, -inf }
 0x47b   : > { %2939 = vmax.xlane.f32.xlu0 %v2938_v63  ;;  %v2827_v0 = vpop.f32.mrb[26].mxu1 }
 0x47c   : > { %v9086_v1 = vpop.f32.mrb[27].mxu1 }
 0x481   : > { %v11438_v2 = vpop.f32.mrb[28].mxu1 }
 0x482   : > { %v9091_v3 = vpop.f32.mrb[29].mxu1  ;;  %v2941_v4 = vsel %vm2922_vm2, %v11438_v2, -inf }
 0x483   : > { %2942 = vmax.xlane.f32.xlu1 %v2941_v4  ;;  %v2873_v6 = vpop.f32.mrb[30].mxu1 }
 0x484   : > { %v9092_v16 = vpop.f32.mrb[31].mxu1 }
 0x489   : > { %v11445_v19 = vpop.f32.mrb[32].mxu1 }
 0x48a   : > { %v9097_v20 = vpop.f32.mrb[33].mxu1  ;;  %v2944_v5 = vsel %vm2922_vm2, %v11445_v19, -inf }
 0x48b   : > { %2945 = vmax.xlane.f32.xlu0 %v2944_v5  ;;  %v2919_v21 = vpop.f32.mrb[34].mxu1 }
 0x48c   : > { %v9098_v25 = vpop.f32.mrb[35].mxu1 }
 0x494   : > { %2249 = vrot.lane.b32.xlu1 %v1653_v27, %s10449_s25 }
 0x498   : > { %2252 = vrot.lane.b32.xlu1 %v1653_v27, %s10447_s3 }
 0x49c   : > { %2256 = vrot.lane.b32.xlu1 %v11458_v33, %s10448_s1 }
 0x4a1   : > { %2246 = vrot.lane.b32.xlu0 %v1653_v27, %s10448_s1 }
 0x4e0   : > { %v2925_v34 = vpop.xlane.xlu0 %2924 }
 0x4e1   : > { %v2947_v35 = vsub.f32 %v2594_v38, %v2925_v34 }
 0x4e3   : > { %v2955_v11 = vmul.f32 1.442695, %v2947_v35 }
 0x4e5   : > { %9878 = vpow2.f32 %v2955_v11 }
 0x4e8   : > { %v2928_v12 = vpop.xlane.xlu1 %2927 }
 0x4e9   : > { %v2948_v13 = vsub.f32 %v2640_v42, %v2928_v12 }
 0x4eb   : > { %v2957_v15 = vmul.f32 1.442695, %v2948_v13 }
 0x4ed   : > { %9880 = vpow2.f32 %v2957_v15 }
 0x4ef   : > { %v11463_v37 = vpop.eup %9878 }
 0x4f0   : > { %v2931_v9 = vpop.xlane.xlu0 %2930  ;;  %v2971_v36 = vsel %vm2922_vm2, %v11463_v37, 0.0 }
 0x4f1   : > { %v2949_v28 = vsub.f32 %v2686_v47, %v2931_v9  ;;  %2972 = vadd.xlane.f32.xlu1 %v2971_v36 }
 0x4f3   : > { %v2959_v39 = vmul.f32 1.442695, %v2949_v28 }
 0x4f5   : > { %9882 = vpow2.f32 %v2959_v39 }
 0x4f7   : > { %v11467_v40 = vpop.eup %9880 }
 0x4f8   : > { %v2934_v41 = vpop.xlane.xlu0 %2933  ;;  %v2974_v38 = vsel %vm2922_vm2, %v11467_v40, 0.0 }
 0x4f9   : > { %v2950_v23 = vsub.f32 %v2732_v52, %v2934_v41  ;;  %2975 = vadd.xlane.f32.xlu0 %v2974_v38 }
 0x4fb   : > { %v2961_v42 = vmul.f32 1.442695, %v2950_v23 }
 0x4fd   : > { %9884 = vpow2.f32 %v2961_v42 }
 0x4ff   : > { %v11471_v43 = vpop.eup %9882 }
 0x500   : > { %v2937_v44 = vpop.xlane.xlu1 %2936  ;;  %v2977_v45 = vsel %vm2922_vm2, %v11471_v43, 0.0 }
 0x501   : > { %v2951_v46 = vsub.f32 %v2778_v57, %v2937_v44  ;;  %2978 = vadd.xlane.f32.xlu1 %v2977_v45 }
 0x503   : > { %v2963_v47 = vmul.f32 1.442695, %v2951_v46 }
 0x505   : > { %9886 = vpow2.f32 %v2963_v47 }
 0x507   : > { %v11475_v48 = vpop.eup %9884 }
 0x508   : > { %v2980_v49 = vsel %vm2922_vm2, %v11475_v48, 0.0  ;;  %v2940_v53 = vpop.xlane.xlu0 %2939 }
 0x509   : > { %2981 = vadd.xlane.f32.xlu0 %v2980_v49  ;;  %v2952_v3 = vsub.f32 %v11434_v61, %v2940_v53 }
 0x50f   : > { %v11479_v50 = vpop.eup %9886 }
 0x510   : > { %v2943_v51 = vpop.xlane.xlu1 %2942  ;;  %v2983_v52 = vsel %vm2922_vm2, %v11479_v50, 0.0 }
 0x511   : > { %2984 = vadd.xlane.f32.xlu0 %v2983_v52  ;;  %v2953_v52 = vsub.f32 %v11438_v2, %v2943_v51 }
 0x512   : > { %2262 = vrot.lane.b32.xlu1 %v11458_v33, %s10447_s3 }
 0x514   : > { %v2250_v54 = vpop.permute.xlu1 %2249 }
 0x515   : > { %v2265_v57 = vcombine.low %v1653_v27, %v2250_v54  ;;  %v2266_v58 = vcombine.high %v1653_v27, %v2250_v54  ;;  %v2965_v27 = vmul.f32 1.442695, %v2952_v3 }
 0x517   : > { %v2273_v62 = vrot.slane %v2265_v57, %v11298_v17  ;;  %v2280_v63 = vrot.slane %v2266_v58, %v11298_v17  ;;  %9888 = vpow2.f32 %v2965_v27 }
 0x518   : > { %v2946_v55 = vpop.xlane.xlu0 %2945  ;;  %v2253_v56 = vpop.permute.xlu1 %2252 }
 0x519   : > { %v2954_v57 = vsub.f32 %v11445_v19, %v2946_v55 }
 0x51c   : > { %v2247_v59 = vpop.permute.xlu0 %2246  ;;  %v2257_v19 = vpop.permute.xlu1 %2256 }
 0x51d   : > { %v2281_v60 = vcombine.low %v2247_v59, %v2253_v56  ;;  %v2282_v30 = vcombine.high %v2247_v59, %v2253_v56  ;;  %v2967_v56 = vmul.f32 1.442695, %v2953_v52  ;;  %v2969_v59 = vmul.f32 1.442695, %v2954_v57 }
 0x51f   : > { %v2289_v0 = vrot.slane %v2281_v60, %v11298_v17  ;;  %v2296_v1 = vrot.slane %v2282_v30, %v11298_v17  ;;  %9890 = vpow2.f32 %v2967_v56 }
 0x520   : > { %9892 = vpow2.f32 %v2969_v59 }
 0x521   : > { %v2329_v4 = vcombine.low %v2273_v62, %v2289_v0  ;;  %v2330_v6 = vcombine.high %v2273_v62, %v2289_v0  ;;  %v2345_v16 = vcombine.low %v2280_v63, %v2296_v1  ;;  %v2346_v20 = vcombine.high %v2280_v63, %v2296_v1  ;;  %v11506_v54 = vpop.eup %9888 }
 0x522   : > { %v2986_v58 = vsel %vm2922_vm2, %v11506_v54, 0.0 }
 0x523   : > { %v2337_v5 = vrot.slane %v2329_v4, %v11305_v14  ;;  %v2344_v21 = vrot.slane %v2330_v6, %v11305_v14  ;;  %v2353_v25 = vrot.slane %v2345_v16, %v11305_v14  ;;  %v2360_v26 = vrot.slane %v2346_v20, %v11305_v14 }
 0x525   : > { %v8425_v32 = vcombine.low %v2337_v5, %v2344_v21  ;;  %v8427_v34 = vcombine.high %v2337_v5, %v2344_v21  ;;  %v8429_v35 = vcombine.low %v2353_v25, %v2360_v26  ;;  %v8431_v11 = vcombine.high %v2353_v25, %v2360_v26 }
 0x527   : > { %v2409_v12 = vrot.slane %v8425_v32, %v11298_v17  ;;  %v2425_v61 = vrot.slane %v8427_v34, %v11298_v17  ;;  %v2441_v13 = vrot.slane %v8429_v35, %v11298_v17  ;;  %v2457_v15 = vrot.slane %v8431_v11, %v11298_v17  ;;  %2259 = vrot.lane.b32.xlu0 %v11458_v33, %s10449_s25 }
 0x529   : > { %v2465_v9 = vcombine.low %v2409_v12, %v2425_v61  ;;  %v2497_v36 = vcombine.low %v2441_v13, %v2457_v15  ;;  %v2466_v28 = vcombine.high %v2409_v12, %v2425_v61  ;;  %v2498_v39 = vcombine.high %v2441_v13, %v2457_v15  ;;  %v11512_v60 = vpop.eup %9890 }
 0x52a   : > { %v2989_v2 = vsel %vm2922_vm2, %v11512_v60, 0.0  ;;  %v11516_v51 = vpop.eup %9892 }
 0x52b   : > { %v2473_v41 = vrot.slane %v2465_v9, %v11305_v14  ;;  %v2505_v38 = vrot.slane %v2497_v36, %v11305_v14  ;;  %v2480_v23 = vrot.slane %v2466_v28, %v11305_v14  ;;  %v2512_v42 = vrot.slane %v2498_v39, %v11305_v14 }
 0x52c   : > { %v2992_v30 = vsel %vm2922_vm2, %v11516_v51, 0.0 }
 0x52d   : > { %v2529_v44 = vcombine.low %v2473_v41, %v2505_v38  ;;  %v2530_v45 = vcombine.high %v2473_v41, %v2505_v38  ;;  %v2531_v46 = vcombine.low %v2480_v23, %v2512_v42  ;;  %v2532_v47 = vcombine.high %v2480_v23, %v2512_v42 }
 0x52f   : > { %v3019_v49 = vpack.c.bf16 %v2529_v44, %v2529_v44  ;;  %v3020_v1 = vpack.c.bf16 %v2530_v45, %v2530_v45  ;;  %v3021_v5 = vpack.c.bf16 %v2531_v46, %v2531_v46  ;;  %v3022_v32 = vpack.c.bf16 %v2532_v47, %v2532_v47 }
 0x531   : > { %v3032_v53 = vsel %vm3030_vm3, %v3019_v49, 0  ;;  %v3078_v4 = vsel %vm3030_vm3, %v3020_v1, 0  ;;  %v3124_v25 = vsel %vm3030_vm3, %v3021_v5, 0  ;;  %v3170_v11 = vsel %vm3030_vm3, %v3022_v32, 0 }
 0x532   : > { %9100 = vmatpush3.bf16.msra.mxu1 %v3032_v53 }
 0x533   : > { %9105 = vmatprep.subr.bf16.mxu1 %v10450_v31 }
 0x536   : > { %2987 = vadd.xlane.f32.xlu1 %v2986_v58 }
 0x546   : > { %2990 = vadd.xlane.f32.xlu0 %v2989_v2 }
 0x54a   : > { %2993 = vadd.xlane.f32.xlu0 %v2992_v30 }
 0x57e   : > { %v2973_v55 = vpop.xlane.xlu1 %2972 }
 0x57f   : > { %9894 = vrcp.f32 %v2973_v55 }
 0x586   : > { %v2976_v62 = vpop.xlane.xlu0 %2975 }
 0x587   : > { %9896 = vrcp.f32 %v2976_v62 }
 0x589   : > { %v9895_v63 = vpop.eup %9894 }
 0x58a   : > { %v2996_v0 = vmul.f32 %v9895_v63, %v11463_v37 }
 0x58c   : > { %v3011_v3 = vpack.c.bf16 %v2996_v0, %v2996_v0 }
 0x58e   : > { %9102 = vmatmul.mubr.msk.bf16.vlgmr.msra.gmra.mrb[36].mxu1 %vm2922_vm2, %v3011_v3  ;;  %v2979_v6 = vpop.xlane.xlu1 %2978 }
 0x58f   : > { %9106 = vmatpush3.bf16.msra.mxu1 %v3078_v4  ;;  %9898 = vrcp.f32 %v2979_v6  ;;  %9107 = vmatprep.mubr.msk.bf16.mxu1 %vm10451_vm0, %v10450_v31 }
 0x590   : > { %9111 = vmatprep.subr.bf16.mxu1 %v10450_v31 }
 0x591   : > { %v9897_v16 = vpop.eup %9896 }
 0x592   : > { %v2998_v20 = vmul.f32 %v9897_v16, %v11467_v40  ;;  %v2263_v40 = vpop.permute.xlu1 %2262 }
 0x593   : > { %v2313_v61 = vcombine.low %v2257_v19, %v2263_v40  ;;  %v2314_v13 = vcombine.high %v2257_v19, %v2263_v40 }
 0x594   : > { %v3012_v21 = vpack.c.bf16 %v2998_v20, %v2998_v20 }
 0x595   : > { %v2321_v39 = vrot.slane %v2313_v61, %v11298_v17  ;;  %v2328_v41 = vrot.slane %v2314_v13, %v11298_v17 }
 0x596   : > { %v2982_v37 = vpop.xlane.xlu0 %2981  ;;  %9108 = vmatmul.mubr.msk.bf16.vlgmr.msra.gmra.mrb[40].mxu1 %vm2922_vm2, %v3012_v21 }
 0x597   : > { %9900 = vrcp.f32 %v2982_v37  ;;  %9112 = vmatpush3.bf16.msra.mxu1 %v3124_v25  ;;  %9113 = vmatprep.mubr.msk.bf16.mxu1 %vm10451_vm0, %v10450_v31 }
 0x598   : > { %9117 = vmatprep.subr.bf16.mxu1 %v10450_v31 }
 0x599   : > { %v9899_v26 = vpop.eup %9898 }
 0x59a   : > { %v3000_v27 = vmul.f32 %v9899_v26, %v11471_v43 }
 0x59c   : > { %v3013_v34 = vpack.c.bf16 %v3000_v27, %v3000_v27 }
 0x59e   : > { %v2985_v35 = vpop.xlane.xlu0 %2984  ;;  %9114 = vmatmul.mubr.msk.bf16.vlgmr.msra.gmra.mrb[44].mxu1 %vm2922_vm2, %v3013_v34 }
 0x59f   : > { %9118 = vmatpush3.bf16.msra.mxu1 %v3170_v11  ;;  %9119 = vmatprep.mubr.msk.bf16.mxu1 %vm10451_vm0, %v10450_v31  ;;  %9902 = vrcp.f32 %v2985_v35 }
 0x5a0   : > { %9123 = vmatprep.subr.bf16.mxu1 %v10450_v31 }
 0x5a1   : > { %v9901_v12 = vpop.eup %9900 }
 0x5a2   : > { %v3002_v15 = vmul.f32 %v9901_v12, %v11475_v48  ;;  %v2260_v43 = vpop.permute.xlu0 %2259 }
 0x5a3   : > { %v2297_v9 = vcombine.low %v11458_v33, %v2260_v43  ;;  %v2298_v36 = vcombine.high %v11458_v33, %v2260_v43 }
 0x5a4   : > { %v3014_v28 = vpack.c.bf16 %v3002_v15, %v3002_v15 }
 0x5a5   : > { %v2305_v38 = vrot.slane %v2297_v9, %v11298_v17  ;;  %v2312_v23 = vrot.slane %v2298_v36, %v11298_v17 }
 0x5a6   : > { %9120 = vmatmul.mubr.msk.bf16.vlgmr.msra.gmra.mrb[48].mxu1 %vm2922_vm2, %v3014_v28 }
 0x5a7   : > { %v2361_v42 = vcombine.low %v2305_v38, %v2321_v39  ;;  %v2362_v44 = vcombine.high %v2305_v38, %v2321_v39  ;;  %v2377_v45 = vcombine.low %v2312_v23, %v2328_v41  ;;  %v2378_v48 = vcombine.high %v2312_v23, %v2328_v41  ;;  %9125 = vmatprep.mubr.msk.bf16.mxu1 %vm10451_vm0, %v10450_v31  ;;  %v9448_v23 = vld [vmem:[%s11087_s10 + $0x4] ss:$8 sps:$4 sm:$0xff]  }
 0x5a8   : > { %3906 = vmatprep.subr.bf16.mxu0 %v9448_v23 }
 0x5a9   : > { %v2369_v33 = vrot.slane %v2361_v42, %v11305_v14  ;;  %v2376_v46 = vrot.slane %v2362_v44, %v11305_v14  ;;  %v2385_v47 = vrot.slane %v2377_v45, %v11305_v14  ;;  %v2392_v49 = vrot.slane %v2378_v48, %v11305_v14  ;;  %v9903_v0 = vpop.eup %9902  ;;  %v9451_v42 = vld [vmem:[%s11087_s10 + $0x14] ss:$8 sps:$4 sm:$0xff]   ;;  %v9449_v44 = vld [vmem:[%s11087_s10 + $0x10] ss:$8 sps:$4 sm:$0xff]   ;;  %v9454_v45 = vld [vmem:[%s11087_s10 + $0x24] ss:$8 sps:$4 sm:$0xff]  }
 0x5aa   : > { %v3004_v4 = vmul.f32 %v9903_v0, %v11479_v50  ;;  %v9452_v48 = vld [vmem:[%s11087_s10 + $0x20] ss:$8 sps:$4 sm:$0xff]  }
 0x5ab   : > { %v8426_v52 = vcombine.low %v2369_v33, %v2376_v46  ;;  %v8428_v53 = vcombine.high %v2369_v33, %v2376_v46  ;;  %v8430_v56 = vcombine.low %v2385_v47, %v2392_v49  ;;  %v8432_v57 = vcombine.high %v2385_v47, %v2392_v49  ;;  %v9455_v46 = vld [vmem:[%s11087_s10 + $0x30] ss:$8 sps:$4 sm:$0xff]   ;;  %v9460_v49 = vld [vmem:[%s11087_s10 + $0x44] ss:$8 sps:$4 sm:$0xff]  }
 0x5ac   : > { %v3015_v5 = vpack.c.bf16 %v3004_v4, %v3004_v4  ;;  %v9467_v4 = vld [vmem:[%s11087_s10 + $0x70] ss:$8 sps:$4 sm:$0xff]  }
 0x5ad   : > { %v2416_v58 = vrot.slane %v8426_v52, %v11298_v17  ;;  %v2432_v59 = vrot.slane %v8428_v53, %v11298_v17  ;;  %v2448_v2 = vrot.slane %v8430_v56, %v11298_v17  ;;  %v2464_v30 = vrot.slane %v8432_v57, %v11298_v17  ;;  %v9458_v53 = vld [vmem:[%s11087_s10 + $0x40] ss:$8 sps:$4 sm:$0xff]   ;;  %v9463_v56 = vld [vmem:[%s11087_s10 + $0x54] ss:$8 sps:$4 sm:$0xff]  }
 0x5af   : > { %v2481_v19 = vcombine.low %v2416_v58, %v2432_v59  ;;  %v2513_v55 = vcombine.low %v2448_v2, %v2464_v30  ;;  %v2482_v50 = vcombine.high %v2416_v58, %v2432_v59  ;;  %v2514_v25 = vcombine.high %v2448_v2, %v2464_v30  ;;  %v9461_v59 = vld [vmem:[%s11087_s10 + $0x50] ss:$8 sps:$4 sm:$0xff]   ;;  %v9466_v30 = vld [vmem:[%s11087_s10 + $0x64] ss:$8 sps:$4 sm:$0xff]  }
 0x5b1   : > { %v2489_v62 = vrot.slane %v2481_v19, %v11305_v14  ;;  %v2521_v63 = vrot.slane %v2513_v55, %v11305_v14  ;;  %v2496_v26 = vrot.slane %v2482_v50, %v11305_v14  ;;  %v2528_v27 = vrot.slane %v2514_v25, %v11305_v14  ;;  %v9464_v55 = vld [vmem:[%s11087_s10 + $0x60] ss:$8 sps:$4 sm:$0xff]  }
 0x5b3   : > { %v2533_v1 = vcombine.low %v2489_v62, %v2521_v63  ;;  %v2534_v3 = vcombine.high %v2489_v62, %v2521_v63  ;;  %v2535_v32 = vcombine.low %v2496_v26, %v2528_v27  ;;  %v9469_v62 = vld [vmem:[%s11087_s10 + $0x74] ss:$8 sps:$4 sm:$0xff]  }
 0x5b5   : > { %v3023_v6 = vpack.c.bf16 %v2533_v1, %v2533_v1  ;;  %v3024_v20 = vpack.c.bf16 %v2534_v3, %v2534_v3  ;;  %v3025_v35 = vpack.c.bf16 %v2535_v32, %v2535_v32 }
 0x5b7   : > { %v3216_v16 = vsel %vm3030_vm3, %v3023_v6, 0  ;;  %v3262_v21 = vsel %vm3030_vm3, %v3024_v20, 0  ;;  %v3308_v61 = vsel %vm3030_vm3, %v3025_v35, 0 }
 0x5b8   : > { %9124 = vmatpush3.bf16.msra.mxu1 %v3216_v16  ;;  %v9472_v16 = vld [vmem:[%s11087_s10 + $0x84] ss:$8 sps:$4 sm:$0xff]  }
 0x5b9   : > { %9129 = vmatprep.subr.bf16.mxu1 %v10450_v31 }
 0x5bb   : > { %9126 = vmatmul.mubr.msk.bf16.vlgmr.msra.gmra.mrb[52].mxu1 %vm2922_vm2, %v3015_v5  ;;  %v9470_v5 = vld [vmem:[%s11087_s10 + $0x80] ss:$8 sps:$4 sm:$0xff]  }
 0x5bc   : > { %9130 = vmatpush3.bf16.msra.mxu1 %v3262_v21  ;;  %9131 = vmatprep.mubr.msk.bf16.mxu1 %vm10451_vm0, %v10450_v31  ;;  %v9475_v21 = vld [vmem:[%s11087_s10 + $0x94] ss:$8 sps:$4 sm:$0xff]  }
 0x5bd   : > { %9135 = vmatprep.subr.bf16.mxu1 %v10450_v31 }
 0x5c3   : > { %v2988_v37 = vpop.xlane.xlu1 %2987 }
 0x5c4   : > { %9904 = vrcp.f32 %v2988_v37 }
 0x5ce   : > { %v9905_v34 = vpop.eup %9904 }
 0x5cf   : > { %v3006_v40 = vmul.f32 %v9905_v34, %v11506_v54  ;;  %v2536_v54 = vcombine.high %v2496_v26, %v2528_v27  ;;  %v9473_v27 = vld [vmem:[%s11087_s10 + $0x90] ss:$8 sps:$4 sm:$0xff]   ;;  %v9478_v34 = vld [vmem:[%s11087_s10 + $0xa4] ss:$8 sps:$4 sm:$0xff]  }
 0x5d1   : > { %v3016_v11 = vpack.c.bf16 %v3006_v40, %v3006_v40  ;;  %v3026_v9 = vpack.c.bf16 %v2536_v54, %v2536_v54 }
 0x5d3   : > { %v2991_v12 = vpop.xlane.xlu0 %2990  ;;  %9132 = vmatmul.mubr.msk.bf16.vlgmr.msra.gmra.mrb[56].mxu1 %vm2922_vm2, %v3016_v11  ;;  %v3354_v39 = vsel %vm3030_vm3, %v3026_v9, 0  ;;  %v9476_v9 = vld [vmem:[%s11087_s10 + $0xa0] ss:$8 sps:$4 sm:$0xff]  }
 0x5d4   : > { %9906 = vrcp.f32 %v2991_v12  ;;  %9136 = vmatpush3.bf16.msra.mxu1 %v3308_v61  ;;  %9137 = vmatprep.mubr.msk.bf16.mxu1 %vm10451_vm0, %v10450_v31 }
 0x5d5   : > { %9141 = vmatprep.subr.bf16.mxu1 %v10450_v31 }
 0x5d7   : > { %v2994_v13 = vpop.xlane.xlu0 %2993 }
 0x5d8   : > { %9908 = vrcp.f32 %v2994_v13 }
 0x5de   : > { %v9907_v15 = vpop.eup %9906 }
 0x5df   : > { %v3008_v43 = vmul.f32 %v9907_v15, %v11512_v60  ;;  %v9446_v60 = vld [vmem:[%s11087_s10] ss:$8 sps:$4 sm:$0xff]  }
 0x5e0   : > { %3907 = vmatpush1.bf16.msra.mxu0 %v9446_v60 }
 0x5e1   : > { %v3017_v36 = vpack.c.bf16 %v3008_v43, %v3008_v43  ;;  %3908 = vmatprep.subr.bf16.mxu0 %v9451_v42 }
 0x5e2   : > { %v9909_v28 = vpop.eup %9908 }
 0x5e3   : > { %9138 = vmatmul.mubr.msk.bf16.vlgmr.msra.gmra.mrb[60].mxu1 %vm2922_vm2, %v3017_v36  ;;  %v3010_v41 = vmul.f32 %v9909_v28, %v11516_v51  ;;  %v9481_v36 = vld [vmem:[%s11087_s10 + $0xb4] ss:$8 sps:$4 sm:$0xff]  }
 0x5e4   : > { %9142 = vmatpush3.bf16.msra.mxu1 %v3354_v39  ;;  %9143 = vmatprep.mubr.msk.bf16.mxu1 %vm10451_vm0, %v10450_v31  ;;  %v9457_v31 = vld [vmem:[%s11087_s10 + $0x34] ss:$8 sps:$4 sm:$0xff]  }
 0x5e5   : > { %v3018_v38 = vpack.c.bf16 %v3010_v41, %v3010_v41  ;;  %3909 = vmatpush1.bf16.msra.mxu0 %v9449_v44 }
 0x5e6   : > { %3910 = vmatprep.subr.bf16.mxu0 %v9454_v45  ;;  %v9479_v45 = vld [vmem:[%s11087_s10 + $0xb0] ss:$8 sps:$4 sm:$0xff]  }
 0x5e9   : > { %3911 = vmatpush1.bf16.msra.mxu0 %v9452_v48  ;;  %v9484_v48 = vld [vmem:[%s11087_s10 + $0xc4] ss:$8 sps:$4 sm:$0xff]  }
 0x5ea   : > { %3912 = vmatprep.subr.bf16.mxu0 %v9457_v31 }
 0x5eb   : > { %9144 = vmatmul.mubr.msk.bf16.vlgmr.msra.gmra.mrb[64].mxu1 %vm2922_vm2, %v3018_v38 }
 0x5ed   : > { %3913 = vmatpush1.bf16.msra.mxu0 %v9455_v46 }
 0x5ee   : > { %3914 = vmatprep.subr.bf16.mxu0 %v9460_v49 }
 0x5f1   : > { %3915 = vmatpush1.bf16.msra.mxu0 %v9458_v53 }
 0x5f2   : > { %3916 = vmatprep.subr.bf16.mxu0 %v9463_v56  ;;  %v9482_v56 = vld [vmem:[%s11087_s10 + $0xc0] ss:$8 sps:$4 sm:$0xff]  }
 0x5f5   : > { %3917 = vmatpush1.bf16.msra.mxu0 %v9461_v59 }
 0x5f6   : > { %3918 = vmatprep.subr.bf16.mxu0 %v9466_v30 }
 0x5f9   : > { %3919 = vmatpush1.bf16.msra.mxu0 %v9464_v55 }
 0x5fa   : > { %3920 = vmatprep.subr.bf16.mxu0 %v9469_v62 }
 0x5fd   : > { %3921 = vmatpush1.bf16.msra.mxu0 %v9467_v4 }
 0x5fe   : > { %3922 = vmatprep.subr.bf16.mxu0 %v9472_v16 }
 0x601   : > { %3923 = vmatpush1.bf16.msra.mxu0 %v9470_v5 }
 0x602   : > { %3924 = vmatprep.subr.bf16.mxu0 %v9475_v21 }
 0x605   : > { %3925 = vmatpush1.bf16.msra.mxu0 %v9473_v27 }
 0x606   : > { %3926 = vmatprep.subr.bf16.mxu0 %v9478_v34 }
 0x609   : > { %3927 = vmatpush1.bf16.msra.mxu0 %v9476_v9 }
 0x60a   : > { %3928 = vmatprep.subr.bf16.mxu0 %v9481_v36 }
 0x60d   : > { %3929 = vmatpush1.bf16.msra.mxu0 %v9479_v45 }
 0x60e   : > { %3930 = vmatprep.subr.bf16.mxu0 %v9484_v48 }
 0x611   : > { %3931 = vmatpush1.bf16.msra.mxu0 %v9482_v56 }
 0x661   : > { %v3068_v51 = vpop.f32.mrb[36].mxu1 }
 0x662   : > { %v9103_v33 = vpop.f32.mrb[37].mxu1 }
 0x663   : > { %v3071_v47 = vpop.f32.mrb[38].mxu1 }
 0x664   : > { %v9104_v52 = vpop.f32.mrb[39].mxu1 }
 0x669   : > { %v3114_v57 = vpop.f32.mrb[40].mxu1 }
 0x66a   : > { %v9109_v58 = vpop.f32.mrb[41].mxu1 }
 0x66b   : > { %v3117_v2 = vpop.f32.mrb[42].mxu1 }
 0x66c   : > { %v9110_v19 = vpop.f32.mrb[43].mxu1 }
 0x671   : > { %v3160_v63 = vpop.f32.mrb[44].mxu1 }
 0x672   : > { %v3396_v0 = vcombine.low %v3068_v51, %v3160_v63  ;;  %v3397_v1 = vcombine.high %v3068_v51, %v3160_v63  ;;  %v9115_v3 = vpop.f32.mrb[45].mxu1 }
 0x673   : > { %v3163_v6 = vpop.f32.mrb[46].mxu1 }
 0x674   : > { %v9116_v20 = vpop.f32.mrb[47].mxu1  ;;  %v3404_v40 = vrot.slane %v3396_v0, %v11298_v17  ;;  %v3411_v35 = vrot.slane %v3397_v1, %v11298_v17  ;;  %v9485_v0 = vld [vmem:[%s11087_s10 + $0xd0] ss:$8 sps:$4 sm:$0xff]  }
 0x679   : > { %v3206_v37 = vpop.f32.mrb[48].mxu1 }
 0x67a   : > { %v3412_v50 = vcombine.low %v3114_v57, %v3206_v37  ;;  %v3413_v25 = vcombine.high %v3114_v57, %v3206_v37  ;;  %v9121_v26 = vpop.f32.mrb[49].mxu1  ;;  %v9487_v57 = vld [vmem:[%s11087_s10 + $0xd4] ss:$8 sps:$4 sm:$0xff]  }
 0x67b   : > { %v3209_v32 = vpop.f32.mrb[50].mxu1  ;;  %3932 = vmatprep.subr.bf16.mxu0 %v9487_v57 }
 0x67c   : > { %v3420_v11 = vrot.slane %v3412_v50, %v11298_v17  ;;  %v3427_v12 = vrot.slane %v3413_v25, %v11298_v17  ;;  %v9122_v61 = vpop.f32.mrb[51].mxu1  ;;  %3933 = vmatpush1.bf16.msra.mxu0 %v9485_v0 }
 0x67e   : > { %v3460_v13 = vcombine.low %v3404_v40, %v3420_v11  ;;  %v3461_v54 = vcombine.high %v3404_v40, %v3420_v11  ;;  %v3476_v15 = vcombine.low %v3411_v35, %v3427_v12  ;;  %v3477_v43 = vcombine.high %v3411_v35, %v3427_v12 }
 0x680   : > { %v3468_v28 = vrot.slane %v3460_v13, %v11305_v14  ;;  %v3475_v39 = vrot.slane %v3461_v54, %v11305_v14  ;;  %v3484_v41 = vrot.slane %v3476_v15, %v11305_v14  ;;  %v3491_v38 = vrot.slane %v3477_v43, %v11305_v14 }
 0x682   : > { %v8449_v60 = vcombine.low %v3468_v28, %v3475_v39  ;;  %v8451_v23 = vcombine.high %v3468_v28, %v3475_v39  ;;  %v8453_v42 = vcombine.low %v3484_v41, %v3491_v38  ;;  %v8455_v44 = vcombine.high %v3484_v41, %v3491_v38 }
 0x684   : > { %v3540_v31 = vrot.slane %v8449_v60, %v11298_v17  ;;  %v3556_v51 = vrot.slane %v8451_v23, %v11298_v17  ;;  %v3572_v33 = vrot.slane %v8453_v42, %v11298_v17  ;;  %v3588_v46 = vrot.slane %v8455_v44, %v11298_v17 }
 0x686   : > { %v3597_v47 = vcombine.high %v3540_v31, %v3556_v51  ;;  %v3629_v49 = vcombine.high %v3572_v33, %v3588_v46  ;;  %v3596_v52 = vcombine.low %v3540_v31, %v3556_v51  ;;  %v3628_v53 = vcombine.low %v3572_v33, %v3588_v46  ;;  %v9488_v31 = vld [vmem:[%s11087_s10 + $0xe0] ss:$8 sps:$4 sm:$0xff]   ;;  %v9490_v51 = vld [vmem:[%s11087_s10 + $0xe4] ss:$8 sps:$4 sm:$0xff]  }
 0x687   : > { %3934 = vmatprep.subr.bf16.mxu0 %v9490_v51 }
 0x688   : > { %v11621_v58 = vrot.slane %v3597_v47, %v11305_v14  ;;  %v11624_v59 = vrot.slane %v3629_v49, %v11305_v14  ;;  %v11627_v2 = vrot.slane %v3596_v52, %v11305_v14  ;;  %v11630_v30 = vrot.slane %v3628_v53, %v11305_v14  ;;  %3935 = vmatpush1.bf16.msra.mxu0 %v9488_v31 }
 0x68a   : > { %v3662_v19 = vcombine.low %v11621_v58, %v11624_v59  ;;  %v3660_v55 = vcombine.low %v11627_v2, %v11630_v30  ;;  %v3661_v62 = vcombine.high %v11627_v2, %v11630_v30  ;;  %v3663_v63 = vcombine.high %v11621_v58, %v11624_v59  ;;  %v3734_v2 = vld [vmem:[%s12499_s22] sm:$0x3] }
 0x68b   : > { %v3739_v30 = vrot.slane %v3734_v2, %v11211_v10 }
 0x68e   : > { %v3252_v1 = vpop.f32.mrb[52].mxu1 }
 0x68f   : > { %v9127_v3 = vpop.f32.mrb[53].mxu1 }
 0x690   : > { %v3255_v4 = vpop.f32.mrb[54].mxu1 }
 0x691   : > { %v9128_v6 = vpop.f32.mrb[55].mxu1 }
 0x692   : > { %v9491_v6 = vld [vmem:[%s11087_s10 + $0xf0] ss:$8 sps:$4 sm:$0xff]  }
 0x6a6   : > { %v3298_v16 = vpop.f32.mrb[56].mxu1 }
 0x6a7   : > { %v9133_v20 = vpop.f32.mrb[57].mxu1 }
 0x6a8   : > { %v3301_v5 = vpop.f32.mrb[58].mxu1 }
 0x6a9   : > { %v9134_v21 = vpop.f32.mrb[59].mxu1 }
 0x6b6   : > { %v3344_v37 = vpop.f32.mrb[60].mxu1 }
 0x6b7   : > { %v3428_v50 = vcombine.low %v3252_v1, %v3344_v37  ;;  %v3429_v25 = vcombine.high %v3252_v1, %v3344_v37  ;;  %v9139_v26 = vpop.f32.mrb[61].mxu1 }
 0x6b8   : > { %v3347_v27 = vpop.f32.mrb[62].mxu1 }
 0x6b9   : > { %v9140_v32 = vpop.f32.mrb[63].mxu1  ;;  %v3436_v61 = vrot.slane %v3428_v50, %v11298_v17  ;;  %v3443_v13 = vrot.slane %v3429_v25, %v11298_v17 }
 0x6be   : > { %v3390_v34 = vpop.f32.mrb[64].mxu1 }
 0x6bf   : > { %v3444_v40 = vcombine.low %v3298_v16, %v3390_v34  ;;  %v3445_v35 = vcombine.high %v3298_v16, %v3390_v34  ;;  %v9145_v11 = vpop.f32.mrb[65].mxu1  ;;  %v9493_v16 = vld [vmem:[%s11087_s10 + $0xf4] ss:$8 sps:$4 sm:$0xff]  }
 0x6c0   : > { %v3393_v12 = vpop.f32.mrb[66].mxu1  ;;  %3936 = vmatprep.subr.bf16.mxu0 %v9493_v16 }
 0x6c1   : > { %v3452_v54 = vrot.slane %v3444_v40, %v11298_v17  ;;  %v3459_v15 = vrot.slane %v3445_v35, %v11298_v17  ;;  %v9146_v43 = vpop.f32.mrb[67].mxu1  ;;  %3937 = vmatpush1.bf16.msra.mxu0 %v9491_v6  ;;  %v4037_v6 = vld [vmem:[%s11104_s20 + $0x148] sm:$0xff] }
 0x6c3   : > { %v3492_v9 = vcombine.low %v3436_v61, %v3452_v54  ;;  %v3493_v36 = vcombine.high %v3436_v61, %v3452_v54  ;;  %v3508_v28 = vcombine.low %v3443_v13, %v3459_v15  ;;  %v3509_v39 = vcombine.high %v3443_v13, %v3459_v15 }
 0x6c5   : > { %v3500_v41 = vrot.slane %v3492_v9, %v11305_v14  ;;  %v3507_v38 = vrot.slane %v3493_v36, %v11305_v14  ;;  %v3516_v60 = vrot.slane %v3508_v28, %v11305_v14  ;;  %v3523_v23 = vrot.slane %v3509_v39, %v11305_v14  ;;  %v9914_v39 = vld [vmem:[#allocation2] sm:$0xff] }
 0x6c7   : > { %v8450_v42 = vcombine.low %v3500_v41, %v3507_v38  ;;  %v8452_v44 = vcombine.high %v3500_v41, %v3507_v38  ;;  %v8454_v45 = vcombine.low %v3516_v60, %v3523_v23  ;;  %v8456_v48 = vcombine.high %v3516_v60, %v3523_v23  ;;  %v9915_v60 = vld [vmem:[#allocation2 + $0x8] sm:$0xff] }
 0x6c9   : > { %v3547_v33 = vrot.slane %v8450_v42, %v11298_v17  ;;  %v3563_v46 = vrot.slane %v8452_v44, %v11298_v17  ;;  %v3579_v47 = vrot.slane %v8454_v45, %v11298_v17  ;;  %v3595_v49 = vrot.slane %v8456_v48, %v11298_v17  ;;  %v3996_v44 = vld [vmem:[%s11104_s20] sm:$0xff]  ;;  %v3997_v48 = vld [vmem:[%s11104_s20 + $0x8] sm:$0xff] }
 0x6ca   : > { %v4004_v45 = vld [vmem:[%s11104_s20 + $0x40] sm:$0xff] }
 0x6cb   : > { %v3613_v52 = vcombine.high %v3547_v33, %v3563_v46  ;;  %v3645_v53 = vcombine.high %v3579_v47, %v3595_v49  ;;  %v3612_v56 = vcombine.low %v3547_v33, %v3563_v46  ;;  %v3644_v57 = vcombine.low %v3579_v47, %v3595_v49  ;;  %v4005_v33 = vld [vmem:[%s11104_s20 + $0x48] sm:$0xff]  ;;  %v4012_v46 = vld [vmem:[%s11104_s20 + $0x80] sm:$0xff] }
 0x6cc   : > { %v8489_v31 = vcombine.low %v3996_v44, %v4004_v45  ;;  %v8490_v51 = vcombine.high %v3996_v44, %v4004_v45  ;;  %v4020_v47 = vld [vmem:[%s11104_s20 + $0xc0] sm:$0xff]  ;;  %v8491_v49 = vcombine.low %v3997_v48, %v4005_v33  ;;  %v4109_v45 = vld [vmem:[%s11104_s20 + $0x388] sm:$0xff] }
 0x6cd   : > { %v3627_v0 = vrot.slane %v3613_v52, %v11305_v14  ;;  %v3659_v1 = vrot.slane %v3645_v53, %v11305_v14  ;;  %v3620_v3 = vrot.slane %v3612_v56, %v11305_v14  ;;  %v3652_v4 = vrot.slane %v3644_v57, %v11305_v14  ;;  %v4013_v56 = vld [vmem:[%s11104_s20 + $0x88] sm:$0xff]  ;;  %v4116_v44 = vld [vmem:[%s11104_s20 + $0x3c0] sm:$0xff] }
 0x6ce   : > { %v8492_v52 = vcombine.high %v3997_v48, %v4005_v33  ;;  %v8506_v53 = vcombine.high %v4012_v46, %v4020_v47  ;;  %v4021_v57 = vld [vmem:[%s11104_s20 + $0xc8] sm:$0xff]  ;;  %5616 = vmatprep.subr.bf16.mxu1 %v8490_v51  ;;  %v8505_v16 = vcombine.low %v4012_v46, %v4020_v47  ;;  %v4124_v47 = vld [vmem:[%s11104_s20 + $0x400] sm:$0xff] }
 0x6cf   : > { %v3666_v20 = vcombine.low %v3627_v0, %v3659_v1  ;;  %v3665_v5 = vcombine.high %v3620_v3, %v3652_v4  ;;  %v3664_v21 = vcombine.low %v3620_v3, %v3652_v4  ;;  %v3667_v17 = vcombine.high %v3627_v0, %v3659_v1  ;;  %v4028_v0 = vld [vmem:[%s11104_s20 + $0x100] sm:$0xff]  ;;  %v4029_v4 = vld [vmem:[%s11104_s20 + $0x108] sm:$0xff]  ;;  %5617 = vmatpush1.bf16.msra.mxu1 %v8489_v31 }
 0x6d0   : > { %v8508_v1 = vcombine.high %v4013_v56, %v4021_v57  ;;  %v4036_v3 = vld [vmem:[%s11104_s20 + $0x140] sm:$0xff]  ;;  %5657 = vmatprep.subr.bf16.mxu0 %v8492_v52  ;;  %5618 = vmatprep.subr.bf16.mxu1 %v8506_v53  ;;  %v4117_v48 = vld [vmem:[%s11104_s20 + $0x3c8] sm:$0xff] }
 0x6d1   : > { %v9292_v37 = vpack.i.bf16 %v3662_v19, %v3666_v20  ;;  %v9287_v50 = vpack.i.bf16 %v3661_v62, %v3665_v5  ;;  %v9297_v14 = vpack.i.bf16 %v3663_v63, %v3667_v17  ;;  %v8507_v20 = vcombine.low %v4013_v56, %v4021_v57  ;;  %v4044_v17 = vld [vmem:[%s11104_s20 + $0x180] sm:$0xff]  ;;  %v4125_v52 = vld [vmem:[%s11104_s20 + $0x408] sm:$0xff] }
 0x6d2   : > { %v8522_v5 = vcombine.high %v4028_v0, %v4036_v3  ;;  %v8604_v46 = vcombine.high %v4109_v45, %v4117_v48  ;;  %v4133_v53 = vld [vmem:[%s11104_s20 + $0x448] sm:$0xff]  ;;  %v8603_v57 = vcombine.low %v4109_v45, %v4117_v48 }
 0x6d3   : > { %9293 = vrot.lane.b32.xlu0 %v9292_v37, %s10449_s25  ;;  %9288 = vrot.lane.b32.xlu1 %v9287_v50, %s10447_s3  ;;  %v4052_v37 = vld [vmem:[%s11104_s20 + $0x1c0] sm:$0xff]  ;;  %v4045_v50 = vld [vmem:[%s11104_s20 + $0x188] sm:$0xff] }
 0x6d4   : > { %5619 = vmatpush1.bf16.msra.mxu1 %v8505_v16  ;;  %v4149_v16 = vld [vmem:[%s11104_s20 + $0x4c8] sm:$0xff] }
 0x6d5   : > { %5620 = vmatprep.subr.bf16.mxu1 %v8522_v5  ;;  %v8619_v5 = vcombine.low %v4125_v52, %v4133_v53  ;;  %v4205_v45 = vld [vmem:[%s11104_s20 + $0x688] sm:$0xff] }
 0x6d7   : > { %9298 = vrot.lane.b32.xlu1 %v9297_v14, %s10448_s1  ;;  %v4053_v14 = vld [vmem:[%s11104_s20 + $0x1c8] sm:$0xff] }
 0x745   : > { %v9294_v25 = vpop.permute.xlu0 %9293  ;;  %v9289_v26 = vpop.permute.xlu1 %9288 }
 0x746   : > { %v9291_v27 = vunpack.i.h.bf16 %v9289_v26  ;;  %v9290_v32 = vunpack.i.l.bf16 %v9289_v26  ;;  %v9296_v34 = vunpack.i.h.bf16 %v9294_v25  ;;  %v9295_v19 = vunpack.i.l.bf16 %v9294_v25 }
 0x747   : > { %v8521_v25 = vcombine.low %v4028_v0, %v4036_v3  ;;  %v8523_v26 = vcombine.low %v4029_v4, %v4037_v6  ;;  %v4140_v3 = vld [vmem:[%s11104_s20 + $0x480] sm:$0xff] }
 0x748   : > { %v3692_v62 = vsel %vm2553_vm1, %v3660_v55, %v9291_v27  ;;  %v3697_v58 = vsel %vm2553_vm1, %v3664_v21, %v9290_v32  ;;  %v3743_v55 = vrot.slane %v3734_v2, %v11229_v24  ;;  %v8524_v21 = vcombine.high %v4029_v4, %v4037_v6  ;;  %v4148_v4 = vld [vmem:[%s11104_s20 + $0x4c0] sm:$0xff]  ;;  %v4141_v6 = vld [vmem:[%s11104_s20 + $0x488] sm:$0xff] }
 0x749   : > { %v9299_v59 = vpop.permute.xlu1 %9298  ;;  %v3694_v35 = vsel %vm3693_vm4, %v3692_v62, %v9296_v34  ;;  %v3698_v11 = vsel %vm3693_vm4, %v3697_v58, %v9295_v19  ;;  %v8538_v27 = vcombine.high %v4044_v17, %v4052_v37  ;;  %v8540_v32 = vcombine.high %v4045_v50, %v4053_v14  ;;  %v4060_v34 = vld [vmem:[%s11104_s20 + $0x200] sm:$0xff]  ;;  %v4061_v62 = vld [vmem:[%s11104_s20 + $0x208] sm:$0xff]  ;;  %5621 = vmatpush1.bf16.msra.mxu1 %v8521_v25 }
 0x74a   : > { %v9301_v63 = vunpack.i.h.bf16 %v9299_v59  ;;  %v9300_v40 = vunpack.i.l.bf16 %v9299_v59  ;;  %v4068_v19 = vld [vmem:[%s11104_s20 + $0x240] sm:$0xff]  ;;  %v4069_v58 = vld [vmem:[%s11104_s20 + $0x248] sm:$0xff]  ;;  %v8537_v59 = vcombine.low %v4044_v17, %v4052_v37  ;;  %v8636_v17 = vcombine.high %v4141_v6, %v4149_v16 }
 0x74b   : > { %5622 = vmatprep.subr.bf16.mxu1 %v8538_v27  ;;  %v8555_v2 = vcombine.low %v4061_v62, %v4069_v58  ;;  %v4156_v37 = vld [vmem:[%s11104_s20 + $0x500] sm:$0xff]  ;;  %v4165_v25 = vld [vmem:[%s11104_s20 + $0x548] sm:$0xff]  ;;  %v8635_v27 = vcombine.low %v4141_v6, %v4149_v16 }
 0x74c   : > { %v3696_v12 = vsel %vm3695_vm5, %v3694_v35, %v9301_v63  ;;  %v3699_v61 = vsel %vm3695_vm5, %v3698_v11, %v9300_v40  ;;  %v8539_v63 = vcombine.low %v4045_v50, %v4053_v14  ;;  %v8554_v40 = vcombine.high %v4060_v34, %v4068_v19  ;;  %v4076_v11 = vld [vmem:[%s11104_s20 + $0x280] sm:$0xff]  ;;  %v4157_v14 = vld [vmem:[%s11104_s20 + $0x508] sm:$0xff] }
 0x74d   : > { %v3700_v13 = vpack.c.bf16 %v3696_v12, %v3696_v12  ;;  %v3701_v54 = vpack.c.bf16 %v3699_v61, %v3699_v61  ;;  %v8556_v35 = vcombine.high %v4061_v62, %v4069_v58  ;;  %v4084_v12 = vld [vmem:[%s11104_s20 + $0x2c0] sm:$0xff]  ;;  %v4077_v61 = vld [vmem:[%s11104_s20 + $0x288] sm:$0xff]  ;;  %5623 = vmatpush1.bf16.msra.mxu1 %v8537_v59  ;;  %v8651_v62 = vcombine.low %v4157_v14, %v4165_v25 }
 0x74e   : > { %5624 = vmatprep.subr.bf16.mxu1 %v8554_v40  ;;  %v4164_v50 = vld [vmem:[%s11104_s20 + $0x540] sm:$0xff]  ;;  %v4237_v6 = vld [vmem:[%s11104_s20 + $0x788] sm:$0xff] }
 0x74f   : > { %3938 = vmatprep.mubr.bf16.mxu0 %v3701_v54  ;;  %v8553_v54 = vcombine.low %v4060_v34, %v4068_v19  ;;  %v8652_v34 = vcombine.high %v4157_v14, %v4165_v25  ;;  %v8649_v19 = vcombine.low %v4156_v37, %v4164_v50  ;;  %v3999_v14 = vld [vmem:[%s11104_s20 + $0x18] sm:$0xff] }
 0x750   : > { %3939 = vmatmul.mubr.bf16.vlgmr.msra.gmra.mrb[8].mxu0 %v3700_v13  ;;  %v4085_v13 = vld [vmem:[%s11104_s20 + $0x2c8] sm:$0xff] }
 0x751   : > { %5658 = vmatpush1.bf16.msra.mxu0 %v8491_v49  ;;  %5625 = vmatpush1.bf16.msra.mxu1 %v8553_v54  ;;  %v4132_v49 = vld [vmem:[%s11104_s20 + $0x440] sm:$0xff]  ;;  %v4173_v54 = vld [vmem:[%s11104_s20 + $0x588] sm:$0xff] }
 0x752   : > { %5659 = vmatprep.subr.bf16.mxu0 %v8508_v1  ;;  %v8618_v0 = vcombine.high %v4124_v47, %v4132_v49  ;;  %v8620_v1 = vcombine.high %v4125_v52, %v4133_v53  ;;  %v4221_v52 = vld [vmem:[%s11104_s20 + $0x708] sm:$0xff] }
 0x755   : > { %5660 = vmatpush1.bf16.msra.mxu0 %v8507_v20  ;;  %v8617_v20 = vcombine.low %v4124_v47, %v4132_v49  ;;  %v4220_v47 = vld [vmem:[%s11104_s20 + $0x700] sm:$0xff] }
 0x756   : > { %5661 = vmatprep.subr.bf16.mxu0 %v8524_v21  ;;  %v8634_v21 = vcombine.high %v4140_v3, %v4148_v4  ;;  %v4228_v49 = vld [vmem:[%s11104_s20 + $0x740] sm:$0xff] }
 0x757   : > { %v8714_v53 = vcombine.high %v4220_v47, %v4228_v49 }
 0x759   : > { %5662 = vmatpush1.bf16.msra.mxu0 %v8523_v26  ;;  %v8633_v26 = vcombine.low %v4140_v3, %v4148_v4  ;;  %v4236_v3 = vld [vmem:[%s11104_s20 + $0x780] sm:$0xff] }
 0x75a   : > { %5663 = vmatprep.subr.bf16.mxu0 %v8540_v32  ;;  %v8650_v32 = vcombine.high %v4156_v37, %v4164_v50  ;;  %v4244_v4 = vld [vmem:[%s11104_s20 + $0x7c0] sm:$0xff]  ;;  %v3998_v37 = vld [vmem:[%s11104_s20 + $0x10] sm:$0xff] }
 0x75b   : > { %v8729_v16 = vcombine.low %v4236_v3, %v4244_v4  ;;  %v4006_v50 = vld [vmem:[%s11104_s20 + $0x50] sm:$0xff] }
 0x75c   : > { %v8493_v25 = vcombine.low %v3998_v37, %v4006_v50 }
 0x75d   : > { %5664 = vmatpush1.bf16.msra.mxu0 %v8539_v63 }
 0x75e   : > { %5665 = vmatprep.subr.bf16.mxu0 %v8556_v35 }
 0x761   : > { %5666 = vmatpush1.bf16.msra.mxu0 %v8555_v2  ;;  %v4181_v2 = vld [vmem:[%s11104_s20 + $0x5c8] sm:$0xff] }
 0x823   : > { %v3940_v15 = vpop.f32.mrb[8].mxu0 }
 0x824   : > { %v3941_v43 = vadd.f32 %v3940_v15, %v3739_v30  ;;  %v3942_v9 = vpop.f32.mrb[9].mxu0  ;;  %v8570_v30 = vcombine.high %v4076_v11, %v4084_v12  ;;  %v4092_v15 = vld [vmem:[%s11104_s20 + $0x300] sm:$0xff] }
 0x825   : > { %v3943_v36 = vadd.f32 %v3942_v9, %v3743_v55  ;;  %v3944_v28 = vpop.f32.mrb[10].mxu0  ;;  %v8572_v55 = vcombine.high %v4077_v61, %v4085_v13  ;;  %v4093_v9 = vld [vmem:[%s11104_s20 + $0x308] sm:$0xff] }
 0x826   : > { %v11682_v41 = vadd.f32 %v9914_v39, %v3941_v43  ;;  %v3945_v38 = vpop.f32.mrb[11].mxu0  ;;  %v4100_v43 = vld [vmem:[%s11104_s20 + $0x340] sm:$0xff]  ;;  %v8569_v28 = vcombine.low %v4076_v11, %v4084_v12  ;;  %5626 = vmatprep.subr.bf16.mxu1 %v8570_v30  ;;  %v8571_v39 = vcombine.low %v4077_v61, %v4085_v13 }
 0x827   : > { %v11684_v23 = vadd.f32 %v9915_v60, %v3943_v36  ;;  %v4101_v36 = vld [vmem:[%s11104_s20 + $0x348] sm:$0xff]  ;;  %v8586_v38 = vcombine.high %v4092_v15, %v4100_v43  ;;  %5667 = vmatprep.subr.bf16.mxu0 %v8572_v55  ;;  %v8585_v31 = vcombine.low %v4092_v15, %v4100_v43  ;;  %v4172_v61 = vld [vmem:[%s11104_s20 + $0x580] sm:$0xff]  ;;  %v8668_v55 = vcombine.high %v4173_v54, %v4181_v2 }
 0x828   : > { %v8588_v60 = vcombine.high %v4093_v9, %v4101_v36  ;;  %5627 = vmatpush1.bf16.msra.mxu1 %v8569_v28  ;;  %5668 = vmatpush1.bf16.msra.mxu0 %v8571_v39  ;;  %v8587_v51 = vcombine.low %v4093_v9, %v4101_v36  ;;  %v4180_v13 = vld [vmem:[%s11104_s20 + $0x5c0] sm:$0xff]  ;;  %v4189_v9 = vld [vmem:[%s11104_s20 + $0x608] sm:$0xff] }
 0x829   : > { %v3951_v42 = vadd.f32 %v11684_v23, %v11682_v41  ;;  %5628 = vmatprep.subr.bf16.mxu1 %v8586_v38  ;;  %v8665_v30 = vcombine.low %v4172_v61, %v4180_v13  ;;  %v4188_v15 = vld [vmem:[%s11104_s20 + $0x600] sm:$0xff]  ;;  %v4197_v28 = vld [vmem:[%s11104_s20 + $0x648] sm:$0xff] }
 0x82a   : > { %5669 = vmatprep.subr.bf16.mxu0 %v8588_v60  ;;  %v4196_v43 = vld [vmem:[%s11104_s20 + $0x640] sm:$0xff]  ;;  %v8683_v38 = vcombine.low %v4189_v9, %v4197_v28  ;;  %v8684_v60 = vcombine.high %v4189_v9, %v4197_v28  ;;  %v4022_v9 = vld [vmem:[%s11104_s20 + $0xd0] sm:$0xff]  ;;  %v4023_v28 = vld [vmem:[%s11104_s20 + $0xd8] sm:$0xff] }
 0x82b   : > { %3952 = vadd.xlane.f32.xlu1 %v3951_v42  ;;  %v4108_v42 = vld [vmem:[%s11104_s20 + $0x380] sm:$0xff]  ;;  %v8682_v36 = vcombine.high %v4188_v15, %v4196_v43  ;;  %v8681_v39 = vcombine.low %v4188_v15, %v4196_v43  ;;  %v4014_v43 = vld [vmem:[%s11104_s20 + $0x90] sm:$0xff] }
 0x82c   : > { %v8602_v33 = vcombine.high %v4108_v42, %v4116_v44  ;;  %5629 = vmatpush1.bf16.msra.mxu1 %v8585_v31  ;;  %v8601_v56 = vcombine.low %v4108_v42, %v4116_v44  ;;  %5670 = vmatpush1.bf16.msra.mxu0 %v8587_v51  ;;  %v4204_v42 = vld [vmem:[%s11104_s20 + $0x680] sm:$0xff]  ;;  %v4213_v31 = vld [vmem:[%s11104_s20 + $0x6c8] sm:$0xff] }
 0x82d   : > { %5671 = vmatprep.subr.bf16.mxu0 %v8604_v46  ;;  %v4212_v44 = vld [vmem:[%s11104_s20 + $0x6c0] sm:$0xff]  ;;  %v8700_v46 = vcombine.high %v4205_v45, %v4213_v31 }
 0x82e   : > { %5630 = vmatprep.subr.bf16.mxu1 %v8602_v33  ;;  %v8698_v48 = vcombine.high %v4204_v42, %v4212_v44  ;;  %v8697_v51 = vcombine.low %v4204_v42, %v4212_v44  ;;  %v8699_v33 = vcombine.low %v4205_v45, %v4213_v31  ;;  %v4038_v42 = vld [vmem:[%s11104_s20 + $0x150] sm:$0xff]  ;;  %v4031_v44 = vld [vmem:[%s11104_s20 + $0x118] sm:$0xff] }
 0x82f   : > { %v4039_v45 = vld [vmem:[%s11104_s20 + $0x158] sm:$0xff] }
 0x830   : > { %5631 = vmatpush1.bf16.msra.mxu1 %v8601_v56  ;;  %5672 = vmatpush1.bf16.msra.mxu0 %v8603_v57  ;;  %v4229_v56 = vld [vmem:[%s11104_s20 + $0x748] sm:$0xff]  ;;  %v8713_v57 = vcombine.low %v4220_v47, %v4228_v49  ;;  %v4054_v47 = vld [vmem:[%s11104_s20 + $0x1d0] sm:$0xff]  ;;  %v4047_v49 = vld [vmem:[%s11104_s20 + $0x198] sm:$0xff] }
 0x831   : > { %5632 = vmatprep.subr.bf16.mxu1 %v8618_v0  ;;  %5673 = vmatprep.subr.bf16.mxu0 %v8620_v1  ;;  %v8715_v0 = vcombine.low %v4221_v52, %v4229_v56  ;;  %v8716_v1 = vcombine.high %v4221_v52, %v4229_v56  ;;  %v4055_v52 = vld [vmem:[%s11104_s20 + $0x1d8] sm:$0xff]  ;;  %v8527_v56 = vcombine.low %v4031_v44, %v4039_v45 }
 0x834   : > { %5633 = vmatpush1.bf16.msra.mxu1 %v8617_v20  ;;  %5674 = vmatpush1.bf16.msra.mxu0 %v8619_v5  ;;  %v8730_v20 = vcombine.high %v4236_v3, %v4244_v4  ;;  %v4245_v5 = vld [vmem:[%s11104_s20 + $0x7c8] sm:$0xff]  ;;  %v4070_v3 = vld [vmem:[%s11104_s20 + $0x250] sm:$0xff]  ;;  %v4063_v4 = vld [vmem:[%s11104_s20 + $0x218] sm:$0xff] }
 0x835   : > { %5634 = vmatprep.subr.bf16.mxu1 %v8634_v21  ;;  %5675 = vmatprep.subr.bf16.mxu0 %v8636_v17  ;;  %v8731_v21 = vcombine.low %v4237_v6, %v4245_v5  ;;  %v8732_v17 = vcombine.high %v4237_v6, %v4245_v5  ;;  %v4071_v6 = vld [vmem:[%s11104_s20 + $0x258] sm:$0xff] }
 0x838   : > { %5635 = vmatpush1.bf16.msra.mxu1 %v8633_v26  ;;  %5676 = vmatpush1.bf16.msra.mxu0 %v8635_v27  ;;  %v8494_v26 = vcombine.high %v3998_v37, %v4006_v50  ;;  %v4007_v27 = vld [vmem:[%s11104_s20 + $0x58] sm:$0xff]  ;;  %v4086_v37 = vld [vmem:[%s11104_s20 + $0x2d0] sm:$0xff] }
 0x839   : > { %5636 = vmatprep.subr.bf16.mxu1 %v8650_v32  ;;  %5677 = vmatprep.subr.bf16.mxu0 %v8652_v34  ;;  %v8495_v32 = vcombine.low %v3999_v14, %v4007_v27  ;;  %v8496_v34 = vcombine.high %v3999_v14, %v4007_v27  ;;  %v4079_v50 = vld [vmem:[%s11104_s20 + $0x298] sm:$0xff] }
 0x83a   : > { %v4087_v14 = vld [vmem:[%s11104_s20 + $0x2d8] sm:$0xff] }
 0x83c   : > { %5637 = vmatpush1.bf16.msra.mxu1 %v8649_v19  ;;  %5678 = vmatpush1.bf16.msra.mxu0 %v8651_v62 }
 0x83d   : > { %5679 = vmatprep.subr.bf16.mxu0 %v8668_v55 }
 0x8b8   : > { %v3953_v58 = vpop.xlane.xlu1 %3952 }
 0x8b9   : > { %v3955_v59 = vmul.f32 0.00390625, %v3953_v58 }
 0x8bb   : > { %v11733_v63 = vsub.f32 %v11682_v41, %v3955_v59  ;;  %v11736_v40 = vsub.f32 %v11684_v23, %v3955_v59  ;;  %v8666_v41 = vcombine.high %v4172_v61, %v4180_v13  ;;  %v8667_v23 = vcombine.low %v4173_v54, %v4181_v2  ;;  %v3949_v59 = vld [vmem:[%s12500_s24] sm:$0x3] }
 0x8bd   : > { %v3958_v35 = vmul.f32 %v11733_v63, %v11733_v63  ;;  %v3959_v11 = vmul.f32 %v11736_v40, %v11736_v40  ;;  %5638 = vmatprep.subr.bf16.mxu1 %v8666_v41  ;;  %5680 = vmatpush1.bf16.msra.mxu0 %v8667_v23 }
 0x8be   : > { %5639 = vmatpush1.bf16.msra.mxu1 %v8665_v30  ;;  %5681 = vmatprep.subr.bf16.mxu0 %v8684_v60 }
 0x8bf   : > { %v3960_v12 = vadd.f32 %v3959_v11, %v3958_v35  ;;  %5640 = vmatprep.subr.bf16.mxu1 %v8682_v36  ;;  %v3950_v35 = vld [vmem:[%s12501_s6] sm:$0x3]  ;;  %v3972_v11 = vrot.slane %v3949_v59, %v11211_v10 }
 0x8c0   : > { %v3985_v13 = vrot.slane %v3950_v35, %v11211_v10  ;;  %v3989_v54 = vrot.slane %v3950_v35, %v11229_v24  ;;  %v4015_v36 = vld [vmem:[%s11104_s20 + $0x98] sm:$0xff]  ;;  %v8575_v35 = vcombine.low %v4079_v50, %v4087_v14 }
 0x8c1   : > { %3961 = vadd.xlane.f32.xlu0 %v3960_v12  ;;  %5682 = vmatpush1.bf16.msra.mxu0 %v8683_v38  ;;  %v3976_v12 = vrot.slane %v3949_v59, %v11229_v24  ;;  %v8510_v38 = vcombine.high %v4014_v43, %v4022_v9  ;;  %v8512_v60 = vcombine.high %v4015_v36, %v4023_v28 }
 0x8c2   : > { %5641 = vmatpush1.bf16.msra.mxu1 %v8681_v39  ;;  %5683 = vmatprep.subr.bf16.mxu0 %v8700_v46  ;;  %v8511_v31 = vcombine.low %v4015_v36, %v4023_v28  ;;  %v4046_v46 = vld [vmem:[%s11104_s20 + $0x190] sm:$0xff]  ;;  %v4127_v28 = vld [vmem:[%s11104_s20 + $0x418] sm:$0xff] }
 0x8c3   : > { %5642 = vmatprep.subr.bf16.mxu1 %v8698_v48  ;;  %v8509_v48 = vcombine.low %v4014_v43, %v4022_v9  ;;  %v4126_v9 = vld [vmem:[%s11104_s20 + $0x410] sm:$0xff] }
 0x8c4   : > { %v4134_v36 = vld [vmem:[%s11104_s20 + $0x450] sm:$0xff] }
 0x8c5   : > { %5684 = vmatpush1.bf16.msra.mxu0 %v8699_v33  ;;  %v8528_v33 = vcombine.high %v4031_v44, %v4039_v45  ;;  %v4142_v45 = vld [vmem:[%s11104_s20 + $0x490] sm:$0xff] }
 0x8c6   : > { %5643 = vmatpush1.bf16.msra.mxu1 %v8697_v51  ;;  %5685 = vmatprep.subr.bf16.mxu0 %v8716_v1  ;;  %v4062_v1 = vld [vmem:[%s11104_s20 + $0x210] sm:$0xff] }
 0x8c7   : > { %5644 = vmatprep.subr.bf16.mxu1 %v8714_v53  ;;  %v8558_v5 = vcombine.high %v4062_v1, %v4070_v3 }
 0x8c9   : > { %5686 = vmatpush1.bf16.msra.mxu0 %v8715_v0  ;;  %v8544_v0 = vcombine.high %v4047_v49, %v4055_v52 }
 0x8ca   : > { %5645 = vmatpush1.bf16.msra.mxu1 %v8713_v57  ;;  %5687 = vmatprep.subr.bf16.mxu0 %v8732_v17  ;;  %v8542_v57 = vcombine.high %v4046_v46, %v4054_v47  ;;  %v4078_v17 = vld [vmem:[%s11104_s20 + $0x290] sm:$0xff] }
 0x8cb   : > { %5646 = vmatprep.subr.bf16.mxu1 %v8730_v20  ;;  %v8543_v20 = vcombine.low %v4047_v49, %v4055_v52  ;;  %v8574_v27 = vcombine.high %v4078_v17, %v4086_v37  ;;  %v8573_v59 = vcombine.low %v4078_v17, %v4086_v37  ;;  %v4158_v52 = vld [vmem:[%s11104_s20 + $0x510] sm:$0xff] }
 0x8cd   : > { %5688 = vmatpush1.bf16.msra.mxu0 %v8731_v21  ;;  %v8560_v21 = vcombine.high %v4063_v4, %v4071_v6 }
 0x8ce   : > { %5647 = vmatpush1.bf16.msra.mxu1 %v8729_v16  ;;  %5739 = vmatprep.subr.bf16.mxu0 %v8496_v34  ;;  %v8541_v16 = vcombine.low %v4046_v46, %v4054_v47  ;;  %v4094_v34 = vld [vmem:[%s11104_s20 + $0x310] sm:$0xff] }
 0x8cf   : > { %5698 = vmatprep.subr.bf16.mxu1 %v8494_v26  ;;  %v8559_v26 = vcombine.low %v4063_v4, %v4071_v6  ;;  %v4174_v6 = vld [vmem:[%s11104_s20 + $0x590] sm:$0xff] }
 0x94e   : > { %v3962_v19 = vpop.xlane.xlu0 %3961 }
 0x94f   : > { %v3963_v62 = vmul.f32 0.00390625, %v3962_v19  ;;  %v4102_v19 = vld [vmem:[%s11104_s20 + $0x350] sm:$0xff] }
 0x951   : > { %v3964_v58 = vadd.f32 1e-05, %v3963_v62  ;;  %v4095_v62 = vld [vmem:[%s11104_s20 + $0x318] sm:$0xff] }
 0x953   : > { %9910 = vrsqrt.f32 %v3964_v58  ;;  %v4103_v58 = vld [vmem:[%s11104_s20 + $0x358] sm:$0xff] }
 0x95d   : > { %v9911_v61 = vpop.eup %9910 }
 0x95e   : > { %v3966_v41 = vmul.f32 %v9911_v61, %v11733_v63  ;;  %v3967_v2 = vmul.f32 %v9911_v61, %v11736_v40  ;;  %v4030_v40 = vld [vmem:[%s11104_s20 + $0x110] sm:$0xff] }
 0x95f   : > { %v8526_v51 = vcombine.high %v4030_v40, %v4038_v42  ;;  %v8525_v53 = vcombine.low %v4030_v40, %v4038_v42  ;;  %v4110_v61 = vld [vmem:[%s11104_s20 + $0x390] sm:$0xff]  ;;  %v4135_v40 = vld [vmem:[%s11104_s20 + $0x458] sm:$0xff]  ;;  %v8622_v42 = vcombine.high %v4126_v9, %v4134_v36 }
 0x960   : > { %v3979_v30 = vmul.f32 %v3972_v11, %v3966_v41  ;;  %v3980_v23 = vmul.f32 %v3976_v12, %v3967_v2  ;;  %v8590_v11 = vcombine.high %v4094_v34, %v4102_v19  ;;  %v8592_v12 = vcombine.high %v4095_v62, %v4103_v58  ;;  %v4119_v41 = vld [vmem:[%s11104_s20 + $0x3d8] sm:$0xff] }
 0x961   : > { %v8589_v2 = vcombine.low %v4094_v34, %v4102_v19  ;;  %v8624_v44 = vcombine.high %v4127_v28, %v4135_v40  ;;  %v8623_v46 = vcombine.low %v4127_v28, %v4135_v40  ;;  %v4238_v40 = vld [vmem:[%s11104_s20 + $0x790] sm:$0xff] }
 0x962   : > { %v11776_v55 = vadd.f32 %v3985_v13, %v3979_v30  ;;  %v11778_v15 = vadd.f32 %v3989_v54, %v3980_v23  ;;  %v4118_v13 = vld [vmem:[%s11104_s20 + $0x3d0] sm:$0xff]  ;;  %v4111_v54 = vld [vmem:[%s11104_s20 + $0x398] sm:$0xff]  ;;  %v8591_v30 = vcombine.low %v4095_v62, %v4103_v58 }
 0x963   : > { %v8606_v23 = vcombine.high %v4110_v61, %v4118_v13  ;;  %v8608_v43 = vcombine.high %v4111_v54, %v4119_v41  ;;  %v4206_v58 = vld [vmem:[%s11104_s20 + $0x690] sm:$0xff] }
 0x964   : > { %v11786_v39 = vpack.c.bf16 %v11776_v55, %v11776_v55  ;;  %v11790_v63 = vpack.c.bf16 %v11778_v15, %v11778_v15 }
 0x966   : > { %5648 = vmatprep.mubr.bf16.mxu1 %v11790_v63  ;;  %5689 = vmatprep.mubr.bf16.mxu0 %v11790_v63 }
 0x967   : > { %5649 = vmatmul.mubr.bf16.vlgmr.msra.gmra.mrb[68].mxu1 %v11786_v39  ;;  %5690 = vmatmul.mubr.bf16.vlgmr.msra.gmra.mrb[12].mxu0 %v11786_v39 }
 0x968   : > { %5699 = vmatpush1.bf16.msra.mxu1 %v8493_v25  ;;  %5740 = vmatpush1.bf16.msra.mxu0 %v8495_v32  ;;  %v8557_v25 = vcombine.low %v4062_v1, %v4070_v3  ;;  %v8576_v32 = vcombine.high %v4079_v50, %v4087_v14  ;;  %v4190_v14 = vld [vmem:[%s11104_s20 + $0x610] sm:$0xff] }
 0x969   : > { %5730 = vmatprep.mubr.bf16.mxu1 %v11790_v63  ;;  %5771 = vmatprep.mubr.bf16.mxu0 %v11790_v63 }
 0x96a   : > { %5700 = vmatprep.subr.bf16.mxu1 %v8510_v38  ;;  %5741 = vmatprep.subr.bf16.mxu0 %v8512_v60  ;;  %v8605_v38 = vcombine.low %v4110_v61, %v4118_v13  ;;  %v8607_v60 = vcombine.low %v4111_v54, %v4119_v41  ;;  %v4222_v41 = vld [vmem:[%s11104_s20 + $0x710] sm:$0xff] }
 0x96c   : > { %5701 = vmatpush1.bf16.msra.mxu1 %v8509_v48  ;;  %5742 = vmatpush1.bf16.msra.mxu0 %v8511_v31  ;;  %v4150_v48 = vld [vmem:[%s11104_s20 + $0x4d0] sm:$0xff]  ;;  %v4143_v31 = vld [vmem:[%s11104_s20 + $0x498] sm:$0xff] }
 0x96d   : > { %5702 = vmatprep.subr.bf16.mxu1 %v8526_v51  ;;  %5743 = vmatprep.subr.bf16.mxu0 %v8528_v33  ;;  %v4151_v51 = vld [vmem:[%s11104_s20 + $0x4d8] sm:$0xff]  ;;  %v8621_v33 = vcombine.low %v4126_v9, %v4134_v36  ;;  %v8638_v47 = vcombine.high %v4142_v45, %v4150_v48 }
 0x96e   : > { %v8640_v49 = vcombine.high %v4143_v31, %v4151_v51  ;;  %v8639_v1 = vcombine.low %v4143_v31, %v4151_v51  ;;  %v4000_v51 = vld [vmem:[%s11104_s20 + $0x20] sm:$0xff] }
 0x970   : > { %5703 = vmatpush1.bf16.msra.mxu1 %v8525_v53  ;;  %5744 = vmatpush1.bf16.msra.mxu0 %v8527_v56  ;;  %v4166_v53 = vld [vmem:[%s11104_s20 + $0x550] sm:$0xff]  ;;  %v4159_v56 = vld [vmem:[%s11104_s20 + $0x518] sm:$0xff] }
 0x971   : > { %5704 = vmatprep.subr.bf16.mxu1 %v8542_v57  ;;  %5745 = vmatprep.subr.bf16.mxu0 %v8544_v0  ;;  %v4167_v57 = vld [vmem:[%s11104_s20 + $0x558] sm:$0xff]  ;;  %v8637_v0 = vcombine.low %v4142_v45, %v4150_v48  ;;  %v8654_v3 = vcombine.high %v4158_v52, %v4166_v53 }
 0x972   : > { %v8656_v4 = vcombine.high %v4159_v56, %v4167_v57  ;;  %v8655_v17 = vcombine.low %v4159_v56, %v4167_v57  ;;  %v4016_v57 = vld [vmem:[%s11104_s20 + $0xa0] sm:$0xff] }
 0x974   : > { %5705 = vmatpush1.bf16.msra.mxu1 %v8541_v16  ;;  %5746 = vmatpush1.bf16.msra.mxu0 %v8543_v20  ;;  %v4182_v16 = vld [vmem:[%s11104_s20 + $0x5d0] sm:$0xff]  ;;  %v4175_v20 = vld [vmem:[%s11104_s20 + $0x598] sm:$0xff] }
 0x975   : > { %5706 = vmatprep.subr.bf16.mxu1 %v8558_v5  ;;  %5747 = vmatprep.subr.bf16.mxu0 %v8560_v21  ;;  %v4183_v5 = vld [vmem:[%s11104_s20 + $0x5d8] sm:$0xff]  ;;  %v8653_v21 = vcombine.low %v4158_v52, %v4166_v53  ;;  %v8670_v37 = vcombine.high %v4174_v6, %v4182_v16 }
 0x976   : > { %v8672_v50 = vcombine.high %v4175_v20, %v4183_v5  ;;  %v8671_v34 = vcombine.low %v4175_v20, %v4183_v5  ;;  %v4032_v5 = vld [vmem:[%s11104_s20 + $0x120] sm:$0xff] }
 0x978   : > { %5707 = vmatpush1.bf16.msra.mxu1 %v8557_v25  ;;  %5748 = vmatpush1.bf16.msra.mxu0 %v8559_v26  ;;  %v4198_v25 = vld [vmem:[%s11104_s20 + $0x650] sm:$0xff]  ;;  %v4191_v26 = vld [vmem:[%s11104_s20 + $0x618] sm:$0xff] }
 0x979   : > { %5708 = vmatprep.subr.bf16.mxu1 %v8574_v27  ;;  %5749 = vmatprep.subr.bf16.mxu0 %v8576_v32  ;;  %v4199_v27 = vld [vmem:[%s11104_s20 + $0x658] sm:$0xff]  ;;  %v8669_v32 = vcombine.low %v4174_v6, %v4182_v16  ;;  %v8686_v19 = vcombine.high %v4190_v14, %v4198_v25 }
 0x97a   : > { %v8688_v62 = vcombine.high %v4191_v26, %v4199_v27  ;;  %v8687_v61 = vcombine.low %v4191_v26, %v4199_v27  ;;  %v4048_v27 = vld [vmem:[%s11104_s20 + $0x1a0] sm:$0xff] }
 0x97c   : > { %5709 = vmatpush1.bf16.msra.mxu1 %v8573_v59  ;;  %5750 = vmatpush1.bf16.msra.mxu0 %v8575_v35  ;;  %v4214_v59 = vld [vmem:[%s11104_s20 + $0x6d0] sm:$0xff]  ;;  %v4207_v35 = vld [vmem:[%s11104_s20 + $0x698] sm:$0xff] }
 0x97d   : > { %5710 = vmatprep.subr.bf16.mxu1 %v8590_v11  ;;  %5751 = vmatprep.subr.bf16.mxu0 %v8592_v12  ;;  %v4215_v11 = vld [vmem:[%s11104_s20 + $0x6d8] sm:$0xff]  ;;  %v8685_v12 = vcombine.low %v4190_v14, %v4198_v25  ;;  %v8702_v13 = vcombine.high %v4206_v58, %v4214_v59 }
 0x97e   : > { %v8704_v54 = vcombine.high %v4207_v35, %v4215_v11  ;;  %v8703_v9 = vcombine.low %v4207_v35, %v4215_v11  ;;  %v4064_v11 = vld [vmem:[%s11104_s20 + $0x220] sm:$0xff] }
 0x980   : > { %5711 = vmatpush1.bf16.msra.mxu1 %v8589_v2  ;;  %5752 = vmatpush1.bf16.msra.mxu0 %v8591_v30  ;;  %v4230_v2 = vld [vmem:[%s11104_s20 + $0x750] sm:$0xff]  ;;  %v4223_v30 = vld [vmem:[%s11104_s20 + $0x718] sm:$0xff] }
 0x981   : > { %5712 = vmatprep.subr.bf16.mxu1 %v8606_v23  ;;  %5753 = vmatprep.subr.bf16.mxu0 %v8608_v43  ;;  %v4231_v23 = vld [vmem:[%s11104_s20 + $0x758] sm:$0xff]  ;;  %v8701_v43 = vcombine.low %v4206_v58, %v4214_v59  ;;  %v8718_v36 = vcombine.high %v4222_v41, %v4230_v2 }
 0x982   : > { %v8720_v28 = vcombine.high %v4223_v30, %v4231_v23  ;;  %v8719_v45 = vcombine.low %v4223_v30, %v4231_v23  ;;  %v4080_v23 = vld [vmem:[%s11104_s20 + $0x2a0] sm:$0xff] }
 0x984   : > { %5713 = vmatpush1.bf16.msra.mxu1 %v8605_v38  ;;  %5754 = vmatpush1.bf16.msra.mxu0 %v8607_v60  ;;  %v4246_v38 = vld [vmem:[%s11104_s20 + $0x7d0] sm:$0xff]  ;;  %v4239_v60 = vld [vmem:[%s11104_s20 + $0x798] sm:$0xff] }
 0x985   : > { %5714 = vmatprep.subr.bf16.mxu1 %v8622_v42  ;;  %5755 = vmatprep.subr.bf16.mxu0 %v8624_v44  ;;  %v4247_v42 = vld [vmem:[%s11104_s20 + $0x7d8] sm:$0xff]  ;;  %v8717_v44 = vcombine.low %v4222_v41, %v4230_v2  ;;  %v8734_v48 = vcombine.high %v4238_v40, %v4246_v38 }
 0x986   : > { %v8736_v31 = vcombine.high %v4239_v60, %v4247_v42  ;;  %v8735_v52 = vcombine.low %v4239_v60, %v4247_v42  ;;  %v4096_v42 = vld [vmem:[%s11104_s20 + $0x320] sm:$0xff] }
 0x988   : > { %5715 = vmatpush1.bf16.msra.mxu1 %v8621_v33  ;;  %5756 = vmatpush1.bf16.msra.mxu0 %v8623_v46  ;;  %v4008_v33 = vld [vmem:[%s11104_s20 + $0x60] sm:$0xff]  ;;  %v4001_v46 = vld [vmem:[%s11104_s20 + $0x28] sm:$0xff] }
 0x989   : > { %5716 = vmatprep.subr.bf16.mxu1 %v8638_v47  ;;  %5757 = vmatprep.subr.bf16.mxu0 %v8640_v49  ;;  %v4009_v47 = vld [vmem:[%s11104_s20 + $0x68] sm:$0xff]  ;;  %v8733_v49 = vcombine.low %v4238_v40, %v4246_v38  ;;  %v8498_v53 = vcombine.high %v4000_v51, %v4008_v33 }
 0x98a   : > { %v8500_v56 = vcombine.high %v4001_v46, %v4009_v47  ;;  %v8499_v6 = vcombine.low %v4001_v46, %v4009_v47  ;;  %v4112_v47 = vld [vmem:[%s11104_s20 + $0x3a0] sm:$0xff] }
 0x98c   : > { %5717 = vmatpush1.bf16.msra.mxu1 %v8637_v0  ;;  %5758 = vmatpush1.bf16.msra.mxu0 %v8639_v1  ;;  %v4024_v0 = vld [vmem:[%s11104_s20 + $0xe0] sm:$0xff]  ;;  %v4017_v1 = vld [vmem:[%s11104_s20 + $0xa8] sm:$0xff] }
 0x98d   : > { %5718 = vmatprep.subr.bf16.mxu1 %v8654_v3  ;;  %5759 = vmatprep.subr.bf16.mxu0 %v8656_v4  ;;  %v4025_v3 = vld [vmem:[%s11104_s20 + $0xe8] sm:$0xff]  ;;  %v8497_v4 = vcombine.low %v4000_v51, %v4008_v33  ;;  %v8514_v16 = vcombine.high %v4016_v57, %v4024_v0 }
 0x98e   : > { %v8516_v20 = vcombine.high %v4017_v1, %v4025_v3  ;;  %v8515_v14 = vcombine.low %v4017_v1, %v4025_v3  ;;  %v4128_v3 = vld [vmem:[%s11104_s20 + $0x420] sm:$0xff] }
 0x990   : > { %5719 = vmatpush1.bf16.msra.mxu1 %v8653_v21  ;;  %5760 = vmatpush1.bf16.msra.mxu0 %v8655_v17  ;;  %v4040_v21 = vld [vmem:[%s11104_s20 + $0x160] sm:$0xff]  ;;  %v4033_v17 = vld [vmem:[%s11104_s20 + $0x128] sm:$0xff] }
 0x991   : > { %5720 = vmatprep.subr.bf16.mxu1 %v8670_v37  ;;  %5761 = vmatprep.subr.bf16.mxu0 %v8672_v50  ;;  %v4041_v37 = vld [vmem:[%s11104_s20 + $0x168] sm:$0xff]  ;;  %v8513_v50 = vcombine.low %v4016_v57, %v4024_v0  ;;  %v8530_v25 = vcombine.high %v4032_v5, %v4040_v21 }
 0x992   : > { %v8532_v26 = vcombine.high %v4033_v17, %v4041_v37  ;;  %v8531_v58 = vcombine.low %v4033_v17, %v4041_v37  ;;  %v4144_v37 = vld [vmem:[%s11104_s20 + $0x4a0] sm:$0xff] }
 0x994   : > { %5721 = vmatpush1.bf16.msra.mxu1 %v8669_v32  ;;  %5762 = vmatpush1.bf16.msra.mxu0 %v8671_v34  ;;  %v4056_v32 = vld [vmem:[%s11104_s20 + $0x1e0] sm:$0xff]  ;;  %v4049_v34 = vld [vmem:[%s11104_s20 + $0x1a8] sm:$0xff] }
 0x995   : > { %5722 = vmatprep.subr.bf16.mxu1 %v8686_v19  ;;  %5763 = vmatprep.subr.bf16.mxu0 %v8688_v62  ;;  %v4057_v19 = vld [vmem:[%s11104_s20 + $0x1e8] sm:$0xff]  ;;  %v8529_v62 = vcombine.low %v4032_v5, %v4040_v21  ;;  %v8546_v59 = vcombine.high %v4048_v27, %v4056_v32 }
 0x996   : > { %v8548_v35 = vcombine.high %v4049_v34, %v4057_v19  ;;  %v8547_v41 = vcombine.low %v4049_v34, %v4057_v19  ;;  %v4160_v19 = vld [vmem:[%s11104_s20 + $0x520] sm:$0xff] }
 0x998   : > { %5723 = vmatpush1.bf16.msra.mxu1 %v8685_v12  ;;  %5764 = vmatpush1.bf16.msra.mxu0 %v8687_v61  ;;  %v4072_v12 = vld [vmem:[%s11104_s20 + $0x260] sm:$0xff]  ;;  %v4065_v61 = vld [vmem:[%s11104_s20 + $0x228] sm:$0xff] }
 0x999   : > { %5724 = vmatprep.subr.bf16.mxu1 %v8702_v13  ;;  %5765 = vmatprep.subr.bf16.mxu0 %v8704_v54  ;;  %v4073_v13 = vld [vmem:[%s11104_s20 + $0x268] sm:$0xff]  ;;  %v8545_v54 = vcombine.low %v4048_v27, %v4056_v32  ;;  %v8562_v2 = vcombine.high %v4064_v11, %v4072_v12 }
 0x99a   : > { %v8564_v30 = vcombine.high %v4065_v61, %v4073_v13  ;;  %v8563_v40 = vcombine.low %v4065_v61, %v4073_v13  ;;  %v4176_v13 = vld [vmem:[%s11104_s20 + $0x5a0] sm:$0xff] }
 0x99c   : > { %5725 = vmatpush1.bf16.msra.mxu1 %v8701_v43  ;;  %5766 = vmatpush1.bf16.msra.mxu0 %v8703_v9  ;;  %v4088_v43 = vld [vmem:[%s11104_s20 + $0x2e0] sm:$0xff]  ;;  %v4081_v9 = vld [vmem:[%s11104_s20 + $0x2a8] sm:$0xff] }
 0x99d   : > { %5726 = vmatprep.subr.bf16.mxu1 %v8718_v36  ;;  %5767 = vmatprep.subr.bf16.mxu0 %v8720_v28  ;;  %v4089_v36 = vld [vmem:[%s11104_s20 + $0x2e8] sm:$0xff]  ;;  %v8561_v28 = vcombine.low %v4064_v11, %v4072_v12  ;;  %v8578_v38 = vcombine.high %v4080_v23, %v4088_v43 }
 0x99e   : > { %v8580_v60 = vcombine.high %v4081_v9, %v4089_v36  ;;  %v8579_v51 = vcombine.low %v4081_v9, %v4089_v36  ;;  %v4192_v36 = vld [vmem:[%s11104_s20 + $0x620] sm:$0xff] }
 0x9a0   : > { %5727 = vmatpush1.bf16.msra.mxu1 %v8717_v44  ;;  %5768 = vmatpush1.bf16.msra.mxu0 %v8719_v45  ;;  %v4104_v44 = vld [vmem:[%s11104_s20 + $0x360] sm:$0xff]  ;;  %v4097_v45 = vld [vmem:[%s11104_s20 + $0x328] sm:$0xff] }
 0x9a1   : > { %5728 = vmatprep.subr.bf16.mxu1 %v8734_v48  ;;  %5769 = vmatprep.subr.bf16.mxu0 %v8736_v31  ;;  %v4105_v48 = vld [vmem:[%s11104_s20 + $0x368] sm:$0xff]  ;;  %v8577_v31 = vcombine.low %v4080_v23, %v4088_v43  ;;  %v8594_v33 = vcombine.high %v4096_v42, %v4104_v44 }
 0x9a2   : > { %v8596_v46 = vcombine.high %v4097_v45, %v4105_v48  ;;  %v8595_v57 = vcombine.low %v4097_v45, %v4105_v48  ;;  %v4208_v48 = vld [vmem:[%s11104_s20 + $0x6a0] sm:$0xff] }
 0x9a4   : > { %5729 = vmatpush1.bf16.msra.mxu1 %v8733_v49  ;;  %5770 = vmatpush1.bf16.msra.mxu0 %v8735_v52  ;;  %v4120_v49 = vld [vmem:[%s11104_s20 + $0x3e0] sm:$0xff]  ;;  %v4113_v52 = vld [vmem:[%s11104_s20 + $0x3a8] sm:$0xff] }
 0x9a5   : > { %5780 = vmatprep.subr.bf16.mxu1 %v8498_v53  ;;  %5821 = vmatprep.subr.bf16.mxu0 %v8500_v56  ;;  %v4121_v53 = vld [vmem:[%s11104_s20 + $0x3e8] sm:$0xff]  ;;  %v8593_v56 = vcombine.low %v4096_v42, %v4104_v44  ;;  %v8610_v0 = vcombine.high %v4112_v47, %v4120_v49 }
 0x9a6   : > { %v8612_v1 = vcombine.high %v4113_v52, %v4121_v53  ;;  %v8611_v5 = vcombine.low %v4113_v52, %v4121_v53  ;;  %v4224_v53 = vld [vmem:[%s11104_s20 + $0x720] sm:$0xff] }
 0x9a7   : > { %5731 = vmatmul.mubr.bf16.vlgmr.msra.gmra.mrb[72].mxu1 %v11786_v39  ;;  %5772 = vmatmul.mubr.bf16.vlgmr.msra.gmra.mrb[16].mxu0 %v11786_v39 }
 0x9a8   : > { %5781 = vmatpush1.bf16.msra.mxu1 %v8497_v4  ;;  %5812 = vmatprep.mubr.bf16.mxu1 %v11790_v63  ;;  %v4136_v4 = vld [vmem:[%s11104_s20 + $0x460] sm:$0xff] }
 0x9a9   : > { %5822 = vmatpush1.bf16.msra.mxu0 %v8499_v6  ;;  %5853 = vmatprep.mubr.bf16.mxu0 %v11790_v63  ;;  %v4129_v6 = vld [vmem:[%s11104_s20 + $0x428] sm:$0xff]  ;;  %v8626_v21 = vcombine.high %v4128_v3, %v4136_v4 }
 0x9aa   : > { %5782 = vmatprep.subr.bf16.mxu1 %v8514_v16  ;;  %5823 = vmatprep.subr.bf16.mxu0 %v8516_v20  ;;  %v4137_v16 = vld [vmem:[%s11104_s20 + $0x468] sm:$0xff]  ;;  %v8609_v20 = vcombine.low %v4112_v47, %v4120_v49 }
 0x9ab   : > { %v8628_v17 = vcombine.high %v4129_v6, %v4137_v16  ;;  %v8627_v27 = vcombine.low %v4129_v6, %v4137_v16  ;;  %v4240_v16 = vld [vmem:[%s11104_s20 + $0x7a0] sm:$0xff] }
 0x9ac   : > { %5783 = vmatpush1.bf16.msra.mxu1 %v8513_v50  ;;  %v4152_v50 = vld [vmem:[%s11104_s20 + $0x4e0] sm:$0xff] }
 0x9ad   : > { %5824 = vmatpush1.bf16.msra.mxu0 %v8515_v14  ;;  %5784 = vmatprep.subr.bf16.mxu1 %v8530_v25  ;;  %v4145_v14 = vld [vmem:[%s11104_s20 + $0x4a8] sm:$0xff]  ;;  %v8642_v32 = vcombine.high %v4144_v37, %v4152_v50 }
 0x9ae   : > { %5825 = vmatprep.subr.bf16.mxu0 %v8532_v26  ;;  %v4153_v25 = vld [vmem:[%s11104_s20 + $0x4e8] sm:$0xff]  ;;  %v8625_v26 = vcombine.low %v4128_v3, %v4136_v4 }
 0x9af   : > { %v8644_v34 = vcombine.high %v4145_v14, %v4153_v25  ;;  %v8643_v11 = vcombine.low %v4145_v14, %v4153_v25  ;;  %v4002_v25 = vld [vmem:[%s11104_s20 + $0x30] sm:$0xff] }
 0x9b0   : > { %5785 = vmatpush1.bf16.msra.mxu1 %v8529_v62  ;;  %v4168_v62 = vld [vmem:[%s11104_s20 + $0x560] sm:$0xff] }
 0x9b1   : > { %5826 = vmatpush1.bf16.msra.mxu0 %v8531_v58  ;;  %5786 = vmatprep.subr.bf16.mxu1 %v8546_v59  ;;  %v4161_v58 = vld [vmem:[%s11104_s20 + $0x528] sm:$0xff]  ;;  %v8658_v12 = vcombine.high %v4160_v19, %v4168_v62 }
 0x9b2   : > { %5827 = vmatprep.subr.bf16.mxu0 %v8548_v35  ;;  %v4169_v59 = vld [vmem:[%s11104_s20 + $0x568] sm:$0xff]  ;;  %v8641_v35 = vcombine.low %v4144_v37, %v4152_v50 }
 0x9b3   : > { %v8660_v61 = vcombine.high %v4161_v58, %v4169_v59  ;;  %v8659_v23 = vcombine.low %v4161_v58, %v4169_v59  ;;  %v4018_v59 = vld [vmem:[%s11104_s20 + $0xb0] sm:$0xff] }
 0x9b4   : > { %5787 = vmatpush1.bf16.msra.mxu1 %v8545_v54  ;;  %v4184_v54 = vld [vmem:[%s11104_s20 + $0x5e0] sm:$0xff] }
 0x9b5   : > { %5828 = vmatpush1.bf16.msra.mxu0 %v8547_v41  ;;  %5788 = vmatprep.subr.bf16.mxu1 %v8562_v2  ;;  %v4177_v41 = vld [vmem:[%s11104_s20 + $0x5a8] sm:$0xff]  ;;  %v8674_v43 = vcombine.high %v4176_v13, %v4184_v54 }
 0x9b6   : > { %5829 = vmatprep.subr.bf16.mxu0 %v8564_v30  ;;  %v4185_v2 = vld [vmem:[%s11104_s20 + $0x5e8] sm:$0xff]  ;;  %v8657_v30 = vcombine.low %v4160_v19, %v4168_v62 }
 0x9b7   : > { %v8676_v9 = vcombine.high %v4177_v41, %v4185_v2  ;;  %v8675_v42 = vcombine.low %v4177_v41, %v4185_v2  ;;  %v4034_v41 = vld [vmem:[%s11104_s20 + $0x130] sm:$0xff] }
 0x9b8   : > { %5789 = vmatpush1.bf16.msra.mxu1 %v8561_v28  ;;  %v4200_v28 = vld [vmem:[%s11104_s20 + $0x660] sm:$0xff]  ;;  %v4042_v2 = vld [vmem:[%s11104_s20 + $0x170] sm:$0xff] }
 0x9b9   : > { %5830 = vmatpush1.bf16.msra.mxu0 %v8563_v40  ;;  %5790 = vmatprep.subr.bf16.mxu1 %v8578_v38  ;;  %v4193_v40 = vld [vmem:[%s11104_s20 + $0x628] sm:$0xff]  ;;  %v8690_v44 = vcombine.high %v4192_v36, %v4200_v28 }
 0x9ba   : > { %5831 = vmatprep.subr.bf16.mxu0 %v8580_v60  ;;  %v4201_v38 = vld [vmem:[%s11104_s20 + $0x668] sm:$0xff]  ;;  %v8673_v60 = vcombine.low %v4176_v13, %v4184_v54 }
 0x9bb   : > { %v8692_v45 = vcombine.high %v4193_v40, %v4201_v38  ;;  %v8691_v47 = vcombine.low %v4193_v40, %v4201_v38  ;;  %v4050_v38 = vld [vmem:[%s11104_s20 + $0x1b0] sm:$0xff] }
 0x9bc   : > { %5791 = vmatpush1.bf16.msra.mxu1 %v8577_v31  ;;  %v4216_v31 = vld [vmem:[%s11104_s20 + $0x6e0] sm:$0xff] }
 0x9bd   : > { %5832 = vmatpush1.bf16.msra.mxu0 %v8579_v51  ;;  %5792 = vmatprep.subr.bf16.mxu1 %v8594_v33  ;;  %v4209_v51 = vld [vmem:[%s11104_s20 + $0x6a8] sm:$0xff]  ;;  %v8706_v49 = vcombine.high %v4208_v48, %v4216_v31 }
 0x9be   : > { %5833 = vmatprep.subr.bf16.mxu0 %v8596_v46  ;;  %v4217_v33 = vld [vmem:[%s11104_s20 + $0x6e8] sm:$0xff]  ;;  %v8689_v46 = vcombine.low %v4192_v36, %v4200_v28  ;;  %v8534_v28 = vcombine.high %v4034_v41, %v4042_v2 }
 0x9bf   : > { %v8708_v52 = vcombine.high %v4209_v51, %v4217_v33  ;;  %v8707_v3 = vcombine.low %v4209_v51, %v4217_v33  ;;  %v4066_v51 = vld [vmem:[%s11104_s20 + $0x230] sm:$0xff] }
 0x9c0   : > { %5793 = vmatpush1.bf16.msra.mxu1 %v8593_v56  ;;  %v4232_v56 = vld [vmem:[%s11104_s20 + $0x760] sm:$0xff]  ;;  %v4074_v33 = vld [vmem:[%s11104_s20 + $0x270] sm:$0xff] }
 0x9c1   : > { %5834 = vmatpush1.bf16.msra.mxu0 %v8595_v57  ;;  %5794 = vmatprep.subr.bf16.mxu1 %v8610_v0  ;;  %v4225_v57 = vld [vmem:[%s11104_s20 + $0x728] sm:$0xff]  ;;  %v8722_v4 = vcombine.high %v4224_v53, %v4232_v56 }
 0x9c2   : > { %5835 = vmatprep.subr.bf16.mxu0 %v8612_v1  ;;  %v4233_v0 = vld [vmem:[%s11104_s20 + $0x768] sm:$0xff]  ;;  %v8705_v1 = vcombine.low %v4208_v48, %v4216_v31 }
 0x9c3   : > { %v8724_v6 = vcombine.high %v4225_v57, %v4233_v0  ;;  %v8723_v37 = vcombine.low %v4225_v57, %v4233_v0  ;;  %v4082_v57 = vld [vmem:[%s11104_s20 + $0x2b0] sm:$0xff] }
 0x9c4   : > { %5795 = vmatpush1.bf16.msra.mxu1 %v8609_v20  ;;  %v4248_v20 = vld [vmem:[%s11104_s20 + $0x7e0] sm:$0xff]  ;;  %v4090_v0 = vld [vmem:[%s11104_s20 + $0x2f0] sm:$0xff] }
 0x9c5   : > { %5836 = vmatpush1.bf16.msra.mxu0 %v8611_v5  ;;  %5796 = vmatprep.subr.bf16.mxu1 %v8626_v21  ;;  %v4241_v5 = vld [vmem:[%s11104_s20 + $0x7a8] sm:$0xff]  ;;  %v8738_v50 = vcombine.high %v4240_v16, %v4248_v20 }
 0x9c6   : > { %5837 = vmatprep.subr.bf16.mxu0 %v8628_v17  ;;  %v4249_v21 = vld [vmem:[%s11104_s20 + $0x7e8] sm:$0xff]  ;;  %v8721_v17 = vcombine.low %v4224_v53, %v4232_v56  ;;  %v8566_v53 = vcombine.high %v4066_v51, %v4074_v33 }
 0x9c7   : > { %v8740_v14 = vcombine.high %v4241_v5, %v4249_v21  ;;  %v8739_v19 = vcombine.low %v4241_v5, %v4249_v21  ;;  %v4098_v5 = vld [vmem:[%s11104_s20 + $0x330] sm:$0xff] }
 0x9c8   : > { %5797 = vmatpush1.bf16.msra.mxu1 %v8625_v26  ;;  %v4010_v26 = vld [vmem:[%s11104_s20 + $0x70] sm:$0xff] }
 0x9c9   : > { %5838 = vmatpush1.bf16.msra.mxu0 %v8627_v27  ;;  %5798 = vmatprep.subr.bf16.mxu1 %v8642_v32  ;;  %v4003_v27 = vld [vmem:[%s11104_s20 + $0x38] sm:$0xff]  ;;  %v8502_v62 = vcombine.high %v4002_v25, %v4010_v26  ;;  %v4106_v21 = vld [vmem:[%s11104_s20 + $0x370] sm:$0xff] }
 0x9ca   : > { %5839 = vmatprep.subr.bf16.mxu0 %v8644_v34  ;;  %v4011_v32 = vld [vmem:[%s11104_s20 + $0x78] sm:$0xff]  ;;  %v8737_v34 = vcombine.low %v4240_v16, %v4248_v20  ;;  %v8582_v16 = vcombine.high %v4082_v57, %v4090_v0 }
 0x9cb   : > { %v8504_v58 = vcombine.high %v4003_v27, %v4011_v32  ;;  %v8503_v13 = vcombine.low %v4003_v27, %v4011_v32  ;;  %v4114_v27 = vld [vmem:[%s11104_s20 + $0x3b0] sm:$0xff] }
 0x9cc   : > { %5799 = vmatpush1.bf16.msra.mxu1 %v8641_v35  ;;  %v4026_v35 = vld [vmem:[%s11104_s20 + $0xf0] sm:$0xff] }
 0x9cd   : > { %5840 = vmatpush1.bf16.msra.mxu0 %v8643_v11  ;;  %5800 = vmatprep.subr.bf16.mxu1 %v8658_v12  ;;  %v8501_v11 = vcombine.low %v4002_v25, %v4010_v26  ;;  %v4019_v12 = vld [vmem:[%s11104_s20 + $0xb8] sm:$0xff]  ;;  %v8518_v54 = vcombine.high %v4018_v59, %v4026_v35  ;;  %v8598_v25 = vcombine.high %v4098_v5, %v4106_v21  ;;  %v4122_v32 = vld [vmem:[%s11104_s20 + $0x3f0] sm:$0xff] }
 0x9ce   : > { %5841 = vmatprep.subr.bf16.mxu0 %v8660_v61  ;;  %v4027_v61 = vld [vmem:[%s11104_s20 + $0xf8] sm:$0xff] }
 0x9cf   : > { %v8519_v36 = vcombine.low %v4019_v12, %v4027_v61 }
 0x9d0   : > { %5801 = vmatpush1.bf16.msra.mxu1 %v8657_v30  ;;  %v8520_v30 = vcombine.high %v4019_v12, %v4027_v61  ;;  %v4138_v12 = vld [vmem:[%s11104_s20 + $0x470] sm:$0xff]  ;;  %v4131_v61 = vld [vmem:[%s11104_s20 + $0x438] sm:$0xff] }
 0x9d1   : > { %5842 = vmatpush1.bf16.msra.mxu0 %v8659_v23  ;;  %5802 = vmatprep.subr.bf16.mxu1 %v8674_v43  ;;  %v4035_v23 = vld [vmem:[%s11104_s20 + $0x138] sm:$0xff] }
 0x9d2   : > { %5843 = vmatprep.subr.bf16.mxu0 %v8676_v9  ;;  %v4043_v43 = vld [vmem:[%s11104_s20 + $0x178] sm:$0xff]  ;;  %v8517_v9 = vcombine.low %v4018_v59, %v4026_v35  ;;  %v8614_v59 = vcombine.high %v4114_v27, %v4122_v32 }
 0x9d3   : > { %v8536_v40 = vcombine.high %v4035_v23, %v4043_v43  ;;  %v8535_v48 = vcombine.low %v4035_v23, %v4043_v43  ;;  %v4146_v23 = vld [vmem:[%s11104_s20 + $0x4b0] sm:$0xff] }
 0x9d4   : > { %5803 = vmatpush1.bf16.msra.mxu1 %v8673_v60  ;;  %v4058_v60 = vld [vmem:[%s11104_s20 + $0x1f0] sm:$0xff] }
 0x9d5   : > { %5844 = vmatpush1.bf16.msra.mxu0 %v8675_v42  ;;  %5804 = vmatprep.subr.bf16.mxu1 %v8690_v44  ;;  %v4051_v42 = vld [vmem:[%s11104_s20 + $0x1b8] sm:$0xff]  ;;  %v8550_v31 = vcombine.high %v4050_v38, %v4058_v60  ;;  %v4154_v43 = vld [vmem:[%s11104_s20 + $0x4f0] sm:$0xff] }
 0x9d6   : > { %5845 = vmatprep.subr.bf16.mxu0 %v8692_v45  ;;  %v4059_v44 = vld [vmem:[%s11104_s20 + $0x1f8] sm:$0xff]  ;;  %v8533_v45 = vcombine.low %v4034_v41, %v4042_v2 }
 0x9d8   : > { %5805 = vmatpush1.bf16.msra.mxu1 %v8689_v46  ;;  %v4067_v46 = vld [vmem:[%s11104_s20 + $0x238] sm:$0xff] }
 0x9d9   : > { %5846 = vmatpush1.bf16.msra.mxu0 %v8691_v47  ;;  %5806 = vmatprep.subr.bf16.mxu1 %v8706_v49  ;;  %v4075_v47 = vld [vmem:[%s11104_s20 + $0x278] sm:$0xff]  ;;  %v8549_v49 = vcombine.low %v4050_v38, %v4058_v60  ;;  %v8646_v38 = vcombine.high %v4146_v23, %v4154_v43 }
 0x9da   : > { %5847 = vmatprep.subr.bf16.mxu0 %v8708_v52  ;;  %v8551_v52 = vcombine.low %v4051_v42, %v4059_v44  ;;  %v8568_v56 = vcombine.high %v4067_v46, %v4075_v47 }
 0x9dc   : > { %5807 = vmatpush1.bf16.msra.mxu1 %v8705_v1  ;;  %v4083_v1 = vld [vmem:[%s11104_s20 + $0x2b8] sm:$0xff] }
 0x9dd   : > { %5848 = vmatpush1.bf16.msra.mxu0 %v8707_v3  ;;  %5808 = vmatprep.subr.bf16.mxu1 %v8722_v4  ;;  %v4091_v3 = vld [vmem:[%s11104_s20 + $0x2f8] sm:$0xff]  ;;  %v8565_v4 = vcombine.low %v4066_v51, %v4074_v33 }
 0x9de   : > { %5849 = vmatprep.subr.bf16.mxu0 %v8724_v6  ;;  %v8567_v6 = vcombine.low %v4067_v46, %v4075_v47  ;;  %v8584_v20 = vcombine.high %v4083_v1, %v4091_v3  ;;  %v4178_v46 = vld [vmem:[%s11104_s20 + $0x5b0] sm:$0xff] }
 0x9df   : > { %v4186_v47 = vld [vmem:[%s11104_s20 + $0x5f0] sm:$0xff] }
 0x9e0   : > { %5809 = vmatpush1.bf16.msra.mxu1 %v8721_v17  ;;  %v4099_v17 = vld [vmem:[%s11104_s20 + $0x338] sm:$0xff] }
 0x9e1   : > { %5850 = vmatpush1.bf16.msra.mxu0 %v8723_v37  ;;  %5810 = vmatprep.subr.bf16.mxu1 %v8738_v50  ;;  %v4107_v37 = vld [vmem:[%s11104_s20 + $0x378] sm:$0xff]  ;;  %v8581_v50 = vcombine.low %v4082_v57, %v4090_v0  ;;  %v8678_v57 = vcombine.high %v4178_v46, %v4186_v47 }
 0x9e2   : > { %5851 = vmatprep.subr.bf16.mxu0 %v8740_v14  ;;  %v8583_v14 = vcombine.low %v4083_v1, %v4091_v3  ;;  %v8600_v26 = vcombine.high %v4099_v17, %v4107_v37  ;;  %v4194_v1 = vld [vmem:[%s11104_s20 + $0x630] sm:$0xff] }
 0x9e3   : > { %v4202_v3 = vld [vmem:[%s11104_s20 + $0x670] sm:$0xff] }
 0x9e4   : > { %5811 = vmatpush1.bf16.msra.mxu1 %v8737_v34  ;;  %v4115_v34 = vld [vmem:[%s11104_s20 + $0x3b8] sm:$0xff] }
 0x9e5   : > { %5852 = vmatpush1.bf16.msra.mxu0 %v8739_v19  ;;  %5862 = vmatprep.subr.bf16.mxu1 %v8502_v62  ;;  %v4123_v19 = vld [vmem:[%s11104_s20 + $0x3f8] sm:$0xff]  ;;  %v8597_v62 = vcombine.low %v4098_v5, %v4106_v21  ;;  %v8694_v5 = vcombine.high %v4194_v1, %v4202_v3 }
 0x9e6   : > { %5903 = vmatprep.subr.bf16.mxu0 %v8504_v58  ;;  %v8599_v58 = vcombine.low %v4099_v17, %v4107_v37  ;;  %v8616_v35 = vcombine.high %v4115_v34, %v4123_v19  ;;  %v8615_v41 = vcombine.low %v4115_v34, %v4123_v19  ;;  %v4210_v17 = vld [vmem:[%s11104_s20 + $0x6b0] sm:$0xff] }
 0x9e7   : > { %5813 = vmatmul.mubr.bf16.vlgmr.msra.gmra.mrb[76].mxu1 %v11786_v39  ;;  %v4218_v37 = vld [vmem:[%s11104_s20 + $0x6f0] sm:$0xff] }
 0x9e8   : > { %5854 = vmatmul.mubr.bf16.vlgmr.msra.gmra.mrb[20].mxu0 %v11786_v39  ;;  %5863 = vmatpush1.bf16.msra.mxu1 %v8501_v11  ;;  %v4130_v11 = vld [vmem:[%s11104_s20 + $0x430] sm:$0xff] }
 0x9e9   : > { %5894 = vmatprep.mubr.bf16.mxu1 %v11790_v63  ;;  %5904 = vmatpush1.bf16.msra.mxu0 %v8503_v13  ;;  %v4139_v13 = vld [vmem:[%s11104_s20 + $0x478] sm:$0xff]  ;;  %v8630_v2 = vcombine.high %v4130_v11, %v4138_v12  ;;  %v4226_v34 = vld [vmem:[%s11104_s20 + $0x730] sm:$0xff] }
 0x9ea   : > { %5935 = vmatprep.mubr.bf16.mxu0 %v11790_v63  ;;  %5864 = vmatprep.subr.bf16.mxu1 %v8518_v54  ;;  %v8552_v63 = vcombine.high %v4051_v42, %v4059_v44  ;;  %v8613_v54 = vcombine.low %v4114_v27, %v4122_v32  ;;  %v4162_v42 = vld [vmem:[%s11104_s20 + $0x530] sm:$0xff]  ;;  %v8710_v27 = vcombine.high %v4210_v17, %v4218_v37 }
 0x9eb   : > { %5905 = vmatprep.subr.bf16.mxu0 %v8520_v30  ;;  %v8632_v30 = vcombine.high %v4131_v61, %v4139_v13  ;;  %v4170_v44 = vld [vmem:[%s11104_s20 + $0x570] sm:$0xff] }
 0x9ec   : > { %5865 = vmatpush1.bf16.msra.mxu1 %v8517_v9  ;;  %v4147_v9 = vld [vmem:[%s11104_s20 + $0x4b8] sm:$0xff]  ;;  %v8662_v51 = vcombine.high %v4162_v42, %v4170_v44  ;;  %v4234_v19 = vld [vmem:[%s11104_s20 + $0x770] sm:$0xff] }
 0x9ed   : > { %5906 = vmatpush1.bf16.msra.mxu0 %v8519_v36  ;;  %5866 = vmatprep.subr.bf16.mxu1 %v8534_v28  ;;  %v4155_v36 = vld [vmem:[%s11104_s20 + $0x4f8] sm:$0xff]  ;;  %v8629_v28 = vcombine.low %v4130_v11, %v4138_v12  ;;  %v8726_v11 = vcombine.high %v4226_v34, %v4234_v19 }
 0x9ee   : > { %5907 = vmatprep.subr.bf16.mxu0 %v8536_v40  ;;  %v8631_v40 = vcombine.low %v4131_v61, %v4139_v13  ;;  %v8648_v60 = vcombine.high %v4147_v9, %v4155_v36  ;;  %v4242_v61 = vld [vmem:[%s11104_s20 + $0x7b0] sm:$0xff] }
 0x9ef   : > { %v4250_v13 = vld [vmem:[%s11104_s20 + $0x7f0] sm:$0xff] }
 0x9f0   : > { %5867 = vmatpush1.bf16.msra.mxu1 %v8533_v45  ;;  %v4163_v45 = vld [vmem:[%s11104_s20 + $0x538] sm:$0xff] }
 0x9f1   : > { %5908 = vmatpush1.bf16.msra.mxu0 %v8535_v48  ;;  %5868 = vmatprep.subr.bf16.mxu1 %v8550_v31  ;;  %v4171_v48 = vld [vmem:[%s11104_s20 + $0x578] sm:$0xff]  ;;  %v8645_v31 = vcombine.low %v4146_v23, %v4154_v43  ;;  %v8742_v23 = vcombine.high %v4242_v61, %v4250_v13 }
 0x9f2   : > { %5909 = vmatprep.subr.bf16.mxu0 %v8552_v63  ;;  %v8647_v63 = vcombine.low %v4147_v9, %v4155_v36  ;;  %v8664_v33 = vcombine.high %v4163_v45, %v4171_v48  ;;  %v8741_v9 = vcombine.low %v4242_v61, %v4250_v13 }
 0x9f4   : > { %5869 = vmatpush1.bf16.msra.mxu1 %v8549_v49  ;;  %v4179_v49 = vld [vmem:[%s11104_s20 + $0x5b8] sm:$0xff] }
 0x9f5   : > { %5910 = vmatpush1.bf16.msra.mxu0 %v8551_v52  ;;  %5870 = vmatprep.subr.bf16.mxu1 %v8566_v53  ;;  %v4187_v52 = vld [vmem:[%s11104_s20 + $0x5f8] sm:$0xff]  ;;  %v8661_v53 = vcombine.low %v4162_v42, %v4170_v44 }
 0x9f6   : > { %5911 = vmatprep.subr.bf16.mxu0 %v8568_v56  ;;  %v8663_v56 = vcombine.low %v4163_v45, %v4171_v48  ;;  %v8680_v0 = vcombine.high %v4179_v49, %v4187_v52  ;;  %v9502_v42 = vld [vmem:[%s11113_s15 + $0x14] ss:$8 sps:$4 sm:$0xff]   ;;  %v9500_v45 = vld [vmem:[%s11113_s15 + $0x10] ss:$8 sps:$4 sm:$0xff]  }
 0x9f7   : > { %v9505_v44 = vld [vmem:[%s11113_s15 + $0x114] ss:$8 sps:$4 sm:$0xff]   ;;  %v9503_v48 = vld [vmem:[%s11113_s15 + $0x110] ss:$8 sps:$4 sm:$0xff]  }
 0x9f8   : > { %5871 = vmatpush1.bf16.msra.mxu1 %v8565_v4  ;;  %v4195_v4 = vld [vmem:[%s11104_s20 + $0x638] sm:$0xff] }
 0x9f9   : > { %5912 = vmatpush1.bf16.msra.mxu0 %v8567_v6  ;;  %5872 = vmatprep.subr.bf16.mxu1 %v8582_v16  ;;  %v4203_v6 = vld [vmem:[%s11104_s20 + $0x678] sm:$0xff]  ;;  %v8677_v16 = vcombine.low %v4178_v46, %v4186_v47 }
 0x9fa   : > { %5913 = vmatprep.subr.bf16.mxu0 %v8584_v20  ;;  %v8679_v20 = vcombine.low %v4179_v49, %v4187_v52  ;;  %v8696_v21 = vcombine.high %v4195_v4, %v4203_v6  ;;  %v9517_v46 = vld [vmem:[%s11113_s15 + $0x134] ss:$8 sps:$4 sm:$0xff]   ;;  %v9512_v47 = vld [vmem:[%s11113_s15 + $0x30] ss:$8 sps:$4 sm:$0xff]   ;;  %v9520_v52 = vld [vmem:[%s11113_s15 + $0x44] ss:$8 sps:$4 sm:$0xff]  }
 0x9fb   : > { %v9515_v49 = vld [vmem:[%s11113_s15 + $0x130] ss:$8 sps:$4 sm:$0xff]  }
 0x9fc   : > { %5873 = vmatpush1.bf16.msra.mxu1 %v8581_v50  ;;  %v4211_v50 = vld [vmem:[%s11104_s20 + $0x6b8] sm:$0xff] }
 0x9fd   : > { %5914 = vmatpush1.bf16.msra.mxu0 %v8583_v14  ;;  %5874 = vmatprep.subr.bf16.mxu1 %v8598_v25  ;;  %v4219_v14 = vld [vmem:[%s11104_s20 + $0x6f8] sm:$0xff]  ;;  %v8693_v25 = vcombine.low %v4194_v1, %v4202_v3 }
 0x9fe   : > { %5915 = vmatprep.subr.bf16.mxu0 %v8600_v26  ;;  %v8695_v26 = vcombine.low %v4195_v4, %v4203_v6  ;;  %v8712_v32 = vcombine.high %v4211_v50, %v4219_v14  ;;  %v9526_v1 = vld [vmem:[%s11113_s15 + $0x54] ss:$8 sps:$4 sm:$0xff]   ;;  %v9524_v4 = vld [vmem:[%s11113_s15 + $0x50] ss:$8 sps:$4 sm:$0xff]  }
 0x9ff   : > { %v9529_v3 = vld [vmem:[%s11113_s15 + $0x154] ss:$8 sps:$4 sm:$0xff]  }
 0xa00   : > { %5875 = vmatpush1.bf16.msra.mxu1 %v8597_v62  ;;  %v4227_v62 = vld [vmem:[%s11104_s20 + $0x738] sm:$0xff] }
 0xa01   : > { %5916 = vmatpush1.bf16.msra.mxu0 %v8599_v58  ;;  %5876 = vmatprep.subr.bf16.mxu1 %v8614_v59  ;;  %v4235_v58 = vld [vmem:[%s11104_s20 + $0x778] sm:$0xff]  ;;  %v8709_v59 = vcombine.low %v4210_v17, %v4218_v37  ;;  %v9535_v37 = vld [vmem:[%s11113_s15 + $0x164] ss:$8 sps:$4 sm:$0xff]  }
 0xa02   : > { %5917 = vmatprep.subr.bf16.mxu0 %v8616_v35  ;;  %v8711_v35 = vcombine.low %v4211_v50, %v4219_v14  ;;  %v8728_v12 = vcombine.high %v4227_v62, %v4235_v58 }
 0xa04   : > { %5877 = vmatpush1.bf16.msra.mxu1 %v8613_v54  ;;  %v4243_v54 = vld [vmem:[%s11104_s20 + $0x7b8] sm:$0xff] }
 0xa05   : > { %5918 = vmatpush1.bf16.msra.mxu0 %v8615_v41  ;;  %5878 = vmatprep.subr.bf16.mxu1 %v8630_v2  ;;  %v4251_v41 = vld [vmem:[%s11104_s20 + $0x7f8] sm:$0xff]  ;;  %v8725_v2 = vcombine.low %v4226_v34, %v4234_v19  ;;  %v9530_v34 = vld [vmem:[%s11113_s15 + $0x60] ss:$8 sps:$4 sm:$0xff]  }
 0xa06   : > { %5919 = vmatprep.subr.bf16.mxu0 %v8632_v30  ;;  %v8727_v30 = vcombine.low %v4227_v62, %v4235_v58  ;;  %v8744_v43 = vcombine.high %v4243_v54, %v4251_v41  ;;  %v8743_v36 = vcombine.low %v4243_v54, %v4251_v41  ;;  %v9533_v58 = vld [vmem:[%s11113_s15 + $0x160] ss:$8 sps:$4 sm:$0xff]   ;;  %v9536_v54 = vld [vmem:[%s11113_s15 + $0x70] ss:$8 sps:$4 sm:$0xff]  }
 0xa07   : > { %v9539_v41 = vld [vmem:[%s11113_s15 + $0x170] ss:$8 sps:$4 sm:$0xff]  }
 0xa08   : > { %5879 = vmatpush1.bf16.msra.mxu1 %v8629_v28  ;;  %v9496_v28 = vld [vmem:[%s11113_s15 + $0x4] ss:$8 sps:$4 sm:$0xff]  }
 0xa09   : > { %5920 = vmatpush1.bf16.msra.mxu0 %v8631_v40  ;;  %5880 = vmatprep.subr.bf16.mxu1 %v8646_v38  ;;  %v9499_v40 = vld [vmem:[%s11113_s15 + $0x104] ss:$8 sps:$4 sm:$0xff]   ;;  %v9494_v38 = vld [vmem:[%s11113_s15] ss:$8 sps:$4 sm:$0xff]  }
 0xa0a   : > { %5921 = vmatprep.subr.bf16.mxu0 %v8648_v60  ;;  %v9497_v60 = vld [vmem:[%s11113_s15 + $0x100] ss:$8 sps:$4 sm:$0xff]  }
 0xa0c   : > { %5881 = vmatpush1.bf16.msra.mxu1 %v8645_v31  ;;  %v9508_v31 = vld [vmem:[%s11113_s15 + $0x24] ss:$8 sps:$4 sm:$0xff]  }
 0xa0d   : > { %5922 = vmatpush1.bf16.msra.mxu0 %v8647_v63  ;;  %5882 = vmatprep.subr.bf16.mxu1 %v8662_v51  ;;  %v9511_v63 = vld [vmem:[%s11113_s15 + $0x124] ss:$8 sps:$4 sm:$0xff]   ;;  %v9506_v51 = vld [vmem:[%s11113_s15 + $0x20] ss:$8 sps:$4 sm:$0xff]  }
 0xa0e   : > { %5923 = vmatprep.subr.bf16.mxu0 %v8664_v33  ;;  %v9509_v33 = vld [vmem:[%s11113_s15 + $0x120] ss:$8 sps:$4 sm:$0xff]  }
 0xa10   : > { %5883 = vmatpush1.bf16.msra.mxu1 %v8661_v53  ;;  %v9523_v53 = vld [vmem:[%s11113_s15 + $0x144] ss:$8 sps:$4 sm:$0xff]  }
 0xa11   : > { %5924 = vmatpush1.bf16.msra.mxu0 %v8663_v56  ;;  %5884 = vmatprep.subr.bf16.mxu1 %v8678_v57  ;;  %v9518_v56 = vld [vmem:[%s11113_s15 + $0x40] ss:$8 sps:$4 sm:$0xff]  }
 0xa12   : > { %5925 = vmatprep.subr.bf16.mxu0 %v8680_v0  ;;  %v9521_v57 = vld [vmem:[%s11113_s15 + $0x140] ss:$8 sps:$4 sm:$0xff]  }
 0xa13   : > { %v12013_v0 = vld [vmem:[%s11110_s21] sm:$0xff] }
 0xa14   : > { %5885 = vmatpush1.bf16.msra.mxu1 %v8677_v16  ;;  %v4263_v6 = vrot.slane %v12013_v0, %v11229_v24  ;;  %v4271_v16 = vrot.slane %v12013_v0, %v11224_v22 }
 0xa15   : > { %5926 = vmatpush1.bf16.msra.mxu0 %v8679_v20  ;;  %5886 = vmatprep.subr.bf16.mxu1 %v8694_v5  ;;  %v9527_v20 = vld [vmem:[%s11113_s15 + $0x150] ss:$8 sps:$4 sm:$0xff]   ;;  %v9532_v5 = vld [vmem:[%s11113_s15 + $0x64] ss:$8 sps:$4 sm:$0xff]  }
 0xa16   : > { %5927 = vmatprep.subr.bf16.mxu0 %v8696_v21 }
 0xa18   : > { %5887 = vmatpush1.bf16.msra.mxu1 %v8693_v25 }
 0xa19   : > { %5928 = vmatpush1.bf16.msra.mxu0 %v8695_v26  ;;  %5888 = vmatprep.subr.bf16.mxu1 %v8710_v27 }
 0xa1a   : > { %5929 = vmatprep.subr.bf16.mxu0 %v8712_v32 }
 0xa1c   : > { %5889 = vmatpush1.bf16.msra.mxu1 %v8709_v59  ;;  %v9538_v59 = vld [vmem:[%s11113_s15 + $0x74] ss:$8 sps:$4 sm:$0xff]  }
 0xa1d   : > { %5930 = vmatpush1.bf16.msra.mxu0 %v8711_v35  ;;  %5890 = vmatprep.subr.bf16.mxu1 %v8726_v11 }
 0xa1e   : > { %5931 = vmatprep.subr.bf16.mxu0 %v8728_v12  ;;  %v9541_v12 = vld [vmem:[%s11113_s15 + $0x174] ss:$8 sps:$4 sm:$0xff]  }
 0xa20   : > { %5891 = vmatpush1.bf16.msra.mxu1 %v8725_v2  ;;  %v9544_v2 = vld [vmem:[%s11113_s15 + $0x84] ss:$8 sps:$4 sm:$0xff]  }
 0xa21   : > { %5932 = vmatpush1.bf16.msra.mxu0 %v8727_v30  ;;  %5892 = vmatprep.subr.bf16.mxu1 %v8742_v23  ;;  %v9547_v30 = vld [vmem:[%s11113_s15 + $0x184] ss:$8 sps:$4 sm:$0xff]   ;;  %v9542_v23 = vld [vmem:[%s11113_s15 + $0x80] ss:$8 sps:$4 sm:$0xff]  }
 0xa22   : > { %5933 = vmatprep.subr.bf16.mxu0 %v8744_v43  ;;  %v9545_v43 = vld [vmem:[%s11113_s15 + $0x180] ss:$8 sps:$4 sm:$0xff]  }
 0xa24   : > { %5893 = vmatpush1.bf16.msra.mxu1 %v8741_v9  ;;  %v9550_v9 = vld [vmem:[%s11113_s15 + $0x94] ss:$8 sps:$4 sm:$0xff]  }
 0xa25   : > { %5934 = vmatpush1.bf16.msra.mxu0 %v8743_v36  ;;  %7524 = vmatprep.subr.bf16.mxu1 %v9496_v28  ;;  %v9553_v36 = vld [vmem:[%s11113_s15 + $0x194] ss:$8 sps:$4 sm:$0xff]   ;;  %v9548_v28 = vld [vmem:[%s11113_s15 + $0x90] ss:$8 sps:$4 sm:$0xff]  }
 0xa26   : > { %7565 = vmatprep.subr.bf16.mxu0 %v9499_v40  ;;  %v9551_v40 = vld [vmem:[%s11113_s15 + $0x190] ss:$8 sps:$4 sm:$0xff]  }
 0xa27   : > { %5895 = vmatmul.mubr.bf16.vlgmr.msra.gmra.mrb[80].mxu1 %v11786_v39 }
 0xa28   : > { %5936 = vmatmul.mubr.bf16.vlgmr.msra.gmra.mrb[24].mxu0 %v11786_v39  ;;  %7525 = vmatpush1.bf16.msra.mxu1 %v9494_v38  ;;  %v9514_v39 = vld [vmem:[%s11113_s15 + $0x34] ss:$8 sps:$4 sm:$0xff]   ;;  %v9556_v38 = vld [vmem:[%s11113_s15 + $0xa4] ss:$8 sps:$4 sm:$0xff]  }
 0xa29   : > { %7566 = vmatpush1.bf16.msra.mxu0 %v9497_v60  ;;  %7526 = vmatprep.subr.bf16.mxu1 %v9502_v42  ;;  %v9559_v60 = vld [vmem:[%s11113_s15 + $0x1a4] ss:$8 sps:$4 sm:$0xff]   ;;  %v9554_v42 = vld [vmem:[%s11113_s15 + $0xa0] ss:$8 sps:$4 sm:$0xff]  }
 0xa2a   : > { %7567 = vmatprep.subr.bf16.mxu0 %v9505_v44  ;;  %v9557_v44 = vld [vmem:[%s11113_s15 + $0x1a0] ss:$8 sps:$4 sm:$0xff]  }
 0xa2c   : > { %7527 = vmatpush1.bf16.msra.mxu1 %v9500_v45  ;;  %v9562_v45 = vld [vmem:[%s11113_s15 + $0xb4] ss:$8 sps:$4 sm:$0xff]  }
 0xa2d   : > { %7568 = vmatpush1.bf16.msra.mxu0 %v9503_v48  ;;  %7528 = vmatprep.subr.bf16.mxu1 %v9508_v31  ;;  %v9565_v48 = vld [vmem:[%s11113_s15 + $0x1b4] ss:$8 sps:$4 sm:$0xff]   ;;  %v9560_v31 = vld [vmem:[%s11113_s15 + $0xb0] ss:$8 sps:$4 sm:$0xff]  }
 0xa2e   : > { %7569 = vmatprep.subr.bf16.mxu0 %v9511_v63  ;;  %v9563_v63 = vld [vmem:[%s11113_s15 + $0x1b0] ss:$8 sps:$4 sm:$0xff]  }
 0xa30   : > { %7529 = vmatpush1.bf16.msra.mxu1 %v9506_v51  ;;  %v9568_v51 = vld [vmem:[%s11113_s15 + $0xc4] ss:$8 sps:$4 sm:$0xff]  }
 0xa31   : > { %7570 = vmatpush1.bf16.msra.mxu0 %v9509_v33  ;;  %7530 = vmatprep.subr.bf16.mxu1 %v9514_v39  ;;  %v9571_v33 = vld [vmem:[%s11113_s15 + $0x1c4] ss:$8 sps:$4 sm:$0xff]   ;;  %v9566_v39 = vld [vmem:[%s11113_s15 + $0xc0] ss:$8 sps:$4 sm:$0xff]  }
 0xa32   : > { %7571 = vmatprep.subr.bf16.mxu0 %v9517_v46  ;;  %v9569_v46 = vld [vmem:[%s11113_s15 + $0x1c0] ss:$8 sps:$4 sm:$0xff]  }
 0xa34   : > { %7531 = vmatpush1.bf16.msra.mxu1 %v9512_v47  ;;  %v9574_v47 = vld [vmem:[%s11113_s15 + $0xd4] ss:$8 sps:$4 sm:$0xff]  }
 0xa35   : > { %7572 = vmatpush1.bf16.msra.mxu0 %v9515_v49  ;;  %7532 = vmatprep.subr.bf16.mxu1 %v9520_v52  ;;  %v9577_v49 = vld [vmem:[%s11113_s15 + $0x1d4] ss:$8 sps:$4 sm:$0xff]   ;;  %v9572_v52 = vld [vmem:[%s11113_s15 + $0xd0] ss:$8 sps:$4 sm:$0xff]  }
 0xa36   : > { %7573 = vmatprep.subr.bf16.mxu0 %v9523_v53  ;;  %v4259_v53 = vrot.slane %v12013_v0, %v11211_v10 }
 0xa38   : > { %7533 = vmatpush1.bf16.msra.mxu1 %v9518_v56  ;;  %v9575_v56 = vld [vmem:[%s11113_s15 + $0x1d0] ss:$8 sps:$4 sm:$0xff]  }
 0xa39   : > { %7574 = vmatpush1.bf16.msra.mxu0 %v9521_v57  ;;  %7534 = vmatprep.subr.bf16.mxu1 %v9526_v1  ;;  %v9580_v57 = vld [vmem:[%s11113_s15 + $0xe4] ss:$8 sps:$4 sm:$0xff]   ;;  %v4267_v1 = vrot.slane %v12013_v0, %v11205_v8 }
 0xa3a   : > { %v12024_v21 = vpop.f32.mrb[68].mxu1  ;;  %v12026_v17 = vpop.f32.mrb[12].mxu0  ;;  %7575 = vmatprep.subr.bf16.mxu0 %v9529_v3  ;;  %v9583_v3 = vld [vmem:[%s11113_s15 + $0x1e4] ss:$8 sps:$4 sm:$0xff]  }
 0xa3b   : > { %v5652_v50 = vpop.f32.mrb[69].mxu1  ;;  %v5693_v14 = vpop.f32.mrb[13].mxu0 }
 0xa3c   : > { %v5653_v25 = vadd.f32 %v5652_v50, %v4263_v6  ;;  %v5694_v26 = vadd.f32 %v5693_v14, %v4271_v16  ;;  %7535 = vmatpush1.bf16.msra.mxu1 %v9524_v4  ;;  %v5654_v27 = vpop.f32.mrb[70].mxu1  ;;  %v5695_v32 = vpop.f32.mrb[14].mxu0  ;;  %v9578_v4 = vld [vmem:[%s11113_s15 + $0xe0] ss:$8 sps:$4 sm:$0xff]   ;;  %v5651_v6 = vadd.f32 %v12024_v21, %v4259_v53  ;;  %v9584_v50 = vld [vmem:[%s11113_s15 + $0xf0] ss:$8 sps:$4 sm:$0xff]  }
 0xa3d   : > { %7576 = vmatpush1.bf16.msra.mxu0 %v9527_v20  ;;  %v5655_v19 = vpop.f32.mrb[71].mxu1  ;;  %v5696_v62 = vpop.f32.mrb[15].mxu0  ;;  %7536 = vmatprep.subr.bf16.mxu1 %v9532_v5  ;;  %v9581_v16 = vld [vmem:[%s11113_s15 + $0x1e0] ss:$8 sps:$4 sm:$0xff]   ;;  %v9586_v20 = vld [vmem:[%s11113_s15 + $0xf4] ss:$8 sps:$4 sm:$0xff]   ;;  %v5692_v5 = vadd.f32 %v12026_v17, %v4267_v1 }
 0xa3e   : > { %v5945_v35 = vmax.f32 %v5653_v25, 0.0  ;;  %v5947_v11 = vmax.f32 %v5694_v26, 0.0  ;;  %7577 = vmatprep.subr.bf16.mxu0 %v9535_v37  ;;  %v9589_v37 = vld [vmem:[%s11113_s15 + $0x1f4] ss:$8 sps:$4 sm:$0xff]   ;;  %v5944_v14 = vmax.f32 %v5651_v6, 0.0 }
 0xa3f   : > { %v9587_v25 = vld [vmem:[%s11113_s15 + $0x1f0] ss:$8 sps:$4 sm:$0xff]   ;;  %v9592_v21 = vld [vmem:[%s11113_s15 + $0x204] ss:$8 sps:$4 sm:$0xff]   ;;  %v5946_v26 = vmax.f32 %v5692_v5, 0.0 }
 0xa40   : > { %v5961_v61 = vpack.c.bf16 %v5945_v35, %v5945_v35  ;;  %v5963_v13 = vpack.c.bf16 %v5947_v11, %v5947_v11  ;;  %7537 = vmatpush1.bf16.msra.mxu1 %v9530_v34  ;;  %v9595_v27 = vld [vmem:[%s11113_s15 + $0x304] ss:$8 sps:$4 sm:$0xff]   ;;  %v9590_v32 = vld [vmem:[%s11113_s15 + $0x200] ss:$8 sps:$4 sm:$0xff]   ;;  %v5960_v17 = vpack.c.bf16 %v5944_v14, %v5944_v14  ;;  %v9598_v19 = vld [vmem:[%s11113_s15 + $0x214] ss:$8 sps:$4 sm:$0xff]  }
 0xa41   : > { %7578 = vmatpush1.bf16.msra.mxu0 %v9533_v58  ;;  %7538 = vmatprep.subr.bf16.mxu1 %v9538_v59  ;;  %v9593_v34 = vld [vmem:[%s11113_s15 + $0x300] ss:$8 sps:$4 sm:$0xff]   ;;  %v5962_v62 = vpack.c.bf16 %v5946_v26, %v5946_v26  ;;  %v9601_v58 = vld [vmem:[%s11113_s15 + $0x314] ss:$8 sps:$4 sm:$0xff]   ;;  %v9596_v59 = vld [vmem:[%s11113_s15 + $0x210] ss:$8 sps:$4 sm:$0xff]  }
 0xa42   : > { %7556 = vmatprep.mubr.bf16.mxu1 %v5961_v61  ;;  %7579 = vmatprep.subr.bf16.mxu0 %v9541_v12  ;;  %v9599_v35 = vld [vmem:[%s11113_s15 + $0x310] ss:$8 sps:$4 sm:$0xff]   ;;  %v9604_v11 = vld [vmem:[%s11113_s15 + $0x224] ss:$8 sps:$4 sm:$0xff]   ;;  %v9602_v61 = vld [vmem:[%s11113_s15 + $0x220] ss:$8 sps:$4 sm:$0xff]  }
 0xa43   : > { %7597 = vmatprep.mubr.bf16.mxu0 %v5963_v13  ;;  %v9607_v12 = vld [vmem:[%s11113_s15 + $0x324] ss:$8 sps:$4 sm:$0xff]   ;;  %v9605_v13 = vld [vmem:[%s11113_s15 + $0x320] ss:$8 sps:$4 sm:$0xff]  }
 0xa44   : > { %7539 = vmatpush1.bf16.msra.mxu1 %v9536_v54  ;;  %v9610_v54 = vld [vmem:[%s11113_s15 + $0x234] ss:$8 sps:$4 sm:$0xff]   ;;  %v9626_v53 = vld [vmem:[%s11113_s15 + $0x260] ss:$8 sps:$4 sm:$0xff]   ;;  %v9640_v14 = vld [vmem:[%s11113_s15 + $0x284] ss:$8 sps:$4 sm:$0xff]  }
 0xa45   : > { %7580 = vmatpush1.bf16.msra.mxu0 %v9539_v41  ;;  %7540 = vmatprep.subr.bf16.mxu1 %v9544_v2  ;;  %v9613_v41 = vld [vmem:[%s11113_s15 + $0x334] ss:$8 sps:$4 sm:$0xff]   ;;  %v9608_v2 = vld [vmem:[%s11113_s15 + $0x230] ss:$8 sps:$4 sm:$0xff]   ;;  %v9629_v1 = vld [vmem:[%s11113_s15 + $0x360] ss:$8 sps:$4 sm:$0xff]  }
 0xa46   : > { %7581 = vmatprep.subr.bf16.mxu0 %v9547_v30  ;;  %v9611_v30 = vld [vmem:[%s11113_s15 + $0x330] ss:$8 sps:$4 sm:$0xff]   ;;  %v9641_v26 = vld [vmem:[%s11113_s15 + $0x380] ss:$8 sps:$4 sm:$0xff]  }
 0xa48   : > { %7541 = vmatpush1.bf16.msra.mxu1 %v9542_v23  ;;  %v9616_v23 = vld [vmem:[%s11113_s15 + $0x244] ss:$8 sps:$4 sm:$0xff]  }
 0xa49   : > { %7582 = vmatpush1.bf16.msra.mxu0 %v9545_v43  ;;  %7542 = vmatprep.subr.bf16.mxu1 %v9550_v9  ;;  %v9619_v43 = vld [vmem:[%s11113_s15 + $0x344] ss:$8 sps:$4 sm:$0xff]   ;;  %v9614_v9 = vld [vmem:[%s11113_s15 + $0x240] ss:$8 sps:$4 sm:$0xff]  }
 0xa4a   : > { %7583 = vmatprep.subr.bf16.mxu0 %v9553_v36  ;;  %v4286_v36 = vsub.s32 7, %v11202_v7 }
 0xa4c   : > { %7543 = vmatpush1.bf16.msra.mxu1 %v9548_v28  ;;  %v9617_v28 = vld [vmem:[%s11113_s15 + $0x340] ss:$8 sps:$4 sm:$0xff]  }
 0xa4d   : > { %7584 = vmatpush1.bf16.msra.mxu0 %v9551_v40  ;;  %7544 = vmatprep.subr.bf16.mxu1 %v9556_v38  ;;  %v9622_v40 = vld [vmem:[%s11113_s15 + $0x254] ss:$8 sps:$4 sm:$0xff]  }
 0xa4e   : > { %7585 = vmatprep.subr.bf16.mxu0 %v9559_v60  ;;  %v9625_v38 = vld [vmem:[%s11113_s15 + $0x354] ss:$8 sps:$4 sm:$0xff]   ;;  %v4279_v60 = vrot.slane %v12013_v0, %v11452_v29 }
 0xa50   : > { %7545 = vmatpush1.bf16.msra.mxu1 %v9554_v42  ;;  %v4287_v42 = vrot.slane %v12013_v0, %v4286_v36 }
 0xa51   : > { %7586 = vmatpush1.bf16.msra.mxu0 %v9557_v44  ;;  %7546 = vmatprep.subr.bf16.mxu1 %v9562_v45  ;;  %v9620_v44 = vld [vmem:[%s11113_s15 + $0x250] ss:$8 sps:$4 sm:$0xff]  }
 0xa52   : > { %7587 = vmatprep.subr.bf16.mxu0 %v9565_v48  ;;  %v9623_v45 = vld [vmem:[%s11113_s15 + $0x350] ss:$8 sps:$4 sm:$0xff]   ;;  %v9628_v48 = vld [vmem:[%s11113_s15 + $0x264] ss:$8 sps:$4 sm:$0xff]  }
 0xa54   : > { %7547 = vmatpush1.bf16.msra.mxu1 %v9560_v31 }
 0xa55   : > { %7588 = vmatpush1.bf16.msra.mxu0 %v9563_v63  ;;  %7548 = vmatprep.subr.bf16.mxu1 %v9568_v51  ;;  %v9631_v51 = vld [vmem:[%s11113_s15 + $0x364] ss:$8 sps:$4 sm:$0xff]  }
 0xa56   : > { %7589 = vmatprep.subr.bf16.mxu0 %v9571_v33 }
 0xa58   : > { %7549 = vmatpush1.bf16.msra.mxu1 %v9566_v39 }
 0xa59   : > { %7590 = vmatpush1.bf16.msra.mxu0 %v9569_v46  ;;  %7550 = vmatprep.subr.bf16.mxu1 %v9574_v47 }
 0xa5a   : > { %7591 = vmatprep.subr.bf16.mxu0 %v9577_v49 }
 0xa5c   : > { %7551 = vmatpush1.bf16.msra.mxu1 %v9572_v52 }
 0xa5d   : > { %7592 = vmatpush1.bf16.msra.mxu0 %v9575_v56  ;;  %7552 = vmatprep.subr.bf16.mxu1 %v9580_v57 }
 0xa5e   : > { %7593 = vmatprep.subr.bf16.mxu0 %v9583_v3  ;;  %v9634_v3 = vld [vmem:[%s11113_s15 + $0x274] ss:$8 sps:$4 sm:$0xff]  }
 0xa60   : > { %7553 = vmatpush1.bf16.msra.mxu1 %v9578_v4 }
 0xa61   : > { %7594 = vmatpush1.bf16.msra.mxu0 %v9581_v16  ;;  %7554 = vmatprep.subr.bf16.mxu1 %v9586_v20  ;;  %v9637_v16 = vld [vmem:[%s11113_s15 + $0x374] ss:$8 sps:$4 sm:$0xff]  }
 0xa62   : > { %7595 = vmatprep.subr.bf16.mxu0 %v9589_v37  ;;  %v9632_v37 = vld [vmem:[%s11113_s15 + $0x270] ss:$8 sps:$4 sm:$0xff]  }
 0xa64   : > { %7555 = vmatpush1.bf16.msra.mxu1 %v9584_v50  ;;  %v9635_v50 = vld [vmem:[%s11113_s15 + $0x370] ss:$8 sps:$4 sm:$0xff]  }
 0xa65   : > { %7596 = vmatpush1.bf16.msra.mxu0 %v9587_v25  ;;  %7606 = vmatprep.subr.bf16.mxu1 %v9592_v21  ;;  %v9643_v25 = vld [vmem:[%s11113_s15 + $0x384] ss:$8 sps:$4 sm:$0xff]   ;;  %v9638_v21 = vld [vmem:[%s11113_s15 + $0x280] ss:$8 sps:$4 sm:$0xff]  }
 0xa66   : > { %7647 = vmatprep.subr.bf16.mxu0 %v9595_v27  ;;  %v9646_v27 = vld [vmem:[%s11113_s15 + $0x294] ss:$8 sps:$4 sm:$0xff]  }
 0xa67   : > { %7557 = vmatmul.mubr.bf16.vlgmr.msra.gmra.mrb[84].mxu1 %v5960_v17  ;;  %v9644_v17 = vld [vmem:[%s11113_s15 + $0x290] ss:$8 sps:$4 sm:$0xff]  }
 0xa68   : > { %7598 = vmatmul.mubr.bf16.vlgmr.msra.gmra.mrb[28].mxu0 %v5962_v62  ;;  %7607 = vmatpush1.bf16.msra.mxu1 %v9590_v32  ;;  %v9649_v32 = vld [vmem:[%s11113_s15 + $0x394] ss:$8 sps:$4 sm:$0xff]   ;;  %v9655_v62 = vld [vmem:[%s11113_s15 + $0x3a4] ss:$8 sps:$4 sm:$0xff]  }
 0xa69   : > { %7648 = vmatpush1.bf16.msra.mxu0 %v9593_v34  ;;  %7608 = vmatprep.subr.bf16.mxu1 %v9598_v19  ;;  %v9647_v34 = vld [vmem:[%s11113_s15 + $0x390] ss:$8 sps:$4 sm:$0xff]   ;;  %v9652_v19 = vld [vmem:[%s11113_s15 + $0x2a4] ss:$8 sps:$4 sm:$0xff]  }
 0xa6a   : > { %7649 = vmatprep.subr.bf16.mxu0 %v9601_v58  ;;  %v9650_v58 = vld [vmem:[%s11113_s15 + $0x2a0] ss:$8 sps:$4 sm:$0xff]  }
 0xa6c   : > { %7609 = vmatpush1.bf16.msra.mxu1 %v9596_v59  ;;  %v9653_v59 = vld [vmem:[%s11113_s15 + $0x3a0] ss:$8 sps:$4 sm:$0xff]  }
 0xa6d   : > { %7650 = vmatpush1.bf16.msra.mxu0 %v9599_v35  ;;  %7610 = vmatprep.subr.bf16.mxu1 %v9604_v11  ;;  %v9658_v35 = vld [vmem:[%s11113_s15 + $0x2b4] ss:$8 sps:$4 sm:$0xff]  }
 0xa6e   : > { %7651 = vmatprep.subr.bf16.mxu0 %v9607_v12  ;;  %v9661_v11 = vld [vmem:[%s11113_s15 + $0x3b4] ss:$8 sps:$4 sm:$0xff]   ;;  %v9656_v12 = vld [vmem:[%s11113_s15 + $0x2b0] ss:$8 sps:$4 sm:$0xff]  }
 0xa70   : > { %7611 = vmatpush1.bf16.msra.mxu1 %v9602_v61  ;;  %v9659_v61 = vld [vmem:[%s11113_s15 + $0x3b0] ss:$8 sps:$4 sm:$0xff]  }
 0xa71   : > { %7652 = vmatpush1.bf16.msra.mxu0 %v9605_v13  ;;  %7612 = vmatprep.subr.bf16.mxu1 %v9610_v54  ;;  %v9664_v13 = vld [vmem:[%s11113_s15 + $0x2c4] ss:$8 sps:$4 sm:$0xff]  }
 0xa72   : > { %7653 = vmatprep.subr.bf16.mxu0 %v9613_v41  ;;  %v9667_v54 = vld [vmem:[%s11113_s15 + $0x3c4] ss:$8 sps:$4 sm:$0xff]   ;;  %v9662_v41 = vld [vmem:[%s11113_s15 + $0x2c0] ss:$8 sps:$4 sm:$0xff]  }
 0xa74   : > { %7613 = vmatpush1.bf16.msra.mxu1 %v9608_v2  ;;  %v9665_v2 = vld [vmem:[%s11113_s15 + $0x3c0] ss:$8 sps:$4 sm:$0xff]  }
 0xa75   : > { %7654 = vmatpush1.bf16.msra.mxu0 %v9611_v30  ;;  %7614 = vmatprep.subr.bf16.mxu1 %v9616_v23  ;;  %v9670_v30 = vld [vmem:[%s11113_s15 + $0x2d4] ss:$8 sps:$4 sm:$0xff]   ;;  %v4282_v23 = vsub.s32 6, %v11202_v7  ;;  %v9872_v7 = vld [vmem:[%s11113_s15 + $0x6f0] ss:$8 sps:$4 sm:$0xff]  }
 0xa76   : > { %7655 = vmatprep.subr.bf16.mxu0 %v9619_v43  ;;  %v9673_v43 = vld [vmem:[%s11113_s15 + $0x3d4] ss:$8 sps:$4 sm:$0xff]  }
 0xa78   : > { %7615 = vmatpush1.bf16.msra.mxu1 %v9614_v9  ;;  %v9668_v9 = vld [vmem:[%s11113_s15 + $0x2d0] ss:$8 sps:$4 sm:$0xff]  }
 0xa79   : > { %7656 = vmatpush1.bf16.msra.mxu0 %v9617_v28  ;;  %7616 = vmatprep.subr.bf16.mxu1 %v9622_v40  ;;  %v4275_v28 = vrot.slane %v12013_v0, %v11443_v18  ;;  %v9671_v40 = vld [vmem:[%s11113_s15 + $0x3d0] ss:$8 sps:$4 sm:$0xff]  }
 0xa7a   : > { %v12104_v31 = vpop.f32.mrb[72].mxu1  ;;  %v12106_v63 = vpop.f32.mrb[16].mxu0  ;;  %7657 = vmatprep.subr.bf16.mxu0 %v9625_v38  ;;  %v9676_v38 = vld [vmem:[%s11113_s15 + $0x2e4] ss:$8 sps:$4 sm:$0xff]  }
 0xa7b   : > { %v5734_v33 = vpop.f32.mrb[73].mxu1  ;;  %v5775_v39 = vpop.f32.mrb[17].mxu0 }
 0xa7c   : > { %v5735_v46 = vadd.f32 %v5734_v33, %v4279_v60  ;;  %v5776_v47 = vadd.f32 %v5775_v39, %v4287_v42  ;;  %v5736_v49 = vpop.f32.mrb[74].mxu1  ;;  %v5777_v52 = vpop.f32.mrb[18].mxu0  ;;  %7617 = vmatpush1.bf16.msra.mxu1 %v9620_v44  ;;  %v4283_v60 = vrot.slane %v12013_v0, %v4282_v23  ;;  %v9679_v42 = vld [vmem:[%s11113_s15 + $0x3e4] ss:$8 sps:$4 sm:$0xff]   ;;  %v9674_v44 = vld [vmem:[%s11113_s15 + $0x2e0] ss:$8 sps:$4 sm:$0xff]  }
 0xa7d   : > { %7658 = vmatpush1.bf16.msra.mxu0 %v9623_v45  ;;  %v5737_v56 = vpop.f32.mrb[75].mxu1  ;;  %v5778_v57 = vpop.f32.mrb[19].mxu0  ;;  %7618 = vmatprep.subr.bf16.mxu1 %v9628_v48  ;;  %v5733_v45 = vadd.f32 %v12104_v31, %v4275_v28  ;;  %v9677_v48 = vld [vmem:[%s11113_s15 + $0x3e0] ss:$8 sps:$4 sm:$0xff]   ;;  %v9685_v39 = vld [vmem:[%s11113_s15 + $0x3f4] ss:$8 sps:$4 sm:$0xff]  }
 0xa7e   : > { %v5949_v4 = vmax.f32 %v5735_v46, 0.0  ;;  %v5951_v6 = vmax.f32 %v5776_v47, 0.0  ;;  %7659 = vmatprep.subr.bf16.mxu0 %v9631_v51  ;;  %v9682_v51 = vld [vmem:[%s11113_s15 + $0x2f4] ss:$8 sps:$4 sm:$0xff]   ;;  %v5774_v33 = vadd.f32 %v12106_v63, %v4283_v60  ;;  %v9680_v0 = vld [vmem:[%s11113_s15 + $0x2f0] ss:$8 sps:$4 sm:$0xff]  }
 0xa7f   : > { %v5948_v46 = vmax.f32 %v5733_v45, 0.0  ;;  %v9683_v47 = vld [vmem:[%s11113_s15 + $0x3f0] ss:$8 sps:$4 sm:$0xff]   ;;  %v9688_v31 = vld [vmem:[%s11113_s15 + $0x404] ss:$8 sps:$4 sm:$0xff]  }
 0xa80   : > { %v5965_v20 = vpack.c.bf16 %v5949_v4, %v5949_v4  ;;  %v5967_v5 = vpack.c.bf16 %v5951_v6, %v5951_v6  ;;  %7619 = vmatpush1.bf16.msra.mxu1 %v9626_v53  ;;  %v5950_v49 = vmax.f32 %v5774_v33, 0.0  ;;  %v9691_v52 = vld [vmem:[%s11113_s15 + $0x504] ss:$8 sps:$4 sm:$0xff]   ;;  %v9686_v53 = vld [vmem:[%s11113_s15 + $0x400] ss:$8 sps:$4 sm:$0xff]  }
 0xa81   : > { %7660 = vmatpush1.bf16.msra.mxu0 %v9629_v1  ;;  %7620 = vmatprep.subr.bf16.mxu1 %v9634_v3  ;;  %v5964_v63 = vpack.c.bf16 %v5948_v46, %v5948_v46  ;;  %v9689_v56 = vld [vmem:[%s11113_s15 + $0x500] ss:$8 sps:$4 sm:$0xff]   ;;  %v9694_v57 = vld [vmem:[%s11113_s15 + $0x414] ss:$8 sps:$4 sm:$0xff]   ;;  %v9692_v4 = vld [vmem:[%s11113_s15 + $0x410] ss:$8 sps:$4 sm:$0xff]  }
 0xa82   : > { %7638 = vmatprep.mubr.bf16.mxu1 %v5965_v20  ;;  %7679 = vmatprep.mubr.bf16.mxu0 %v5967_v5  ;;  %v5966_v1 = vpack.c.bf16 %v5950_v49, %v5950_v49  ;;  %v9697_v3 = vld [vmem:[%s11113_s15 + $0x514] ss:$8 sps:$4 sm:$0xff]   ;;  %v9695_v6 = vld [vmem:[%s11113_s15 + $0x510] ss:$8 sps:$4 sm:$0xff]   ;;  %v9703_v20 = vld [vmem:[%s11113_s15 + $0x524] ss:$8 sps:$4 sm:$0xff]  }
 0xa83   : > { %7661 = vmatprep.subr.bf16.mxu0 %v9637_v16  ;;  %v9700_v16 = vld [vmem:[%s11113_s15 + $0x424] ss:$8 sps:$4 sm:$0xff]   ;;  %v9698_v5 = vld [vmem:[%s11113_s15 + $0x420] ss:$8 sps:$4 sm:$0xff]   ;;  %v9730_v60 = vld [vmem:[%s11113_s15 + $0x474] ss:$8 sps:$4 sm:$0xff]  }
 0xa84   : > { %7621 = vmatpush1.bf16.msra.mxu1 %v9632_v37  ;;  %v9701_v37 = vld [vmem:[%s11113_s15 + $0x520] ss:$8 sps:$4 sm:$0xff]   ;;  %v9733_v45 = vld [vmem:[%s11113_s15 + $0x574] ss:$8 sps:$4 sm:$0xff]   ;;  %v9728_v33 = vld [vmem:[%s11113_s15 + $0x470] ss:$8 sps:$4 sm:$0xff]  }
 0xa85   : > { %7662 = vmatpush1.bf16.msra.mxu0 %v9635_v50  ;;  %7622 = vmatprep.subr.bf16.mxu1 %v9640_v14  ;;  %v9706_v50 = vld [vmem:[%s11113_s15 + $0x434] ss:$8 sps:$4 sm:$0xff]   ;;  %v9736_v46 = vld [vmem:[%s11113_s15 + $0x484] ss:$8 sps:$4 sm:$0xff]   ;;  %v9737_v49 = vld [vmem:[%s11113_s15 + $0x580] ss:$8 sps:$4 sm:$0xff]  }
 0xa86   : > { %7663 = vmatprep.subr.bf16.mxu0 %v9643_v25  ;;  %v9709_v14 = vld [vmem:[%s11113_s15 + $0x534] ss:$8 sps:$4 sm:$0xff]   ;;  %v9704_v25 = vld [vmem:[%s11113_s15 + $0x430] ss:$8 sps:$4 sm:$0xff]  }
 0xa88   : > { %7623 = vmatpush1.bf16.msra.mxu1 %v9638_v21  ;;  %v9707_v21 = vld [vmem:[%s11113_s15 + $0x530] ss:$8 sps:$4 sm:$0xff]  }
 0xa89   : > { %7664 = vmatpush1.bf16.msra.mxu0 %v9641_v26  ;;  %7624 = vmatprep.subr.bf16.mxu1 %v9646_v27  ;;  %v9712_v26 = vld [vmem:[%s11113_s15 + $0x444] ss:$8 sps:$4 sm:$0xff]  }
 0xa8a   : > { %7665 = vmatprep.subr.bf16.mxu0 %v9649_v32  ;;  %v9715_v27 = vld [vmem:[%s11113_s15 + $0x544] ss:$8 sps:$4 sm:$0xff]   ;;  %v9710_v32 = vld [vmem:[%s11113_s15 + $0x440] ss:$8 sps:$4 sm:$0xff]  }
 0xa8c   : > { %7625 = vmatpush1.bf16.msra.mxu1 %v9644_v17  ;;  %v9713_v17 = vld [vmem:[%s11113_s15 + $0x540] ss:$8 sps:$4 sm:$0xff]  }
 0xa8d   : > { %7666 = vmatpush1.bf16.msra.mxu0 %v9647_v34  ;;  %7626 = vmatprep.subr.bf16.mxu1 %v9652_v19  ;;  %v12176_v34 = vld [vmem:[%s11110_s21 + $0x8] sm:$0xff] }
 0xa8e   : > { %7667 = vmatprep.subr.bf16.mxu0 %v9655_v62  ;;  %v9718_v19 = vld [vmem:[%s11113_s15 + $0x454] ss:$8 sps:$4 sm:$0xff]  }
 0xa8f   : > { %v9721_v62 = vld [vmem:[%s11113_s15 + $0x554] ss:$8 sps:$4 sm:$0xff]  }
 0xa90   : > { %7627 = vmatpush1.bf16.msra.mxu1 %v9650_v58  ;;  %v4295_v58 = vrot.slane %v12176_v34, %v11229_v24 }
 0xa91   : > { %7668 = vmatpush1.bf16.msra.mxu0 %v9653_v59  ;;  %7628 = vmatprep.subr.bf16.mxu1 %v9658_v35  ;;  %v9716_v59 = vld [vmem:[%s11113_s15 + $0x450] ss:$8 sps:$4 sm:$0xff]   ;;  %v4303_v35 = vrot.slane %v12176_v34, %v11224_v22 }
 0xa92   : > { %7669 = vmatprep.subr.bf16.mxu0 %v9661_v11  ;;  %v9719_v11 = vld [vmem:[%s11113_s15 + $0x550] ss:$8 sps:$4 sm:$0xff]  }
 0xa94   : > { %7629 = vmatpush1.bf16.msra.mxu1 %v9656_v12  ;;  %v9724_v12 = vld [vmem:[%s11113_s15 + $0x464] ss:$8 sps:$4 sm:$0xff]  }
 0xa95   : > { %7670 = vmatpush1.bf16.msra.mxu0 %v9659_v61  ;;  %7630 = vmatprep.subr.bf16.mxu1 %v9664_v13  ;;  %v9727_v13 = vld [vmem:[%s11113_s15 + $0x564] ss:$8 sps:$4 sm:$0xff]  }
 0xa96   : > { %7671 = vmatprep.subr.bf16.mxu0 %v9667_v54 }
 0xa98   : > { %7631 = vmatpush1.bf16.msra.mxu1 %v9662_v41 }
 0xa99   : > { %7672 = vmatpush1.bf16.msra.mxu0 %v9665_v2  ;;  %7632 = vmatprep.subr.bf16.mxu1 %v9670_v30 }
 0xa9a   : > { %7673 = vmatprep.subr.bf16.mxu0 %v9673_v43 }
 0xa9c   : > { %7633 = vmatpush1.bf16.msra.mxu1 %v9668_v9  ;;  %v9722_v9 = vld [vmem:[%s11113_s15 + $0x460] ss:$8 sps:$4 sm:$0xff]  }
 0xa9d   : > { %7674 = vmatpush1.bf16.msra.mxu0 %v9671_v40  ;;  %7634 = vmatprep.subr.bf16.mxu1 %v9676_v38  ;;  %v9725_v38 = vld [vmem:[%s11113_s15 + $0x560] ss:$8 sps:$4 sm:$0xff]  }
 0xa9e   : > { %7675 = vmatprep.subr.bf16.mxu0 %v9679_v42 }
 0xaa0   : > { %7635 = vmatpush1.bf16.msra.mxu1 %v9674_v44 }
 0xaa1   : > { %7676 = vmatpush1.bf16.msra.mxu0 %v9677_v48  ;;  %7636 = vmatprep.subr.bf16.mxu1 %v9682_v51 }
 0xaa2   : > { %7677 = vmatprep.subr.bf16.mxu0 %v9685_v39 }
 0xaa4   : > { %7637 = vmatpush1.bf16.msra.mxu1 %v9680_v0  ;;  %v9731_v0 = vld [vmem:[%s11113_s15 + $0x570] ss:$8 sps:$4 sm:$0xff]  }
 0xaa5   : > { %7678 = vmatpush1.bf16.msra.mxu0 %v9683_v47  ;;  %7688 = vmatprep.subr.bf16.mxu1 %v9688_v31  ;;  %v9739_v47 = vld [vmem:[%s11113_s15 + $0x584] ss:$8 sps:$4 sm:$0xff]   ;;  %v9734_v31 = vld [vmem:[%s11113_s15 + $0x480] ss:$8 sps:$4 sm:$0xff]  }
 0xaa6   : > { %7729 = vmatprep.subr.bf16.mxu0 %v9691_v52  ;;  %v9742_v52 = vld [vmem:[%s11113_s15 + $0x494] ss:$8 sps:$4 sm:$0xff]  }
 0xaa7   : > { %7639 = vmatmul.mubr.bf16.vlgmr.msra.gmra.mrb[88].mxu1 %v5964_v63  ;;  %v9740_v63 = vld [vmem:[%s11113_s15 + $0x490] ss:$8 sps:$4 sm:$0xff]  }
 0xaa8   : > { %7680 = vmatmul.mubr.bf16.vlgmr.msra.gmra.mrb[32].mxu0 %v5966_v1  ;;  %7689 = vmatpush1.bf16.msra.mxu1 %v9686_v53  ;;  %v9745_v53 = vld [vmem:[%s11113_s15 + $0x594] ss:$8 sps:$4 sm:$0xff]   ;;  %v9751_v1 = vld [vmem:[%s11113_s15 + $0x5a4] ss:$8 sps:$4 sm:$0xff]  }
 0xaa9   : > { %7730 = vmatpush1.bf16.msra.mxu0 %v9689_v56  ;;  %7690 = vmatprep.subr.bf16.mxu1 %v9694_v57  ;;  %v9743_v56 = vld [vmem:[%s11113_s15 + $0x590] ss:$8 sps:$4 sm:$0xff]   ;;  %v9748_v57 = vld [vmem:[%s11113_s15 + $0x4a4] ss:$8 sps:$4 sm:$0xff]  }
 0xaaa   : > { %7731 = vmatprep.subr.bf16.mxu0 %v9697_v3  ;;  %v9746_v3 = vld [vmem:[%s11113_s15 + $0x4a0] ss:$8 sps:$4 sm:$0xff]  }
 0xaac   : > { %7691 = vmatpush1.bf16.msra.mxu1 %v9692_v4  ;;  %v9749_v4 = vld [vmem:[%s11113_s15 + $0x5a0] ss:$8 sps:$4 sm:$0xff]  }
 0xaad   : > { %7732 = vmatpush1.bf16.msra.mxu0 %v9695_v6  ;;  %7692 = vmatprep.subr.bf16.mxu1 %v9700_v16  ;;  %v9754_v6 = vld [vmem:[%s11113_s15 + $0x4b4] ss:$8 sps:$4 sm:$0xff]  }
 0xaae   : > { %7733 = vmatprep.subr.bf16.mxu0 %v9703_v20  ;;  %v9757_v16 = vld [vmem:[%s11113_s15 + $0x5b4] ss:$8 sps:$4 sm:$0xff]   ;;  %v9752_v20 = vld [vmem:[%s11113_s15 + $0x4b0] ss:$8 sps:$4 sm:$0xff]  }
 0xab0   : > { %7693 = vmatpush1.bf16.msra.mxu1 %v9698_v5  ;;  %v9755_v5 = vld [vmem:[%s11113_s15 + $0x5b0] ss:$8 sps:$4 sm:$0xff]  }
 0xab1   : > { %7734 = vmatpush1.bf16.msra.mxu0 %v9701_v37  ;;  %7694 = vmatprep.subr.bf16.mxu1 %v9706_v50  ;;  %v9760_v37 = vld [vmem:[%s11113_s15 + $0x4c4] ss:$8 sps:$4 sm:$0xff]  }
 0xab2   : > { %7735 = vmatprep.subr.bf16.mxu0 %v9709_v14  ;;  %v9763_v50 = vld [vmem:[%s11113_s15 + $0x5c4] ss:$8 sps:$4 sm:$0xff]   ;;  %v9758_v14 = vld [vmem:[%s11113_s15 + $0x4c0] ss:$8 sps:$4 sm:$0xff]  }
 0xab4   : > { %7695 = vmatpush1.bf16.msra.mxu1 %v9704_v25  ;;  %v9761_v25 = vld [vmem:[%s11113_s15 + $0x5c0] ss:$8 sps:$4 sm:$0xff]  }
 0xab5   : > { %7736 = vmatpush1.bf16.msra.mxu0 %v9707_v21  ;;  %7696 = vmatprep.subr.bf16.mxu1 %v9712_v26  ;;  %v9766_v21 = vld [vmem:[%s11113_s15 + $0x4d4] ss:$8 sps:$4 sm:$0xff]  }
 0xab6   : > { %7737 = vmatprep.subr.bf16.mxu0 %v9715_v27  ;;  %v9769_v26 = vld [vmem:[%s11113_s15 + $0x5d4] ss:$8 sps:$4 sm:$0xff]   ;;  %v9764_v27 = vld [vmem:[%s11113_s15 + $0x4d0] ss:$8 sps:$4 sm:$0xff]  }
 0xab8   : > { %7697 = vmatpush1.bf16.msra.mxu1 %v9710_v32  ;;  %v4291_v32 = vrot.slane %v12176_v34, %v11211_v10 }
 0xab9   : > { %7738 = vmatpush1.bf16.msra.mxu0 %v9713_v17  ;;  %7698 = vmatprep.subr.bf16.mxu1 %v9718_v19  ;;  %v9767_v17 = vld [vmem:[%s11113_s15 + $0x5d0] ss:$8 sps:$4 sm:$0xff]   ;;  %v9772_v19 = vld [vmem:[%s11113_s15 + $0x4e4] ss:$8 sps:$4 sm:$0xff]  }
 0xaba   : > { %v12187_v61 = vpop.f32.mrb[76].mxu1  ;;  %7739 = vmatprep.subr.bf16.mxu0 %v9721_v62  ;;  %v4299_v62 = vrot.slane %v12176_v34, %v11205_v8  ;;  %v9776_v8 = vld [vmem:[%s11113_s15 + $0x4f0] ss:$8 sps:$4 sm:$0xff]  }
 0xabb   : > { %v12190_v54 = vpop.f32.mrb[20].mxu0  ;;  %v5816_v41 = vpop.f32.mrb[77].mxu1 }
 0xabc   : > { %v5817_v2 = vadd.f32 %v5816_v41, %v4295_v58  ;;  %v5857_v30 = vpop.f32.mrb[21].mxu0  ;;  %v5818_v43 = vpop.f32.mrb[78].mxu1  ;;  %7699 = vmatpush1.bf16.msra.mxu1 %v9716_v59  ;;  %v9775_v58 = vld [vmem:[%s11113_s15 + $0x5e4] ss:$8 sps:$4 sm:$0xff]   ;;  %v9770_v59 = vld [vmem:[%s11113_s15 + $0x4e0] ss:$8 sps:$4 sm:$0xff]  }
 0xabd   : > { %v5858_v22 = vadd.f32 %v5857_v30, %v4303_v35  ;;  %v5859_v28 = vpop.f32.mrb[22].mxu0  ;;  %7740 = vmatpush1.bf16.msra.mxu0 %v9719_v11  ;;  %v5819_v40 = vpop.f32.mrb[79].mxu1  ;;  %7700 = vmatprep.subr.bf16.mxu1 %v9724_v12  ;;  %v5815_v35 = vadd.f32 %v12187_v61, %v4291_v32  ;;  %v9773_v11 = vld [vmem:[%s11113_s15 + $0x5e0] ss:$8 sps:$4 sm:$0xff]   ;;  %v9778_v12 = vld [vmem:[%s11113_s15 + $0x4f4] ss:$8 sps:$4 sm:$0xff]  }
 0xabe   : > { %v5953_v42 = vmax.f32 %v5817_v2, 0.0  ;;  %v5860_v44 = vpop.f32.mrb[23].mxu0  ;;  %7741 = vmatprep.subr.bf16.mxu0 %v9727_v13  ;;  %v5856_v13 = vadd.f32 %v12190_v54, %v4299_v62  ;;  %v9781_v41 = vld [vmem:[%s11113_s15 + $0x5f4] ss:$8 sps:$4 sm:$0xff]   ;;  %v9779_v30 = vld [vmem:[%s11113_s15 + $0x5f0] ss:$8 sps:$4 sm:$0xff]  }
 0xabf   : > { %v5955_v48 = vmax.f32 %v5858_v22, 0.0  ;;  %v5952_v2 = vmax.f32 %v5815_v35, 0.0  ;;  %v9784_v61 = vld [vmem:[%s11113_s15 + $0x604] ss:$8 sps:$4 sm:$0xff]   ;;  %v9782_v22 = vld [vmem:[%s11113_s15 + $0x600] ss:$8 sps:$4 sm:$0xff]  }
 0xac0   : > { %v5969_v51 = vpack.c.bf16 %v5953_v42, %v5953_v42  ;;  %7701 = vmatpush1.bf16.msra.mxu1 %v9722_v9  ;;  %v5954_v43 = vmax.f32 %v5856_v13, 0.0  ;;  %v9787_v9 = vld [vmem:[%s11113_s15 + $0x704] ss:$8 sps:$4 sm:$0xff]   ;;  %v9785_v28 = vld [vmem:[%s11113_s15 + $0x700] ss:$8 sps:$4 sm:$0xff]  }
 0xac1   : > { %v5971_v39 = vpack.c.bf16 %v5955_v48, %v5955_v48  ;;  %7742 = vmatpush1.bf16.msra.mxu0 %v9725_v38  ;;  %7702 = vmatprep.subr.bf16.mxu1 %v9730_v60  ;;  %v5968_v54 = vpack.c.bf16 %v5952_v2, %v5952_v2  ;;  %v9790_v40 = vld [vmem:[%s11113_s15 + $0x614] ss:$8 sps:$4 sm:$0xff]   ;;  %v9788_v42 = vld [vmem:[%s11113_s15 + $0x610] ss:$8 sps:$4 sm:$0xff]   ;;  %v9799_v48 = vld [vmem:[%s11113_s15 + $0x724] ss:$8 sps:$4 sm:$0xff]  }
 0xac2   : > { %7720 = vmatprep.mubr.bf16.mxu1 %v5969_v51  ;;  %7743 = vmatprep.subr.bf16.mxu0 %v9733_v45  ;;  %v5970_v38 = vpack.c.bf16 %v5954_v43, %v5954_v43  ;;  %v9793_v60 = vld [vmem:[%s11113_s15 + $0x714] ss:$8 sps:$4 sm:$0xff]   ;;  %v9791_v44 = vld [vmem:[%s11113_s15 + $0x710] ss:$8 sps:$4 sm:$0xff]   ;;  %v9796_v45 = vld [vmem:[%s11113_s15 + $0x624] ss:$8 sps:$4 sm:$0xff]  }
 0xac3   : > { %7761 = vmatprep.mubr.bf16.mxu0 %v5971_v39  ;;  %v9794_v51 = vld [vmem:[%s11113_s15 + $0x620] ss:$8 sps:$4 sm:$0xff]   ;;  %v9802_v39 = vld [vmem:[%s11113_s15 + $0x634] ss:$8 sps:$4 sm:$0xff]   ;;  %v9824_v35 = vld [vmem:[%s11113_s15 + $0x670] ss:$8 sps:$4 sm:$0xff]  }
 0xac4   : > { %7703 = vmatpush1.bf16.msra.mxu1 %v9728_v33  ;;  %v9797_v33 = vld [vmem:[%s11113_s15 + $0x720] ss:$8 sps:$4 sm:$0xff]   ;;  %v9826_v32 = vld [vmem:[%s11113_s15 + $0x674] ss:$8 sps:$4 sm:$0xff]   ;;  %v9832_v13 = vld [vmem:[%s11113_s15 + $0x684] ss:$8 sps:$4 sm:$0xff]  }
 0xac5   : > { %7744 = vmatpush1.bf16.msra.mxu0 %v9731_v0  ;;  %7704 = vmatprep.subr.bf16.mxu1 %v9736_v46  ;;  %v9805_v0 = vld [vmem:[%s11113_s15 + $0x734] ss:$8 sps:$4 sm:$0xff]   ;;  %v9800_v46 = vld [vmem:[%s11113_s15 + $0x630] ss:$8 sps:$4 sm:$0xff]   ;;  %v9833_v2 = vld [vmem:[%s11113_s15 + $0x780] ss:$8 sps:$4 sm:$0xff]  }
 0xac6   : > { %7745 = vmatprep.subr.bf16.mxu0 %v9739_v47  ;;  %v9803_v47 = vld [vmem:[%s11113_s15 + $0x730] ss:$8 sps:$4 sm:$0xff]   ;;  %v9829_v62 = vld [vmem:[%s11113_s15 + $0x774] ss:$8 sps:$4 sm:$0xff]  }
 0xac7   : > { %v9836_v43 = vld [vmem:[%s11113_s15 + $0x690] ss:$8 sps:$4 sm:$0xff]  }
 0xac8   : > { %7705 = vmatpush1.bf16.msra.mxu1 %v9734_v31  ;;  %v9808_v31 = vld [vmem:[%s11113_s15 + $0x644] ss:$8 sps:$4 sm:$0xff]  }
 0xac9   : > { %7746 = vmatpush1.bf16.msra.mxu0 %v9737_v49  ;;  %7706 = vmatprep.subr.bf16.mxu1 %v9742_v52  ;;  %v9811_v49 = vld [vmem:[%s11113_s15 + $0x744] ss:$8 sps:$4 sm:$0xff]   ;;  %v9806_v52 = vld [vmem:[%s11113_s15 + $0x640] ss:$8 sps:$4 sm:$0xff]  }
 0xaca   : > { %7747 = vmatprep.subr.bf16.mxu0 %v9745_v53  ;;  %v9809_v53 = vld [vmem:[%s11113_s15 + $0x740] ss:$8 sps:$4 sm:$0xff]  }
 0xacc   : > { %7707 = vmatpush1.bf16.msra.mxu1 %v9740_v63  ;;  %v9814_v63 = vld [vmem:[%s11113_s15 + $0x654] ss:$8 sps:$4 sm:$0xff]  }
 0xacd   : > { %7748 = vmatpush1.bf16.msra.mxu0 %v9743_v56  ;;  %7708 = vmatprep.subr.bf16.mxu1 %v9748_v57  ;;  %v9817_v56 = vld [vmem:[%s11113_s15 + $0x754] ss:$8 sps:$4 sm:$0xff]   ;;  %v4311_v57 = vrot.slane %v12176_v34, %v11452_v29 }
 0xace   : > { %7749 = vmatprep.subr.bf16.mxu0 %v9751_v1  ;;  %v9812_v1 = vld [vmem:[%s11113_s15 + $0x650] ss:$8 sps:$4 sm:$0xff]  }
 0xad0   : > { %7709 = vmatpush1.bf16.msra.mxu1 %v9746_v3  ;;  %v4319_v3 = vrot.slane %v12176_v34, %v4286_v36 }
 0xad1   : > { %7750 = vmatpush1.bf16.msra.mxu0 %v9749_v4  ;;  %7710 = vmatprep.subr.bf16.mxu1 %v9754_v6  ;;  %v9815_v4 = vld [vmem:[%s11113_s15 + $0x750] ss:$8 sps:$4 sm:$0xff]   ;;  %v9820_v6 = vld [vmem:[%s11113_s15 + $0x664] ss:$8 sps:$4 sm:$0xff]  }
 0xad2   : > { %7751 = vmatprep.subr.bf16.mxu0 %v9757_v16 }
 0xad4   : > { %7711 = vmatpush1.bf16.msra.mxu1 %v9752_v20  ;;  %v9823_v20 = vld [vmem:[%s11113_s15 + $0x764] ss:$8 sps:$4 sm:$0xff]  }
 0xad5   : > { %7752 = vmatpush1.bf16.msra.mxu0 %v9755_v5  ;;  %7712 = vmatprep.subr.bf16.mxu1 %v9760_v37 }
 0xad6   : > { %7753 = vmatprep.subr.bf16.mxu0 %v9763_v50 }
 0xad8   : > { %7713 = vmatpush1.bf16.msra.mxu1 %v9758_v14 }
 0xad9   : > { %7754 = vmatpush1.bf16.msra.mxu0 %v9761_v25  ;;  %7714 = vmatprep.subr.bf16.mxu1 %v9766_v21  ;;  %v9818_v25 = vld [vmem:[%s11113_s15 + $0x660] ss:$8 sps:$4 sm:$0xff]  }
 0xada   : > { %7755 = vmatprep.subr.bf16.mxu0 %v9769_v26 }
 0xadc   : > { %7715 = vmatpush1.bf16.msra.mxu1 %v9764_v27  ;;  %v9821_v27 = vld [vmem:[%s11113_s15 + $0x760] ss:$8 sps:$4 sm:$0xff]  }
 0xadd   : > { %7756 = vmatpush1.bf16.msra.mxu0 %v9767_v17  ;;  %7716 = vmatprep.subr.bf16.mxu1 %v9772_v19 }
 0xade   : > { %7757 = vmatprep.subr.bf16.mxu0 %v9775_v58 }
 0xae0   : > { %7717 = vmatpush1.bf16.msra.mxu1 %v9770_v59 }
 0xae1   : > { %7758 = vmatpush1.bf16.msra.mxu0 %v9773_v11  ;;  %7718 = vmatprep.subr.bf16.mxu1 %v9778_v12  ;;  %v9827_v12 = vld [vmem:[%s11113_s15 + $0x770] ss:$8 sps:$4 sm:$0xff]  }
 0xae2   : > { %7759 = vmatprep.subr.bf16.mxu0 %v9781_v41  ;;  %v9835_v41 = vld [vmem:[%s11113_s15 + $0x784] ss:$8 sps:$4 sm:$0xff]  }
 0xae4   : > { %7719 = vmatpush1.bf16.msra.mxu1 %v9776_v8  ;;  %v9830_v8 = vld [vmem:[%s11113_s15 + $0x680] ss:$8 sps:$4 sm:$0xff]  }
 0xae5   : > { %7760 = vmatpush1.bf16.msra.mxu0 %v9779_v30  ;;  %7770 = vmatprep.subr.bf16.mxu1 %v9784_v61  ;;  %v9838_v30 = vld [vmem:[%s11113_s15 + $0x694] ss:$8 sps:$4 sm:$0xff]  }
 0xae6   : > { %7811 = vmatprep.subr.bf16.mxu0 %v9787_v9  ;;  %v9841_v61 = vld [vmem:[%s11113_s15 + $0x794] ss:$8 sps:$4 sm:$0xff]   ;;  %v9839_v9 = vld [vmem:[%s11113_s15 + $0x790] ss:$8 sps:$4 sm:$0xff]  }
 0xae7   : > { %7721 = vmatmul.mubr.bf16.vlgmr.msra.gmra.mrb[92].mxu1 %v5968_v54  ;;  %v9847_v54 = vld [vmem:[%s11113_s15 + $0x7a4] ss:$8 sps:$4 sm:$0xff]  }
 0xae8   : > { %7762 = vmatmul.mubr.bf16.vlgmr.msra.gmra.mrb[36].mxu0 %v5970_v38  ;;  %7771 = vmatpush1.bf16.msra.mxu1 %v9782_v22  ;;  %v9844_v22 = vld [vmem:[%s11113_s15 + $0x6a4] ss:$8 sps:$4 sm:$0xff]   ;;  %v9850_v38 = vld [vmem:[%s11113_s15 + $0x6b4] ss:$8 sps:$4 sm:$0xff]  }
 0xae9   : > { %7812 = vmatpush1.bf16.msra.mxu0 %v9785_v28  ;;  %7772 = vmatprep.subr.bf16.mxu1 %v9790_v40  ;;  %v9842_v28 = vld [vmem:[%s11113_s15 + $0x6a0] ss:$8 sps:$4 sm:$0xff]  }
 0xaea   : > { %7813 = vmatprep.subr.bf16.mxu0 %v9793_v60  ;;  %v9845_v40 = vld [vmem:[%s11113_s15 + $0x7a0] ss:$8 sps:$4 sm:$0xff]   ;;  %v9853_v60 = vld [vmem:[%s11113_s15 + $0x7b4] ss:$8 sps:$4 sm:$0xff]  }
 0xaec   : > { %7773 = vmatpush1.bf16.msra.mxu1 %v9788_v42  ;;  %v9848_v42 = vld [vmem:[%s11113_s15 + $0x6b0] ss:$8 sps:$4 sm:$0xff]  }
 0xaed   : > { %7814 = vmatpush1.bf16.msra.mxu0 %v9791_v44  ;;  %7774 = vmatprep.subr.bf16.mxu1 %v9796_v45  ;;  %v9851_v44 = vld [vmem:[%s11113_s15 + $0x7b0] ss:$8 sps:$4 sm:$0xff]   ;;  %v9856_v45 = vld [vmem:[%s11113_s15 + $0x6c4] ss:$8 sps:$4 sm:$0xff]  }
 0xaee   : > { %7815 = vmatprep.subr.bf16.mxu0 %v9799_v48  ;;  %v9859_v48 = vld [vmem:[%s11113_s15 + $0x7c4] ss:$8 sps:$4 sm:$0xff]  }
 0xaf0   : > { %7775 = vmatpush1.bf16.msra.mxu1 %v9794_v51  ;;  %v9854_v51 = vld [vmem:[%s11113_s15 + $0x6c0] ss:$8 sps:$4 sm:$0xff]  }
 0xaf1   : > { %7816 = vmatpush1.bf16.msra.mxu0 %v9797_v33  ;;  %7776 = vmatprep.subr.bf16.mxu1 %v9802_v39  ;;  %v9857_v33 = vld [vmem:[%s11113_s15 + $0x7c0] ss:$8 sps:$4 sm:$0xff]   ;;  %v9862_v39 = vld [vmem:[%s11113_s15 + $0x6d4] ss:$8 sps:$4 sm:$0xff]  }
 0xaf2   : > { %7817 = vmatprep.subr.bf16.mxu0 %v9805_v0  ;;  %v9865_v0 = vld [vmem:[%s11113_s15 + $0x7d4] ss:$8 sps:$4 sm:$0xff]  }
 0xaf4   : > { %7777 = vmatpush1.bf16.msra.mxu1 %v9800_v46  ;;  %v9860_v46 = vld [vmem:[%s11113_s15 + $0x6d0] ss:$8 sps:$4 sm:$0xff]  }
 0xaf5   : > { %7818 = vmatpush1.bf16.msra.mxu0 %v9803_v47  ;;  %7778 = vmatprep.subr.bf16.mxu1 %v9808_v31  ;;  %v4307_v47 = vrot.slane %v12176_v34, %v11443_v18  ;;  %v9863_v31 = vld [vmem:[%s11113_s15 + $0x7d0] ss:$8 sps:$4 sm:$0xff]   ;;  %v9869_v18 = vld [vmem:[%s11113_s15 + $0x7e0] ss:$8 sps:$4 sm:$0xff]  }
 0xaf6   : > { %7819 = vmatprep.subr.bf16.mxu0 %v9811_v49  ;;  %v9868_v49 = vld [vmem:[%s11113_s15 + $0x6e4] ss:$8 sps:$4 sm:$0xff]  }
 0xaf8   : > { %7779 = vmatpush1.bf16.msra.mxu1 %v9806_v52  ;;  %v4315_v52 = vrot.slane %v12176_v34, %v4282_v23  ;;  %v9875_v23 = vld [vmem:[%s11113_s15 + $0x7f0] ss:$8 sps:$4 sm:$0xff]  }
 0xaf9   : > { %7820 = vmatpush1.bf16.msra.mxu0 %v9809_v53  ;;  %7780 = vmatprep.subr.bf16.mxu1 %v9814_v63  ;;  %v9871_v53 = vld [vmem:[%s11113_s15 + $0x7e4] ss:$8 sps:$4 sm:$0xff]   ;;  %v9866_v63 = vld [vmem:[%s11113_s15 + $0x6e0] ss:$8 sps:$4 sm:$0xff]  }
 0xafa   : > { %v12266_v16 = vpop.f32.mrb[80].mxu1  ;;  %7821 = vmatprep.subr.bf16.mxu0 %v9817_v56 }
 0xafb   : > { %v12269_v5 = vpop.f32.mrb[24].mxu0  ;;  %v5898_v37 = vpop.f32.mrb[81].mxu1  ;;  %v5897_v56 = vadd.f32 %v12266_v16, %v4307_v47 }
 0xafc   : > { %v5899_v29 = vadd.f32 %v5898_v37, %v4311_v57  ;;  %v5939_v50 = vpop.f32.mrb[25].mxu0  ;;  %v5900_v14 = vpop.f32.mrb[82].mxu1  ;;  %7781 = vmatpush1.bf16.msra.mxu1 %v9812_v1  ;;  %v9874_v57 = vld [vmem:[%s11113_s15 + $0x6f4] ss:$8 sps:$4 sm:$0xff]   ;;  %v5938_v1 = vadd.f32 %v12269_v5, %v4315_v52 }
 0xafd   : > { %v5940_v36 = vadd.f32 %v5939_v50, %v4319_v3  ;;  %v5941_v21 = vpop.f32.mrb[26].mxu0  ;;  %7822 = vmatpush1.bf16.msra.mxu0 %v9815_v4  ;;  %v5901_v26 = vpop.f32.mrb[83].mxu1  ;;  %7782 = vmatprep.subr.bf16.mxu1 %v9820_v6  ;;  %v9877_v3 = vld [vmem:[%s11113_s15 + $0x7f4] ss:$8 sps:$4 sm:$0xff]   ;;  %v5956_v4 = vmax.f32 %v5897_v56, 0.0 }
 0xafe   : > { %v5957_v17 = vmax.f32 %v5899_v29, 0.0  ;;  %v5942_v19 = vpop.f32.mrb[27].mxu0  ;;  %7823 = vmatprep.subr.bf16.mxu0 %v9823_v20  ;;  %v5958_v34 = vmax.f32 %v5938_v1, 0.0  ;;  %v6232_v20 = vld [vmem:[%s794_s2] sm:$0x3] }
 0xaff   : > { %v5959_v58 = vmax.f32 %v5940_v36, 0.0  ;;  %v5972_v6 = vpack.c.bf16 %v5956_v4, %v5956_v4  ;;  %v6237_v5 = vrot.slane %v6232_v20, %v11211_v10  ;;  %v6241_v37 = vrot.slane %v6232_v20, %v11229_v24 }
 0xb00   : > { %v5973_v59 = vpack.c.bf16 %v5957_v17, %v5957_v17  ;;  %7783 = vmatpush1.bf16.msra.mxu1 %v9818_v25  ;;  %v5974_v16 = vpack.c.bf16 %v5958_v34, %v5958_v34 }
 0xb01   : > { %v5975_v11 = vpack.c.bf16 %v5959_v58, %v5959_v58  ;;  %7824 = vmatpush1.bf16.msra.mxu0 %v9821_v27  ;;  %7784 = vmatprep.subr.bf16.mxu1 %v9826_v32 }
 0xb02   : > { %7802 = vmatprep.mubr.bf16.mxu1 %v5973_v59  ;;  %7825 = vmatprep.subr.bf16.mxu0 %v9829_v62 }
 0xb03   : > { %7843 = vmatprep.mubr.bf16.mxu0 %v5975_v11 }
 0xb04   : > { %7785 = vmatpush1.bf16.msra.mxu1 %v9824_v35 }
 0xb05   : > { %7826 = vmatpush1.bf16.msra.mxu0 %v9827_v12  ;;  %7786 = vmatprep.subr.bf16.mxu1 %v9832_v13 }
 0xb06   : > { %7827 = vmatprep.subr.bf16.mxu0 %v9835_v41 }
 0xb08   : > { %7787 = vmatpush1.bf16.msra.mxu1 %v9830_v8 }
 0xb09   : > { %7828 = vmatpush1.bf16.msra.mxu0 %v9833_v2  ;;  %7788 = vmatprep.subr.bf16.mxu1 %v9838_v30 }
 0xb0a   : > { %7829 = vmatprep.subr.bf16.mxu0 %v9841_v61 }
 0xb0c   : > { %7789 = vmatpush1.bf16.msra.mxu1 %v9836_v43 }
 0xb0d   : > { %7830 = vmatpush1.bf16.msra.mxu0 %v9839_v9  ;;  %7790 = vmatprep.subr.bf16.mxu1 %v9844_v22 }
 0xb0e   : > { %7831 = vmatprep.subr.bf16.mxu0 %v9847_v54 }
 0xb10   : > { %7791 = vmatpush1.bf16.msra.mxu1 %v9842_v28 }
 0xb11   : > { %7832 = vmatpush1.bf16.msra.mxu0 %v9845_v40  ;;  %7792 = vmatprep.subr.bf16.mxu1 %v9850_v38 }
 0xb12   : > { %7833 = vmatprep.subr.bf16.mxu0 %v9853_v60 }
 0xb14   : > { %7793 = vmatpush1.bf16.msra.mxu1 %v9848_v42 }
 0xb15   : > { %7834 = vmatpush1.bf16.msra.mxu0 %v9851_v44  ;;  %7794 = vmatprep.subr.bf16.mxu1 %v9856_v45 }
 0xb16   : > { %7835 = vmatprep.subr.bf16.mxu0 %v9859_v48 }
 0xb18   : > { %7795 = vmatpush1.bf16.msra.mxu1 %v9854_v51 }
 0xb19   : > { %7836 = vmatpush1.bf16.msra.mxu0 %v9857_v33  ;;  %7796 = vmatprep.subr.bf16.mxu1 %v9862_v39 }
 0xb1a   : > { %7837 = vmatprep.subr.bf16.mxu0 %v9865_v0 }
 0xb1c   : > { %7797 = vmatpush1.bf16.msra.mxu1 %v9860_v46 }
 0xb1d   : > { %7838 = vmatpush1.bf16.msra.mxu0 %v9863_v31  ;;  %7798 = vmatprep.subr.bf16.mxu1 %v9868_v49 }
 0xb1e   : > { %7839 = vmatprep.subr.bf16.mxu0 %v9871_v53 }
 0xb20   : > { %7799 = vmatpush1.bf16.msra.mxu1 %v9866_v63 }
 0xb21   : > { %7840 = vmatpush1.bf16.msra.mxu0 %v9869_v18  ;;  %7800 = vmatprep.subr.bf16.mxu1 %v9874_v57 }
 0xb22   : > { %7841 = vmatprep.subr.bf16.mxu0 %v9877_v3 }
 0xb24   : > { %7801 = vmatpush1.bf16.msra.mxu1 %v9872_v7 }
 0xb25   : > { %7842 = vmatpush1.bf16.msra.mxu0 %v9875_v23 }
 0xb27   : > { %7803 = vmatmul.mubr.bf16.vlgmr.msra.gmra.mrb[96].mxu1 %v5972_v6 }
 0xb28   : > { %7844 = vmatmul.mubr.bf16.vlgmr.msra.gmra.mrb[40].mxu0 %v5974_v16 }
 0xb3a   : > { %v7558_v29 = vpop.f32.mrb[84].mxu1 }
 0xb3b   : > { %v7559_v50 = vadd.f32 %v7558_v29, %v6237_v5  ;;  %v7599_v14 = vpop.f32.mrb[28].mxu0  ;;  %v7560_v25 = vpop.f32.mrb[85].mxu1 }
 0xb3c   : > { %v7561_v36 = vadd.f32 %v7560_v25, %v6241_v37  ;;  %v7601_v21 = vpop.f32.mrb[29].mxu0  ;;  %v7562_v26 = vpop.f32.mrb[86].mxu1 }
 0xb3d   : > { %v7600_v27 = vadd.f32 %v7599_v14, %v7559_v50  ;;  %v7603_v32 = vpop.f32.mrb[30].mxu0  ;;  %v7563_v17 = vpop.f32.mrb[87].mxu1  ;;  %v7855_v50 = vld [vmem:[%s812_s26] sm:$0x3] }
 0xb3e   : > { %v7602_v19 = vadd.f32 %v7601_v21, %v7561_v36  ;;  %v7604_v62 = vpop.f32.mrb[31].mxu0  ;;  %v7889_v36 = vrot.slane %v7855_v50, %v11211_v10  ;;  %v7893_v21 = vrot.slane %v7855_v50, %v11229_v24 }
 0xb7a   : > { %v7640_v58 = vpop.f32.mrb[88].mxu1 }
 0xb7b   : > { %v7641_v59 = vadd.f32 %v7640_v58, %v7600_v27  ;;  %v7681_v35 = vpop.f32.mrb[32].mxu0  ;;  %v7642_v11 = vpop.f32.mrb[89].mxu1 }
 0xb7c   : > { %v7643_v12 = vadd.f32 %v7642_v11, %v7602_v19  ;;  %v7683_v13 = vpop.f32.mrb[33].mxu0  ;;  %v7644_v41 = vpop.f32.mrb[90].mxu1 }
 0xb7d   : > { %v7682_v8 = vadd.f32 %v7681_v35, %v7641_v59  ;;  %v7685_v2 = vpop.f32.mrb[34].mxu0  ;;  %v7645_v30 = vpop.f32.mrb[91].mxu1 }
 0xb7e   : > { %v7684_v61 = vadd.f32 %v7683_v13, %v7643_v12  ;;  %v7686_v43 = vpop.f32.mrb[35].mxu0 }
 0xbba   : > { %v7722_v9 = vpop.f32.mrb[92].mxu1 }
 0xbbb   : > { %v7723_v22 = vadd.f32 %v7722_v9, %v7682_v8  ;;  %v7763_v54 = vpop.f32.mrb[36].mxu0  ;;  %v7724_v28 = vpop.f32.mrb[93].mxu1 }
 0xbbc   : > { %v7725_v40 = vadd.f32 %v7724_v28, %v7684_v61  ;;  %v7765_v38 = vpop.f32.mrb[37].mxu0  ;;  %v7726_v60 = vpop.f32.mrb[94].mxu1 }
 0xbbd   : > { %v7764_v42 = vadd.f32 %v7763_v54, %v7723_v22  ;;  %v7767_v44 = vpop.f32.mrb[38].mxu0  ;;  %v7727_v45 = vpop.f32.mrb[95].mxu1 }
 0xbbe   : > { %v7766_v48 = vadd.f32 %v7765_v38, %v7725_v40  ;;  %v7768_v51 = vpop.f32.mrb[39].mxu0 }
 0xbfa   : > { %v7804_v33 = vpop.f32.mrb[96].mxu1 }
 0xbfb   : > { %v7805_v39 = vadd.f32 %v7804_v33, %v7764_v42  ;;  %v7845_v0 = vpop.f32.mrb[40].mxu0  ;;  %v7806_v46 = vpop.f32.mrb[97].mxu1 }
 0xbfc   : > { %v7807_v47 = vadd.f32 %v7806_v46, %v7766_v48  ;;  %v7847_v31 = vpop.f32.mrb[41].mxu0  ;;  %v7808_v49 = vpop.f32.mrb[98].mxu1 }
 0xbfd   : > { %v7846_v52 = vadd.f32 %v7845_v0, %v7805_v39  ;;  %v7849_v53 = vpop.f32.mrb[42].mxu0  ;;  %v7809_v63 = vpop.f32.mrb[99].mxu1 }
 0xbfe   : > { %v7848_v56 = vadd.f32 %v7847_v31, %v7807_v47  ;;  %v7850_v18 = vpop.f32.mrb[43].mxu0 }
 0xbff   : > { %v7852_v57 = vadd.f32 %v7846_v52, %v11776_v55  ;;  %v7854_v55 = vld [vmem:[%s803_s28] sm:$0x3] }
 0xc00   : > { %v7853_v1 = vadd.f32 %v7848_v56, %v11778_v15  ;;  %v7876_v15 = vrot.slane %v7854_v55, %v11211_v10  ;;  %v7880_v14 = vrot.slane %v7854_v55, %v11229_v24 }
 0xc02   : > { %v7856_v3 = vadd.f32 %v7853_v1, %v7852_v57 }
 0xc04   : > { %7857 = vadd.xlane.f32.xlu0 %v7856_v3 }
 0xc91   : > { %v7858_v7 = vpop.xlane.xlu0 %7857 }
 0xc92   : > { %v7859_v4 = vmul.f32 0.00390625, %v7858_v7 }
 0xc94   : > { %v7860_v23 = vsub.f32 %v7852_v57, %v7859_v4  ;;  %v7861_v34 = vsub.f32 %v7853_v1, %v7859_v4 }
 0xc96   : > { %v7862_v6 = vmul.f32 %v7860_v23, %v7860_v23  ;;  %v7863_v16 = vmul.f32 %v7861_v34, %v7861_v34 }
 0xc98   : > { %v7864_v20 = vadd.f32 %v7863_v16, %v7862_v6 }
 0xc9a   : > { %7865 = vadd.xlane.f32.xlu1 %v7864_v20 }
 0xd27   : > { %v7866_v5 = vpop.xlane.xlu1 %7865 }
 0xd28   : > { %v7867_v37 = vmul.f32 0.00390625, %v7866_v5 }
 0xd2a   : > { %v7868_v29 = vadd.f32 1e-05, %v7867_v37 }
 0xd2c   : > { %9912 = vrsqrt.f32 %v7868_v29 }
 0xd36   : > { %v9913_v25 = vpop.eup %9912 }
 0xd37   : > { %v7870_v26 = vmul.f32 %v9913_v25, %v7860_v23  ;;  %v7871_v27 = vmul.f32 %v9913_v25, %v7861_v34  ;;  %7903 = sbr.rel (%p9001_p10) target bundleno = 3391 (0xd3f), region = 132 }
 0xd39   : > { %v7883_v32 = vmul.f32 %v7876_v15, %v7870_v26  ;;  %v7884_v17 = vmul.f32 %v7880_v14, %v7871_v27 }
 0xd3b   : > { %v7896_v19 = vadd.f32 %v7889_v36, %v7883_v32  ;;  %v7897_v62 = vadd.f32 %v7893_v21, %v7884_v17 }
 0xd3d   : > { %7898 = vst [vmem:[#allocation2] sm:$0xff] %v7896_v19  ;;  %7899 = vst [vmem:[#allocation2 + $0x8] sm:$0xff] %v7897_v62 }
 0xd3e   : > { %7904 = vst [vmem:[%s11129_s14] sm:$0xff] %v7896_v19  ;;  %7905 = vst [vmem:[%s11129_s14 + $0x8] sm:$0xff] %v7897_v62 }
 0xd3f PF: > { %s12503_s10 = sld [smem:[#allocation37_spill]]  ;;  %s12504_s13 = sld [smem:[#allocation45_spill]] }
 0xd40   : > { %s12505_s20 = sld [smem:[#allocation56_spill]]  ;;  %s7921_s28 = sshll.u32 %s11129_s14, 4  ;;  %s7922_s28 = int_to_ptr.vmem [resolvable:$true] %s7921_s28 }
 0xd41   : > { %s7907_s26 = scalar_lea.sflag [#allocation5], %s11061_s5  ;;  %s10280_s0 = scalar_lea.vmem %s7922_s28, 256 }
 0xd42   : > { %p10281_p8 = scmp.ne.s32.totalorder %s7922_s28, %s10280_s0  ;;  %s10454_s3 = smov [#allocation24]  }
 0xd43   : > { %s10284_s1 = sshll.u32 %s10454_s3, 4  ;;  %s10285_s1 = int_to_ptr.vmem [resolvable:$false] %s10284_s1 }
 0xd44   : > { %s10286_s25 = scalar_lea.vmem %s10285_s1, 512  ;;  %p10287_p1 = scmp.lt.s32.totalorder %s7922_s28, %s10285_s1 }
 0xd45   : > { %s9018_s8 = sshll.u32 %s12503_s10, 8  ;;  %p12506_p3 = scmp.ne.s32.totalorder %s12504_s13, 0 }
 0xd46   : > { %s12337_s15 = scalar_lea.hbm %s12505_s20, %s9018_s8  ;;  %p10288_p6 = scmp.lt.s32.totalorder %s10286_s25, %s10280_s0 }
 0xd47   : > { %p10282_p13 = pnand %p10281_p8, %p12506_p3 }
 0xd48   : > { %p10289_p0 = por %p10288_p6, %p10287_p1 }
 0xd49   : > { %p10283_p2 = pneg %p10282_p13 }
 0xd4b   : > { %p10290_p11 = pnand %p10289_p0, %p10283_p2 }
 0xd4d   : > { %10293 = shalt.err (!%p10290_p11)
}
 0xd4e   : > { %s10294_s5 = scalar_lea.hbm %s12337_s15, 256  ;;  %s10298_s24 = scalar_lea.hbm %s12505_s20, 512 }
 0xd4f   : > { %p10295_p4 = scmp.ne.s32.totalorder %s12337_s15, %s10294_s5  ;;  %p10299_p5 = scmp.lt.u32.totalorder %s12337_s15, %s12505_s20 }
 0xd50   : > { %p10300_p9 = scmp.lt.u32.totalorder %s10298_s24, %s10294_s5  ;;  %p10302_p8 = scmp.lt.u32.totalorder %s10294_s5, %s12337_s15 }
 0xd51   : > { %p10296_p7 = pnand %p10295_p4, %p12506_p3 }
 0xd52   : > { %p10301_p10 = por %p10300_p9, %p10299_p5 }
 0xd53   : > { %p10297_p12 = pneg %p10296_p7 }
 0xd54   : > { %p10303_p13 = por %p10302_p8, %p10301_p10 }
 0xd56   : > { %p10304_p2 = pnand %p10303_p13, %p10297_p12 }
 0xd58   : > { %10307 = shalt.err (!%p10304_p2)
}
 0xd59   : > { %9179 = dma.vmem_to_hbm [thread:$0]  (%p12506_p3), %s7922_s28, 256, %s12337_s15, %s7907_s26  }
 0xd5a PF: > { %s12507_s10 = sld [smem:[#allocation35_spill]]  ;;  %s12508_s8 = sld [smem:[#allocation46_spill]] }
 0xd5b   : > { %p9185_p1 = scmp.ge.s32.totalorder %s10426_s18, 2 }
 0xd60   : > { %s7933_s21 = sand.u32 1, %s12507_s10   ;;  %p12509_p6 = scmp.ne.s32.totalorder %s12508_s8, 0 }
 0xd61   : > { %s7934_s2 = scalar_lea.sflag [#allocation5], %s7933_s21 }
 0xd62   : > { %p9182_p0 = pnand %p9185_p1, %p12509_p6 }
 0xd64   : > { %10381 = dma.done.wait (!%p9182_p0), %s7934_s2, 256  }
 0xd65   : > { %10383 = vsyncadd (!%p9182_p0), %s7934_s2, 4294967040  ;;  %s47_s18 = sadd.s32 1, %s10426_s18   ;;  %s12510_s25 = sld [smem:[#allocation33_spill]] }
 0xd66   : > { %p44_p11 = scmp.ge.s32.totalorder %s47_s18, 6   ;;  %s12511_s26 = sld [smem:[#allocation34_spill]] }
 0xd67   : > { %s12512_s27 = sld [smem:[#allocation42_spill]]  ;;  %s12513_s13 = sld [smem:[#allocation43_spill]] }
 0xd68   : > { %s12514_s0 = sld [smem:[#allocation39_spill]]  ;;  %s12515_s3 = sld [smem:[#allocation40_spill]] }
 0xd69   : > { %s12516_s28 = smov %s10402_s29  ;;  %s12517_s29 = smov %s10406_s30 }
 0xd6a   : > { %s12519_s14 = smov %s10418_s16  ;;  %s12520_s15 = smov %s10422_s17 }
 0xd6b   :  { %46 = sbr.rel (!%p44_p11) target bundleno = 32 (0x20), region = 269 }
 0xd6d   : > { %s12518_s30 = smov %s12513_s13 }
 0xd6e   : > { %s12521_s16 = smov %s12514_s0  ;;  %s12522_s17 = smov %s12515_s3 }
 0xd72   :  { %7939 = vsyncpa [#allocation4], 1 }
 0xd73   :  { %7941 = vsyncpa [#allocation4 + $0x1], 1 }
 0xd74   :  { %7942 = vsyncpa [#allocation7], 1 }
 0xd75   :  { %7944 = vsyncpa [#allocation7 + $0x1], 1 }
 0xd76   :  { %7945 = vsyncpa [#allocation10], 1 }
 0xd77   :  { %7947 = vsyncpa [#allocation10 + $0x1], 1 }
 0xd78   :  { %7948 = vsyncpa [#allocation13], 1 }
 0xd79   :  { %7950 = vsyncpa [#allocation13 + $0x1], 1 }
 0xd7a   :  { %7951 = vsyncpa [#allocation16], 1 }
 0xd7b   :  { %7953 = vsyncpa [#allocation16 + $0x1], 1 }
 0xd7c   :  { %7954 = vsyncpa [#allocation19], 1 }
 0xd7d   :  { %7956 = vsyncpa [#allocation19 + $0x1], 1 }
 0xd7e   :  { %7957 = vsyncpa [#allocation22], 1 }
 0xd7f   :  { %7959 = vsyncpa [#allocation22 + $0x1], 1 }
 0xd80   :  { %7960 = vsyncpa [#allocation5], 1 }
 0xd81   :  { %7962 = vsyncpa [#allocation5 + $0x1], 1 }

</bundles_post_ra>
